<compile_context>
chip_gen: v7x
topology: tpu7x:2x2x1
jax: 0.10.0
libtpu: 0.0.40
codegen_flags: <defaults>
</compile_context>

<pallas_src>
import functools
import math

import jax
import jax.numpy as jnp
from jax import lax
from jax.experimental import pallas as pl
from jax.experimental.pallas import tpu as pltpu


# ----------------------------------------------------------------------------
# Pallas kernel: full encoder stack for one batch tile
# ----------------------------------------------------------------------------
def encoder_stack_kernel(x_ref,            # (Bt, S, D)  f32 activations
                         km_ref,           # (Bt, 1, S)  f32 key-valid mask (1/0)
                         wqkv_ref,         # (L, D, 3D)  bf16 fused, pre-transposed QKV
                         wo_ref,           # (L, D, D)   bf16 output projection (pre-T)
                         g1_ref, be1_ref,  # (L, 1, D)   f32 LayerNorm 1
                         w1_ref,           # (L, D, F)   bf16 FFN dense1 (pre-T)
                         b1_ref,           # (L, 1, F)   f32
                         w2_ref,           # (L, F, D)   bf16 FFN dense2 (pre-T)
                         b2_ref,           # (L, 1, D)   f32
                         g2_ref, be2_ref,  # (L, 1, D)   f32 LayerNorm 2
                         o_ref,            # (Bt, S, D)  f32
                         cat_ref,          # (Bt*S, D)   bf16 VMEM scratch (head concat)
                         *, num_heads):
    Bt, S, D = x_ref.shape
    L = wqkv_ref.shape[0]
    H = num_heads
    dh = D // H
    M = Bt * S
    scale = 1.0 / math.sqrt(dh)
    neg = jnp.float32(-1e6)

    # Host-precomputed key-valid mask, broadcast (Bt,1,S) -> (Bt,S,S) for free
    # along sublanes (no in-kernel iota / (Bt,1) relayout).
    key_valid = km_ref[...] != 0.0

    def layernorm(z, gamma, beta):
        # Fused statistics: one pass gives mean and E[z^2]; var = E[z^2]-E[z]^2.
        m = jnp.mean(z, axis=-1, keepdims=True)
        ms = jnp.mean(z * z, axis=-1, keepdims=True)
        var = ms - m * m
        return (z - m) * lax.rsqrt(var + 1e-5) * gamma + beta

    x = x_ref[...].reshape(M, D)                              # (M, D) f32

    # Static unroll over layers: L is small here.  Switch to lax.fori_loop with
    # dynamic wqkv_ref[l] / w1_ref[l] indexing once L grows beyond ~4 (review).
    for l in range(L):
        # ---- fused QKV projection: one bf16 MXU matmul, f32 accumulation ----
        xb = x.astype(jnp.bfloat16)
        qkv = jnp.dot(xb, wqkv_ref[l], preferred_element_type=jnp.float32)   # (M, 3D)

        # ---- multi-head masked attention ------------------------------------
        # Head outputs are staged into the lane-contiguous bf16 scratch so the
        # output projection is ONE full-K matmul instead of H K=dh matmuls +
        # H f32 accumulation passes.
        for h in range(H):                                    # H is small; static
            qh = qkv[:, h * dh:(h + 1) * dh].reshape(Bt, S, dh).astype(jnp.bfloat16)
            kh = qkv[:, D + h * dh:D + (h + 1) * dh].reshape(Bt, S, dh).astype(jnp.bfloat16)
            vh = qkv[:, 2 * D + h * dh:2 * D + (h + 1) * dh].reshape(Bt, S, dh).astype(jnp.bfloat16)

            s = jnp.einsum("bqd,bkd->bqk", qh, kh,
                           preferred_element_type=jnp.float32) * scale       # (Bt,S,S)
            s = jnp.where(key_valid, s, neg)                  # d2l masked_softmax value
            s = s - jnp.max(s, axis=-1, keepdims=True)
            p = jnp.exp(s)                                    # EUP
            p = p * pl.reciprocal(jnp.sum(p, axis=-1, keepdims=True), approx=True)

            oh = jnp.einsum("bqk,bkd->bqd", p.astype(jnp.bfloat16), vh,
                            preferred_element_type=jnp.float32)              # (Bt,S,dh)
            cat_ref[:, h * dh:(h + 1) * dh] = oh.reshape(M, dh).astype(jnp.bfloat16)

        # ---- single full-K output projection ---------------------------------
        attn = jnp.dot(cat_ref[...], wo_ref[l],
                       preferred_element_type=jnp.float32)                   # (M, D)

        # ---- AddNorm 1 -------------------------------------------------------
        y = layernorm(x + attn, g1_ref[l], be1_ref[l])

        # ---- position-wise FFN ----------------------------------------------
        # TODO(synk): chunk over F (and key-blocks in attention) for production
        # S/F so f32 intermediates stay within v7x's 64 MiB VMEM.
        h1 = jnp.dot(y.astype(jnp.bfloat16), w1_ref[l],
                     preferred_element_type=jnp.float32) + b1_ref[l]
        h1 = jnp.maximum(h1, 0.0)
        ffn = jnp.dot(h1.astype(jnp.bfloat16), w2_ref[l],
                      preferred_element_type=jnp.float32) + b2_ref[l]

        # ---- AddNorm 2 -------------------------------------------------------
        x = layernorm(y + ffn, g2_ref[l], be2_ref[l])

    o_ref[...] = x.reshape(Bt, S, D)


# ----------------------------------------------------------------------------
# Wrapper helpers
# ----------------------------------------------------------------------------
def _pick_batch_tile(B):
    # Guarantee >= 2 grid steps when possible so the "parallel" batch axis
    # shards across v7x's two TensorCores and x-tile DMA overlaps compute.
    # Cap rows/step at 8 (raise on v6e's 128 MiB VMEM for a better-fed MXU).
    if B <= 1:
        return 1
    return min(8, max(1, B // 2))


def _vmem_limit_bytes():
    # Explicit scoped-VMEM budget (default is only 16/32 MiB): ~3/4 of physical,
    # capped at 100 MiB => ~96 MiB on v5e/v6e (128 MiB) and ~48 MiB on v7x (64 MiB),
    # leaving headroom for the double-buffered activation tiles.
    try:
        cap = pltpu.get_tpu_info().vmem_capacity_bytes
    except Exception:
        cap = 64 * 1024 * 1024
    return int(min(100 * 1024 * 1024, cap * 3 // 4))


# ----------------------------------------------------------------------------
# Wrapper: full TransformerEncoder forward (embedding/pos-enc glue + one kernel)
# ----------------------------------------------------------------------------
def transformer_encoder(tokens, valid_lens, params, num_heads):
    # --- plain-JAX glue: embedding gather, sqrt(D) scale, positional encoding -
    emb = params["embedding"][tokens]                         # (B, S, D)
    B, S, D = emb.shape
    x = (emb * math.sqrt(D) + params["pos"][:, :S, :]).astype(jnp.float32)

    layers = params["layers"]
    L = len(layers)
    F = layers[0]["w1"].shape[0]

    # --- host-side weight prep: fuse QKV, pre-transpose, bf16 -----------------
    def prep(p):
        wqkv = jnp.concatenate([p["wq"], p["wk"], p["wv"]], axis=0).T   # (D, 3D)
        return (wqkv.astype(jnp.bfloat16),
                p["wo"].T.astype(jnp.bfloat16),                         # (D, D)
                p["g1"], p["beta1"],
                p["w1"].T.astype(jnp.bfloat16), p["b1"],
                p["w2"].T.astype(jnp.bfloat16), p["b2"],
                p["g2"], p["beta2"])

    stacked = [jnp.stack(ws, axis=0) for ws in zip(*[prep(p) for p in layers])]
    (wqkv_a, wo_a, g1_a, be1_a, w1_a, b1_a, w2_a, b2_a, g2_a, be2_a) = stacked

    # Host-precomputed key-valid mask (lane-oriented, no (Bt,1) VMEM block).
    km = (jnp.arange(S)[None, :] < valid_lens.astype(jnp.int32)[:, None])
    km = km.astype(jnp.float32)[:, None, :]                   # (B, 1, S)

    # --- batch tiling (with padding so any B is accepted) ---------------------
    Bt = _pick_batch_tile(B)
    n_tiles = -(-B // Bt)
    B_pad = n_tiles * Bt
    if B_pad != B:
        x = jnp.pad(x, ((0, B_pad - B), (0, 0), (0, 0)))
        km = jnp.pad(km, ((0, B_pad - B), (0, 0), (0, 0)), constant_values=1.0)

    kern = functools.partial(encoder_stack_kernel, num_heads=num_heads)
    vmem_limit = _vmem_limit_bytes()

    def run(weight_mode):
        def wspec(shape):
            # Grid-invariant weights: single-buffer to halve their VMEM footprint.
            if weight_mode is None:
                return pl.BlockSpec(shape, lambda i: (0,) * len(shape))
            return pl.BlockSpec(shape, lambda i: (0,) * len(shape),
                                pipeline_mode=weight_mode)

        call = pl.pallas_call(
            kern,
            out_shape=jax.ShapeDtypeStruct((B_pad, S, D), jnp.float32),
            grid_spec=pltpu.PrefetchScalarGridSpec(
                num_scalar_prefetch=0,
                grid=(n_tiles,),
                in_specs=[
                    pl.BlockSpec((Bt, S, D), lambda i: (i, 0, 0)),   # x
                    pl.BlockSpec((Bt, 1, S), lambda i: (i, 0, 0)),   # key mask
                    wspec((L, D, 3 * D)),                            # fused QKV weight
                    wspec((L, D, D)),                                # W_o
                    wspec((L, 1, D)),                                # ln1 gamma
                    wspec((L, 1, D)),                                # ln1 beta
                    wspec((L, D, F)),                                # ffn W1
                    wspec((L, 1, F)),                                # ffn b1
                    wspec((L, F, D)),                                # ffn W2
                    wspec((L, 1, D)),                                # ffn b2
                    wspec((L, 1, D)),                                # ln2 gamma
                    wspec((L, 1, D)),                                # ln2 beta
                ],
                out_specs=pl.BlockSpec((Bt, S, D), lambda i: (i, 0, 0)),
                scratch_shapes=[pltpu.VMEM((Bt * S, D), jnp.bfloat16)],
            ),
            compiler_params=pltpu.CompilerParams(
                dimension_semantics=("parallel",),
                vmem_limit_bytes=vmem_limit),
        )
        return call(x, km, wqkv_a, wo_a, g1_a, be1_a, w1_a, b1_a,
                    w2_a, b2_a, g2_a, be2_a)

    try:
        out = jax.block_until_ready(run(pl.Buffered(1)))
    except Exception:
        # Fallback for jax builds that reject single-buffered pipeline_mode;
        # identical numerics, just default double-buffered weights.
        out = jax.block_until_ready(run(None))

    return out[:B]


# ----------------------------------------------------------------------------
# Positional encoding / params init
# ----------------------------------------------------------------------------
def make_pos_encoding(max_len, D):
    pos = jnp.arange(max_len, dtype=jnp.float32)[:, None]
    div = jnp.power(10000.0, jnp.arange(0, D, 2, dtype=jnp.float32) / D)
    angles = pos / div
    P = jnp.zeros((max_len, D), dtype=jnp.float32)
    P = P.at[:, 0::2].set(jnp.sin(angles))
    P = P.at[:, 1::2].set(jnp.cos(angles))
    return P[None]                                            # (1, max_len, D)


def init_params(key, vocab_size, D, F, num_layers):
    keys = jax.random.split(key, 2 + num_layers)
    params = {
        "embedding": jax.random.normal(keys[0], (vocab_size, D), jnp.float32) * 0.1,
        "pos": make_pos_encoding(1000, D),
        "layers": [],
    }
    for i in range(num_layers):
        ks = jax.random.split(keys[2 + i], 8)
        s = 0.1
        params["layers"].append({
            "wq": jax.random.normal(ks[0], (D, D), jnp.float32) * s,
            "wk": jax.random.normal(ks[1], (D, D), jnp.float32) * s,
            "wv": jax.random.normal(ks[2], (D, D), jnp.float32) * s,
            "wo": jax.random.normal(ks[3], (D, D), jnp.float32) * s,
            "g1": jnp.ones((1, D), jnp.float32),
            "beta1": jnp.zeros((1, D), jnp.float32),
            "w1": jax.random.normal(ks[4], (F, D), jnp.float32) * s,
            "b1": jax.random.normal(ks[5], (1, F), jnp.float32) * s,
            "w2": jax.random.normal(ks[6], (D, F), jnp.float32) * s,
            "b2": jax.random.normal(ks[7], (1, D), jnp.float32) * s,
            "g2": jnp.ones((1, D), jnp.float32),
            "beta2": jnp.zeros((1, D), jnp.float32),
        })
    return params


# ----------------------------------------------------------------------------
# Pure-JAX f32 reference (for correctness check)
# ----------------------------------------------------------------------------
def reference_encoder(tokens, valid_lens, params, num_heads):
    emb = params["embedding"][tokens]
    D = emb.shape[-1]
    x = emb * math.sqrt(D) + params["pos"][:, :emb.shape[1], :]
    B, S, _ = x.shape
    dh = D // num_heads

    def ln(z, g, b):
        m = jnp.mean(z, -1, keepdims=True)
        v = jnp.mean((z - m) ** 2, -1, keepdims=True)
        return (z - m) / jnp.sqrt(v + 1e-5) * g + b

    for p in params["layers"]:
        q = x @ p["wq"].T
        k = x @ p["wk"].T
        v = x @ p["wv"].T
        qh = q.reshape(B, S, num_heads, dh).transpose(0, 2, 1, 3)
        kh = k.reshape(B, S, num_heads, dh).transpose(0, 2, 1, 3)
        vh = v.reshape(B, S, num_heads, dh).transpose(0, 2, 1, 3)
        scores = jnp.einsum("bhqd,bhkd->bhqk", qh, kh) / math.sqrt(dh)
        key_idx = jnp.arange(S)[None, None, None, :]
        mask = key_idx < valid_lens[:, None, None, None]
        scores = jnp.where(mask, scores, -1e6)
        attn = jax.nn.softmax(scores, axis=-1)
        o = jnp.einsum("bhqk,bhkd->bhqd", attn, vh)
        o = o.transpose(0, 2, 1, 3).reshape(B, S, D)
        attn_out = o @ p["wo"].T
        y = ln(x + attn_out, p["g1"], p["beta1"])
        ffn = jnp.maximum(y @ p["w1"].T + p["b1"], 0.0) @ p["w2"].T + p["b2"]
        x = ln(y + ffn, p["g2"], p["beta2"])
    return x


# ----------------------------------------------------------------------------
if __name__ == "__main__":
    vocab_size, embedding_dim, ffn_num_hiddens = 50, 32, 64
    num_heads, num_layers = 4, 2
    batch, seq = 2, 8

    key = jax.random.PRNGKey(0)
    kp, kt = jax.random.split(key)
    params = init_params(kp, vocab_size, embedding_dim, ffn_num_hiddens, num_layers)

    tokens = jax.random.randint(kt, (batch, seq), 0, vocab_size, dtype=jnp.int32)
    valid_lens = jnp.array([5, 8], dtype=jnp.int32)

    out = transformer_encoder(tokens, valid_lens, params, num_heads)
    out = jax.block_until_ready(out)

    ref = reference_encoder(tokens, valid_lens, params, num_heads)
    assert out.shape == (batch, seq, embedding_dim)
    max_err = float(jnp.max(jnp.abs(out - ref)))
    # bf16 MXU operands + approx reciprocal => looser tolerance than pure f32.
    assert jnp.allclose(out, ref, atol=3e-2, rtol=3e-2), f"mismatch vs reference (max abs err {max_err})"

    print("KERNEL_OK")
</pallas_src>

<mosaic_0001>
module attributes {stable_mosaic.version = 11 : i64} {
  func.func @encoder_stack_kernel(%arg0: i32, %arg1: memref<1x8x32xf32, #tpu.memory_space<vmem>>, %arg2: memref<1x1x8xf32, #tpu.memory_space<vmem>>, %arg3: memref<2x32x96xbf16, #tpu.memory_space<vmem>>, %arg4: memref<2x32x32xbf16, #tpu.memory_space<vmem>>, %arg5: memref<2x1x32xf32, #tpu.memory_space<vmem>>, %arg6: memref<2x1x32xf32, #tpu.memory_space<vmem>>, %arg7: memref<2x32x64xbf16, #tpu.memory_space<vmem>>, %arg8: memref<2x1x64xf32, #tpu.memory_space<vmem>>, %arg9: memref<2x64x32xbf16, #tpu.memory_space<vmem>>, %arg10: memref<2x1x32xf32, #tpu.memory_space<vmem>>, %arg11: memref<2x1x32xf32, #tpu.memory_space<vmem>>, %arg12: memref<2x1x32xf32, #tpu.memory_space<vmem>>, %arg13: memref<1x8x32xf32, #tpu.memory_space<vmem>>, %arg14: memref<8x32xbf16, #tpu.memory_space<vmem>>) attributes {dimension_semantics = [#tpu.dimension_semantics<parallel>], iteration_bounds = array<i64: 2>, scalar_prefetch = 0 : i64, scratch_operands = 1 : i64, tpu.core_type = #tpu.core_type<tc>, window_params = [{transform_indices = @transform_0, window_bounds = array<i64: 1, 8, 32>}, {transform_indices = @transform_1, window_bounds = array<i64: 1, 1, 8>}, {pipeline_mode = #tpu.pipeline_mode<synchronous>, transform_indices = @transform_2, window_bounds = array<i64: 2, 32, 96>}, {pipeline_mode = #tpu.pipeline_mode<synchronous>, transform_indices = @transform_3, window_bounds = array<i64: 2, 32, 32>}, {pipeline_mode = #tpu.pipeline_mode<synchronous>, transform_indices = @transform_4, window_bounds = array<i64: 2, 1, 32>}, {pipeline_mode = #tpu.pipeline_mode<synchronous>, transform_indices = @transform_5, window_bounds = array<i64: 2, 1, 32>}, {pipeline_mode = #tpu.pipeline_mode<synchronous>, transform_indices = @transform_6, window_bounds = array<i64: 2, 32, 64>}, {pipeline_mode = #tpu.pipeline_mode<synchronous>, transform_indices = @transform_7, window_bounds = array<i64: 2, 1, 64>}, {pipeline_mode = #tpu.pipeline_mode<synchronous>, transform_indices = @transform_8, window_bounds = array<i64: 2, 64, 32>}, {pipeline_mode = #tpu.pipeline_mode<synchronous>, transform_indices = @transform_9, window_bounds = array<i64: 2, 1, 32>}, {pipeline_mode = #tpu.pipeline_mode<synchronous>, transform_indices = @transform_10, window_bounds = array<i64: 2, 1, 32>}, {pipeline_mode = #tpu.pipeline_mode<synchronous>, transform_indices = @transform_11, window_bounds = array<i64: 2, 1, 32>}, {transform_indices = @transform_12, window_bounds = array<i64: 1, 8, 32>}]} {
    %c0 = arith.constant 0 : index
    %c0_0 = arith.constant 0 : index
    %c0_1 = arith.constant 0 : index
    %0 = vector.load %arg2[%c0, %c0_0, %c0_1] : memref<1x1x8xf32, #tpu.memory_space<vmem>>, vector<1x1x8xf32>
    %cst = arith.constant 0.000000e+00 : f32
    %1 = vector.broadcast %cst : f32 to vector<1x1x8xf32>
    %2 = arith.cmpf one, %0, %1 : vector<1x1x8xf32>
    %c0_2 = arith.constant 0 : index
    %c0_3 = arith.constant 0 : index
    %c0_4 = arith.constant 0 : index
    %3 = vector.load %arg1[%c0_2, %c0_3, %c0_4] : memref<1x8x32xf32, #tpu.memory_space<vmem>>, vector<1x8x32xf32>
    %4 = vector.shape_cast %3 : vector<1x8x32xf32> to vector<8x32xf32>
    %5 = arith.truncf %4 : vector<8x32xf32> to vector<8x32xbf16>
    %c0_5 = arith.constant 0 : index
    %c0_6 = arith.constant 0 : index
    %c0_7 = arith.constant 0 : index
    %6 = vector.load %arg3[%c0_5, %c0_6, %c0_7] : memref<2x32x96xbf16, #tpu.memory_space<vmem>>, vector<1x32x96xbf16>
    %7 = vector.shape_cast %6 : vector<1x32x96xbf16> to vector<32x96xbf16>
    %cst_8 = arith.constant dense<0.000000e+00> : vector<8x96xf32>
    %8 = tpu.matmul %5, %7, %cst_8 {dimension_numbers = #tpu.dot_dimension_numbers<[1], [0], [0], [1], [0, 0, 1, 1], [], []>} : vector<8x32xbf16>, vector<32x96xbf16>, vector<8x96xf32> -> vector<8x96xf32>
    %9 = vector.extract_strided_slice %8 {offsets = [0, 0], sizes = [8, 8], strides = [1, 1]} : vector<8x96xf32> to vector<8x8xf32>
    %10 = vector.shape_cast %9 : vector<8x8xf32> to vector<1x8x8xf32>
    %11 = arith.truncf %10 : vector<1x8x8xf32> to vector<1x8x8xbf16>
    %12 = vector.extract_strided_slice %8 {offsets = [0, 32], sizes = [8, 8], strides = [1, 1]} : vector<8x96xf32> to vector<8x8xf32>
    %13 = vector.shape_cast %12 : vector<8x8xf32> to vector<1x8x8xf32>
    %14 = arith.truncf %13 : vector<1x8x8xf32> to vector<1x8x8xbf16>
    %15 = vector.extract_strided_slice %8 {offsets = [0, 64], sizes = [8, 8], strides = [1, 1]} : vector<8x96xf32> to vector<8x8xf32>
    %16 = vector.shape_cast %15 : vector<8x8xf32> to vector<1x8x8xf32>
    %17 = arith.truncf %16 : vector<1x8x8xf32> to vector<1x8x8xbf16>
    "tpu.trace_start"() <{level = 10 : i32, message = "bqd,bkd->bqk"}> : () -> ()
    %cst_9 = arith.constant dense<0.000000e+00> : vector<1x8x8xf32>
    %18 = tpu.matmul %11, %14, %cst_9 {dimension_numbers = #tpu.dot_dimension_numbers<[2], [2], [1], [1], [0, 0, 0, 1, 1, 1], [0], [0]>} : vector<1x8x8xbf16>, vector<1x8x8xbf16>, vector<1x8x8xf32> -> vector<1x8x8xf32>
    "tpu.trace_stop"() : () -> ()
    %cst_10 = arith.constant 0.353553385 : f32
    %19 = vector.broadcast %cst_10 : f32 to vector<1x8x8xf32>
    %20 = arith.mulf %18, %19 : vector<1x8x8xf32>
    %cst_11 = arith.constant -1.000000e+06 : f32
    %21 = vector.shape_cast %2 : vector<1x1x8xi1> to vector<1x1x8xi1>
    %22 = vector.broadcast %21 : vector<1x1x8xi1> to vector<1x8x8xi1>
    %23 = vector.broadcast %cst_11 : f32 to vector<1x8x8xf32>
    %24 = arith.select %22, %20, %23 : vector<1x8x8xi1>, vector<1x8x8xf32>
    %cst_12 = arith.constant dense<0xFF800000> : vector<1x8xf32>
    %25 = vector.multi_reduction <maximumf>, %24, %cst_12 [2] : vector<1x8x8xf32> to vector<1x8xf32>
    %26 = vector.shape_cast %25 : vector<1x8xf32> to vector<1x8x1xf32>
    %27 = vector.broadcast %26 : vector<1x8x1xf32> to vector<1x8x8xf32>
    %28 = arith.subf %24, %27 : vector<1x8x8xf32>
    %29 = math.exp %28 : vector<1x8x8xf32>
    %cst_13 = arith.constant dense<0.000000e+00> : vector<1x8xf32>
    %30 = vector.multi_reduction <add>, %29, %cst_13 [2] : vector<1x8x8xf32> to vector<1x8xf32>
    %31 = vector.shape_cast %30 : vector<1x8xf32> to vector<1x8x1xf32>
    %32 = tpu.reciprocal %31 {approx = true} : vector<1x8x1xf32> -> vector<1x8x1xf32>
    %33 = vector.broadcast %32 : vector<1x8x1xf32> to vector<1x8x8xf32>
    %34 = arith.mulf %29, %33 : vector<1x8x8xf32>
    %35 = arith.truncf %34 : vector<1x8x8xf32> to vector<1x8x8xbf16>
    "tpu.trace_start"() <{level = 10 : i32, message = "bqk,bkd->bqd"}> : () -> ()
    %cst_14 = arith.constant dense<0.000000e+00> : vector<1x8x8xf32>
    %36 = tpu.matmul %35, %17, %cst_14 {dimension_numbers = #tpu.dot_dimension_numbers<[2], [1], [1], [2], [0, 0, 0, 1, 1, 2], [0], [0]>} : vector<1x8x8xbf16>, vector<1x8x8xbf16>, vector<1x8x8xf32> -> vector<1x8x8xf32>
    "tpu.trace_stop"() : () -> ()
    %37 = vector.shape_cast %36 : vector<1x8x8xf32> to vector<8x8xf32>
    %38 = arith.truncf %37 : vector<8x8xf32> to vector<8x8xbf16>
    %c0_15 = arith.constant 0 : index
    %c0_16 = arith.constant 0 : index
    %39 = vector.load %arg14[%c0_15, %c0_16] : memref<8x32xbf16, #tpu.memory_space<vmem>>, vector<8x8xbf16>
    tpu.vector_store %arg14[%c0_15, %c0_16], %38 {strides = array<i32>} : memref<8x32xbf16, #tpu.memory_space<vmem>>, vector<8x8xbf16>,
    %40 = vector.extract_strided_slice %8 {offsets = [0, 8], sizes = [8, 8], strides = [1, 1]} : vector<8x96xf32> to vector<8x8xf32>
    %41 = vector.shape_cast %40 : vector<8x8xf32> to vector<1x8x8xf32>
    %42 = arith.truncf %41 : vector<1x8x8xf32> to vector<1x8x8xbf16>
    %43 = vector.extract_strided_slice %8 {offsets = [0, 40], sizes = [8, 8], strides = [1, 1]} : vector<8x96xf32> to vector<8x8xf32>
    %44 = vector.shape_cast %43 : vector<8x8xf32> to vector<1x8x8xf32>
    %45 = arith.truncf %44 : vector<1x8x8xf32> to vector<1x8x8xbf16>
    %46 = vector.extract_strided_slice %8 {offsets = [0, 72], sizes = [8, 8], strides = [1, 1]} : vector<8x96xf32> to vector<8x8xf32>
    %47 = vector.shape_cast %46 : vector<8x8xf32> to vector<1x8x8xf32>
    %48 = arith.truncf %47 : vector<1x8x8xf32> to vector<1x8x8xbf16>
    "tpu.trace_start"() <{level = 10 : i32, message = "bqd,bkd->bqk"}> : () -> ()
    %cst_17 = arith.constant dense<0.000000e+00> : vector<1x8x8xf32>
    %49 = tpu.matmul %42, %45, %cst_17 {dimension_numbers = #tpu.dot_dimension_numbers<[2], [2], [1], [1], [0, 0, 0, 1, 1, 1], [0], [0]>} : vector<1x8x8xbf16>, vector<1x8x8xbf16>, vector<1x8x8xf32> -> vector<1x8x8xf32>
    "tpu.trace_stop"() : () -> ()
    %cst_18 = arith.constant 0.353553385 : f32
    %50 = vector.broadcast %cst_18 : f32 to vector<1x8x8xf32>
    %51 = arith.mulf %49, %50 : vector<1x8x8xf32>
    %cst_19 = arith.constant -1.000000e+06 : f32
    %52 = vector.shape_cast %2 : vector<1x1x8xi1> to vector<1x1x8xi1>
    %53 = vector.broadcast %52 : vector<1x1x8xi1> to vector<1x8x8xi1>
    %54 = vector.broadcast %cst_19 : f32 to vector<1x8x8xf32>
    %55 = arith.select %53, %51, %54 : vector<1x8x8xi1>, vector<1x8x8xf32>
    %cst_20 = arith.constant dense<0xFF800000> : vector<1x8xf32>
    %56 = vector.multi_reduction <maximumf>, %55, %cst_20 [2] : vector<1x8x8xf32> to vector<1x8xf32>
    %57 = vector.shape_cast %56 : vector<1x8xf32> to vector<1x8x1xf32>
    %58 = vector.broadcast %57 : vector<1x8x1xf32> to vector<1x8x8xf32>
    %59 = arith.subf %55, %58 : vector<1x8x8xf32>
    %60 = math.exp %59 : vector<1x8x8xf32>
    %cst_21 = arith.constant dense<0.000000e+00> : vector<1x8xf32>
    %61 = vector.multi_reduction <add>, %60, %cst_21 [2] : vector<1x8x8xf32> to vector<1x8xf32>
    %62 = vector.shape_cast %61 : vector<1x8xf32> to vector<1x8x1xf32>
    %63 = tpu.reciprocal %62 {approx = true} : vector<1x8x1xf32> -> vector<1x8x1xf32>
    %64 = vector.broadcast %63 : vector<1x8x1xf32> to vector<1x8x8xf32>
    %65 = arith.mulf %60, %64 : vector<1x8x8xf32>
    %66 = arith.truncf %65 : vector<1x8x8xf32> to vector<1x8x8xbf16>
    "tpu.trace_start"() <{level = 10 : i32, message = "bqk,bkd->bqd"}> : () -> ()
    %cst_22 = arith.constant dense<0.000000e+00> : vector<1x8x8xf32>
    %67 = tpu.matmul %66, %48, %cst_22 {dimension_numbers = #tpu.dot_dimension_numbers<[2], [1], [1], [2], [0, 0, 0, 1, 1, 2], [0], [0]>} : vector<1x8x8xbf16>, vector<1x8x8xbf16>, vector<1x8x8xf32> -> vector<1x8x8xf32>
    "tpu.trace_stop"() : () -> ()
    %68 = vector.shape_cast %67 : vector<1x8x8xf32> to vector<8x8xf32>
    %69 = arith.truncf %68 : vector<8x8xf32> to vector<8x8xbf16>
    %c0_23 = arith.constant 0 : index
    %c8 = arith.constant 8 : index
    %70 = vector.load %arg14[%c0_23, %c8] : memref<8x32xbf16, #tpu.memory_space<vmem>>, vector<8x8xbf16>
    tpu.vector_store %arg14[%c0_23, %c8], %69 {strides = array<i32>} : memref<8x32xbf16, #tpu.memory_space<vmem>>, vector<8x8xbf16>,
    %71 = vector.extract_strided_slice %8 {offsets = [0, 16], sizes = [8, 8], strides = [1, 1]} : vector<8x96xf32> to vector<8x8xf32>
    %72 = vector.shape_cast %71 : vector<8x8xf32> to vector<1x8x8xf32>
    %73 = arith.truncf %72 : vector<1x8x8xf32> to vector<1x8x8xbf16>
    %74 = vector.extract_strided_slice %8 {offsets = [0, 48], sizes = [8, 8], strides = [1, 1]} : vector<8x96xf32> to vector<8x8xf32>
    %75 = vector.shape_cast %74 : vector<8x8xf32> to vector<1x8x8xf32>
    %76 = arith.truncf %75 : vector<1x8x8xf32> to vector<1x8x8xbf16>
    %77 = vector.extract_strided_slice %8 {offsets = [0, 80], sizes = [8, 8], strides = [1, 1]} : vector<8x96xf32> to vector<8x8xf32>
    %78 = vector.shape_cast %77 : vector<8x8xf32> to vector<1x8x8xf32>
    %79 = arith.truncf %78 : vector<1x8x8xf32> to vector<1x8x8xbf16>
    "tpu.trace_start"() <{level = 10 : i32, message = "bqd,bkd->bqk"}> : () -> ()
    %cst_24 = arith.constant dense<0.000000e+00> : vector<1x8x8xf32>
    %80 = tpu.matmul %73, %76, %cst_24 {dimension_numbers = #tpu.dot_dimension_numbers<[2], [2], [1], [1], [0, 0, 0, 1, 1, 1], [0], [0]>} : vector<1x8x8xbf16>, vector<1x8x8xbf16>, vector<1x8x8xf32> -> vector<1x8x8xf32>
    "tpu.trace_stop"() : () -> ()
    %cst_25 = arith.constant 0.353553385 : f32
    %81 = vector.broadcast %cst_25 : f32 to vector<1x8x8xf32>
    %82 = arith.mulf %80, %81 : vector<1x8x8xf32>
    %cst_26 = arith.constant -1.000000e+06 : f32
    %83 = vector.shape_cast %2 : vector<1x1x8xi1> to vector<1x1x8xi1>
    %84 = vector.broadcast %83 : vector<1x1x8xi1> to vector<1x8x8xi1>
    %85 = vector.broadcast %cst_26 : f32 to vector<1x8x8xf32>
    %86 = arith.select %84, %82, %85 : vector<1x8x8xi1>, vector<1x8x8xf32>
    %cst_27 = arith.constant dense<0xFF800000> : vector<1x8xf32>
    %87 = vector.multi_reduction <maximumf>, %86, %cst_27 [2] : vector<1x8x8xf32> to vector<1x8xf32>
    %88 = vector.shape_cast %87 : vector<1x8xf32> to vector<1x8x1xf32>
    %89 = vector.broadcast %88 : vector<1x8x1xf32> to vector<1x8x8xf32>
    %90 = arith.subf %86, %89 : vector<1x8x8xf32>
    %91 = math.exp %90 : vector<1x8x8xf32>
    %cst_28 = arith.constant dense<0.000000e+00> : vector<1x8xf32>
    %92 = vector.multi_reduction <add>, %91, %cst_28 [2] : vector<1x8x8xf32> to vector<1x8xf32>
    %93 = vector.shape_cast %92 : vector<1x8xf32> to vector<1x8x1xf32>
    %94 = tpu.reciprocal %93 {approx = true} : vector<1x8x1xf32> -> vector<1x8x1xf32>
    %95 = vector.broadcast %94 : vector<1x8x1xf32> to vector<1x8x8xf32>
    %96 = arith.mulf %91, %95 : vector<1x8x8xf32>
    %97 = arith.truncf %96 : vector<1x8x8xf32> to vector<1x8x8xbf16>
    "tpu.trace_start"() <{level = 10 : i32, message = "bqk,bkd->bqd"}> : () -> ()
    %cst_29 = arith.constant dense<0.000000e+00> : vector<1x8x8xf32>
    %98 = tpu.matmul %97, %79, %cst_29 {dimension_numbers = #tpu.dot_dimension_numbers<[2], [1], [1], [2], [0, 0, 0, 1, 1, 2], [0], [0]>} : vector<1x8x8xbf16>, vector<1x8x8xbf16>, vector<1x8x8xf32> -> vector<1x8x8xf32>
    "tpu.trace_stop"() : () -> ()
    %99 = vector.shape_cast %98 : vector<1x8x8xf32> to vector<8x8xf32>
    %100 = arith.truncf %99 : vector<8x8xf32> to vector<8x8xbf16>
    %c0_30 = arith.constant 0 : index
    %c16 = arith.constant 16 : index
    %101 = vector.load %arg14[%c0_30, %c16] : memref<8x32xbf16, #tpu.memory_space<vmem>>, vector<8x8xbf16>
    tpu.vector_store %arg14[%c0_30, %c16], %100 {strides = array<i32>} : memref<8x32xbf16, #tpu.memory_space<vmem>>, vector<8x8xbf16>,
    %102 = vector.extract_strided_slice %8 {offsets = [0, 24], sizes = [8, 8], strides = [1, 1]} : vector<8x96xf32> to vector<8x8xf32>
    %103 = vector.shape_cast %102 : vector<8x8xf32> to vector<1x8x8xf32>
    %104 = arith.truncf %103 : vector<1x8x8xf32> to vector<1x8x8xbf16>
    %105 = vector.extract_strided_slice %8 {offsets = [0, 56], sizes = [8, 8], strides = [1, 1]} : vector<8x96xf32> to vector<8x8xf32>
    %106 = vector.shape_cast %105 : vector<8x8xf32> to vector<1x8x8xf32>
    %107 = arith.truncf %106 : vector<1x8x8xf32> to vector<1x8x8xbf16>
    %108 = vector.extract_strided_slice %8 {offsets = [0, 88], sizes = [8, 8], strides = [1, 1]} : vector<8x96xf32> to vector<8x8xf32>
    %109 = vector.shape_cast %108 : vector<8x8xf32> to vector<1x8x8xf32>
    %110 = arith.truncf %109 : vector<1x8x8xf32> to vector<1x8x8xbf16>
    "tpu.trace_start"() <{level = 10 : i32, message = "bqd,bkd->bqk"}> : () -> ()
    %cst_31 = arith.constant dense<0.000000e+00> : vector<1x8x8xf32>
    %111 = tpu.matmul %104, %107, %cst_31 {dimension_numbers = #tpu.dot_dimension_numbers<[2], [2], [1], [1], [0, 0, 0, 1, 1, 1], [0], [0]>} : vector<1x8x8xbf16>, vector<1x8x8xbf16>, vector<1x8x8xf32> -> vector<1x8x8xf32>
    "tpu.trace_stop"() : () -> ()
    %cst_32 = arith.constant 0.353553385 : f32
    %112 = vector.broadcast %cst_32 : f32 to vector<1x8x8xf32>
    %113 = arith.mulf %111, %112 : vector<1x8x8xf32>
    %cst_33 = arith.constant -1.000000e+06 : f32
    %114 = vector.shape_cast %2 : vector<1x1x8xi1> to vector<1x1x8xi1>
    %115 = vector.broadcast %114 : vector<1x1x8xi1> to vector<1x8x8xi1>
    %116 = vector.broadcast %cst_33 : f32 to vector<1x8x8xf32>
    %117 = arith.select %115, %113, %116 : vector<1x8x8xi1>, vector<1x8x8xf32>
    %cst_34 = arith.constant dense<0xFF800000> : vector<1x8xf32>
    %118 = vector.multi_reduction <maximumf>, %117, %cst_34 [2] : vector<1x8x8xf32> to vector<1x8xf32>
    %119 = vector.shape_cast %118 : vector<1x8xf32> to vector<1x8x1xf32>
    %120 = vector.broadcast %119 : vector<1x8x1xf32> to vector<1x8x8xf32>
    %121 = arith.subf %117, %120 : vector<1x8x8xf32>
    %122 = math.exp %121 : vector<1x8x8xf32>
    %cst_35 = arith.constant dense<0.000000e+00> : vector<1x8xf32>
    %123 = vector.multi_reduction <add>, %122, %cst_35 [2] : vector<1x8x8xf32> to vector<1x8xf32>
    %124 = vector.shape_cast %123 : vector<1x8xf32> to vector<1x8x1xf32>
    %125 = tpu.reciprocal %124 {approx = true} : vector<1x8x1xf32> -> vector<1x8x1xf32>
    %126 = vector.broadcast %125 : vector<1x8x1xf32> to vector<1x8x8xf32>
    %127 = arith.mulf %122, %126 : vector<1x8x8xf32>
    %128 = arith.truncf %127 : vector<1x8x8xf32> to vector<1x8x8xbf16>
    "tpu.trace_start"() <{level = 10 : i32, message = "bqk,bkd->bqd"}> : () -> ()
    %cst_36 = arith.constant dense<0.000000e+00> : vector<1x8x8xf32>
    %129 = tpu.matmul %128, %110, %cst_36 {dimension_numbers = #tpu.dot_dimension_numbers<[2], [1], [1], [2], [0, 0, 0, 1, 1, 2], [0], [0]>} : vector<1x8x8xbf16>, vector<1x8x8xbf16>, vector<1x8x8xf32> -> vector<1x8x8xf32>
    "tpu.trace_stop"() : () -> ()
    %130 = vector.shape_cast %129 : vector<1x8x8xf32> to vector<8x8xf32>
    %131 = arith.truncf %130 : vector<8x8xf32> to vector<8x8xbf16>
    %c0_37 = arith.constant 0 : index
    %c24 = arith.constant 24 : index
    %132 = vector.load %arg14[%c0_37, %c24] : memref<8x32xbf16, #tpu.memory_space<vmem>>, vector<8x8xbf16>
    tpu.vector_store %arg14[%c0_37, %c24], %131 {strides = array<i32>} : memref<8x32xbf16, #tpu.memory_space<vmem>>, vector<8x8xbf16>,
    %c0_38 = arith.constant 0 : index
    %c0_39 = arith.constant 0 : index
    %133 = vector.load %arg14[%c0_38, %c0_39] : memref<8x32xbf16, #tpu.memory_space<vmem>>, vector<8x32xbf16>
    %c0_40 = arith.constant 0 : index
    %c0_41 = arith.constant 0 : index
    %c0_42 = arith.constant 0 : index
    %134 = vector.load %arg4[%c0_40, %c0_41, %c0_42] : memref<2x32x32xbf16, #tpu.memory_space<vmem>>, vector<1x32x32xbf16>
    %135 = vector.shape_cast %134 : vector<1x32x32xbf16> to vector<32x32xbf16>
    %cst_43 = arith.constant dense<0.000000e+00> : vector<8x32xf32>
    %136 = tpu.matmul %133, %135, %cst_43 {dimension_numbers = #tpu.dot_dimension_numbers<[1], [0], [0], [1], [0, 0, 1, 1], [], []>} : vector<8x32xbf16>, vector<32x32xbf16>, vector<8x32xf32> -> vector<8x32xf32>
    %137 = arith.addf %4, %136 : vector<8x32xf32>
    %c0_44 = arith.constant 0 : index
    %c0_45 = arith.constant 0 : index
    %c0_46 = arith.constant 0 : index
    %138 = vector.load %arg5[%c0_44, %c0_45, %c0_46] : memref<2x1x32xf32, #tpu.memory_space<vmem>>, vector<1x1x32xf32>
    %139 = vector.shape_cast %138 : vector<1x1x32xf32> to vector<1x32xf32>
    %c0_47 = arith.constant 0 : index
    %c0_48 = arith.constant 0 : index
    %c0_49 = arith.constant 0 : index
    %140 = vector.load %arg6[%c0_47, %c0_48, %c0_49] : memref<2x1x32xf32, #tpu.memory_space<vmem>>, vector<1x1x32xf32>
    %141 = vector.shape_cast %140 : vector<1x1x32xf32> to vector<1x32xf32>
    %cst_50 = arith.constant dense<0.000000e+00> : vector<8xf32>
    %142 = vector.multi_reduction <add>, %137, %cst_50 [1] : vector<8x32xf32> to vector<8xf32>
    %143 = vector.shape_cast %142 : vector<8xf32> to vector<8x1xf32>
    %cst_51 = arith.constant 3.200000e+01 : f32
    %144 = vector.broadcast %cst_51 : f32 to vector<8x1xf32>
    %145 = arith.divf %143, %144 : vector<8x1xf32>
    %146 = arith.mulf %137, %137 : vector<8x32xf32>
    %cst_52 = arith.constant dense<0.000000e+00> : vector<8xf32>
    %147 = vector.multi_reduction <add>, %146, %cst_52 [1] : vector<8x32xf32> to vector<8xf32>
    %148 = vector.shape_cast %147 : vector<8xf32> to vector<8x1xf32>
    %cst_53 = arith.constant 3.200000e+01 : f32
    %149 = vector.broadcast %cst_53 : f32 to vector<8x1xf32>
    %150 = arith.divf %148, %149 : vector<8x1xf32>
    %151 = arith.mulf %145, %145 : vector<8x1xf32>
    %152 = arith.subf %150, %151 : vector<8x1xf32>
    %153 = vector.broadcast %145 : vector<8x1xf32> to vector<8x32xf32>
    %154 = arith.subf %137, %153 : vector<8x32xf32>
    %cst_54 = arith.constant 9.99999974E-6 : f32
    %155 = vector.broadcast %cst_54 : f32 to vector<8x1xf32>
    %156 = arith.addf %152, %155 : vector<8x1xf32>
    %157 = math.rsqrt %156 : vector<8x1xf32>
    %158 = vector.broadcast %157 : vector<8x1xf32> to vector<8x32xf32>
    %159 = arith.mulf %154, %158 : vector<8x32xf32>
    %160 = vector.broadcast %139 : vector<1x32xf32> to vector<8x32xf32>
    %161 = arith.mulf %159, %160 : vector<8x32xf32>
    %162 = vector.broadcast %141 : vector<1x32xf32> to vector<8x32xf32>
    %163 = arith.addf %161, %162 : vector<8x32xf32>
    %164 = arith.truncf %163 : vector<8x32xf32> to vector<8x32xbf16>
    %c0_55 = arith.constant 0 : index
    %c0_56 = arith.constant 0 : index
    %c0_57 = arith.constant 0 : index
    %165 = vector.load %arg7[%c0_55, %c0_56, %c0_57] : memref<2x32x64xbf16, #tpu.memory_space<vmem>>, vector<1x32x64xbf16>
    %166 = vector.shape_cast %165 : vector<1x32x64xbf16> to vector<32x64xbf16>
    %cst_58 = arith.constant dense<0.000000e+00> : vector<8x64xf32>
    %167 = tpu.matmul %164, %166, %cst_58 {dimension_numbers = #tpu.dot_dimension_numbers<[1], [0], [0], [1], [0, 0, 1, 1], [], []>} : vector<8x32xbf16>, vector<32x64xbf16>, vector<8x64xf32> -> vector<8x64xf32>
    %c0_59 = arith.constant 0 : index
    %c0_60 = arith.constant 0 : index
    %c0_61 = arith.constant 0 : index
    %168 = vector.load %arg8[%c0_59, %c0_60, %c0_61] : memref<2x1x64xf32, #tpu.memory_space<vmem>>, vector<1x1x64xf32>
    %169 = vector.shape_cast %168 : vector<1x1x64xf32> to vector<1x64xf32>
    %170 = vector.broadcast %169 : vector<1x64xf32> to vector<8x64xf32>
    %171 = arith.addf %167, %170 : vector<8x64xf32>
    %cst_62 = arith.constant 0.000000e+00 : f32
    %172 = vector.broadcast %cst_62 : f32 to vector<8x64xf32>
    %173 = arith.maximumf %171, %172 : vector<8x64xf32>
    %174 = arith.truncf %173 : vector<8x64xf32> to vector<8x64xbf16>
    %c0_63 = arith.constant 0 : index
    %c0_64 = arith.constant 0 : index
    %c0_65 = arith.constant 0 : index
    %175 = vector.load %arg9[%c0_63, %c0_64, %c0_65] : memref<2x64x32xbf16, #tpu.memory_space<vmem>>, vector<1x64x32xbf16>
    %176 = vector.shape_cast %175 : vector<1x64x32xbf16> to vector<64x32xbf16>
    %cst_66 = arith.constant dense<0.000000e+00> : vector<8x32xf32>
    %177 = tpu.matmul %174, %176, %cst_66 {dimension_numbers = #tpu.dot_dimension_numbers<[1], [0], [0], [1], [0, 0, 1, 1], [], []>} : vector<8x64xbf16>, vector<64x32xbf16>, vector<8x32xf32> -> vector<8x32xf32>
    %c0_67 = arith.constant 0 : index
    %c0_68 = arith.constant 0 : index
    %c0_69 = arith.constant 0 : index
    %178 = vector.load %arg10[%c0_67, %c0_68, %c0_69] : memref<2x1x32xf32, #tpu.memory_space<vmem>>, vector<1x1x32xf32>
    %179 = vector.shape_cast %178 : vector<1x1x32xf32> to vector<1x32xf32>
    %180 = vector.broadcast %179 : vector<1x32xf32> to vector<8x32xf32>
    %181 = arith.addf %177, %180 : vector<8x32xf32>
    %182 = arith.addf %163, %181 : vector<8x32xf32>
    %c0_70 = arith.constant 0 : index
    %c0_71 = arith.constant 0 : index
    %c0_72 = arith.constant 0 : index
    %183 = vector.load %arg11[%c0_70, %c0_71, %c0_72] : memref<2x1x32xf32, #tpu.memory_space<vmem>>, vector<1x1x32xf32>
    %184 = vector.shape_cast %183 : vector<1x1x32xf32> to vector<1x32xf32>
    %c0_73 = arith.constant 0 : index
    %c0_74 = arith.constant 0 : index
    %c0_75 = arith.constant 0 : index
    %185 = vector.load %arg12[%c0_73, %c0_74, %c0_75] : memref<2x1x32xf32, #tpu.memory_space<vmem>>, vector<1x1x32xf32>
    %186 = vector.shape_cast %185 : vector<1x1x32xf32> to vector<1x32xf32>
    %cst_76 = arith.constant dense<0.000000e+00> : vector<8xf32>
    %187 = vector.multi_reduction <add>, %182, %cst_76 [1] : vector<8x32xf32> to vector<8xf32>
    %188 = vector.shape_cast %187 : vector<8xf32> to vector<8x1xf32>
    %cst_77 = arith.constant 3.200000e+01 : f32
    %189 = vector.broadcast %cst_77 : f32 to vector<8x1xf32>
    %190 = arith.divf %188, %189 : vector<8x1xf32>
    %191 = arith.mulf %182, %182 : vector<8x32xf32>
    %cst_78 = arith.constant dense<0.000000e+00> : vector<8xf32>
    %192 = vector.multi_reduction <add>, %191, %cst_78 [1] : vector<8x32xf32> to vector<8xf32>
    %193 = vector.shape_cast %192 : vector<8xf32> to vector<8x1xf32>
    %cst_79 = arith.constant 3.200000e+01 : f32
    %194 = vector.broadcast %cst_79 : f32 to vector<8x1xf32>
    %195 = arith.divf %193, %194 : vector<8x1xf32>
    %196 = arith.mulf %190, %190 : vector<8x1xf32>
    %197 = arith.subf %195, %196 : vector<8x1xf32>
    %198 = vector.broadcast %190 : vector<8x1xf32> to vector<8x32xf32>
    %199 = arith.subf %182, %198 : vector<8x32xf32>
    %cst_80 = arith.constant 9.99999974E-6 : f32
    %200 = vector.broadcast %cst_80 : f32 to vector<8x1xf32>
    %201 = arith.addf %197, %200 : vector<8x1xf32>
    %202 = math.rsqrt %201 : vector<8x1xf32>
    %203 = vector.broadcast %202 : vector<8x1xf32> to vector<8x32xf32>
    %204 = arith.mulf %199, %203 : vector<8x32xf32>
    %205 = vector.broadcast %184 : vector<1x32xf32> to vector<8x32xf32>
    %206 = arith.mulf %204, %205 : vector<8x32xf32>
    %207 = vector.broadcast %186 : vector<1x32xf32> to vector<8x32xf32>
    %208 = arith.addf %206, %207 : vector<8x32xf32>
    %209 = arith.truncf %208 : vector<8x32xf32> to vector<8x32xbf16>
    %c1 = arith.constant 1 : index
    %c0_81 = arith.constant 0 : index
    %c0_82 = arith.constant 0 : index
    %210 = vector.load %arg3[%c1, %c0_81, %c0_82] : memref<2x32x96xbf16, #tpu.memory_space<vmem>>, vector<1x32x96xbf16>
    %211 = vector.shape_cast %210 : vector<1x32x96xbf16> to vector<32x96xbf16>
    %cst_83 = arith.constant dense<0.000000e+00> : vector<8x96xf32>
    %212 = tpu.matmul %209, %211, %cst_83 {dimension_numbers = #tpu.dot_dimension_numbers<[1], [0], [0], [1], [0, 0, 1, 1], [], []>} : vector<8x32xbf16>, vector<32x96xbf16>, vector<8x96xf32> -> vector<8x96xf32>
    %213 = vector.extract_strided_slice %212 {offsets = [0, 0], sizes = [8, 8], strides = [1, 1]} : vector<8x96xf32> to vector<8x8xf32>
    %214 = vector.shape_cast %213 : vector<8x8xf32> to vector<1x8x8xf32>
    %215 = arith.truncf %214 : vector<1x8x8xf32> to vector<1x8x8xbf16>
    %216 = vector.extract_strided_slice %212 {offsets = [0, 32], sizes = [8, 8], strides = [1, 1]} : vector<8x96xf32> to vector<8x8xf32>
    %217 = vector.shape_cast %216 : vector<8x8xf32> to vector<1x8x8xf32>
    %218 = arith.truncf %217 : vector<1x8x8xf32> to vector<1x8x8xbf16>
    %219 = vector.extract_strided_slice %212 {offsets = [0, 64], sizes = [8, 8], strides = [1, 1]} : vector<8x96xf32> to vector<8x8xf32>
    %220 = vector.shape_cast %219 : vector<8x8xf32> to vector<1x8x8xf32>
    %221 = arith.truncf %220 : vector<1x8x8xf32> to vector<1x8x8xbf16>
    "tpu.trace_start"() <{level = 10 : i32, message = "bqd,bkd->bqk"}> : () -> ()
    %cst_84 = arith.constant dense<0.000000e+00> : vector<1x8x8xf32>
    %222 = tpu.matmul %215, %218, %cst_84 {dimension_numbers = #tpu.dot_dimension_numbers<[2], [2], [1], [1], [0, 0, 0, 1, 1, 1], [0], [0]>} : vector<1x8x8xbf16>, vector<1x8x8xbf16>, vector<1x8x8xf32> -> vector<1x8x8xf32>
    "tpu.trace_stop"() : () -> ()
    %cst_85 = arith.constant 0.353553385 : f32
    %223 = vector.broadcast %cst_85 : f32 to vector<1x8x8xf32>
    %224 = arith.mulf %222, %223 : vector<1x8x8xf32>
    %cst_86 = arith.constant -1.000000e+06 : f32
    %225 = vector.shape_cast %2 : vector<1x1x8xi1> to vector<1x1x8xi1>
    %226 = vector.broadcast %225 : vector<1x1x8xi1> to vector<1x8x8xi1>
    %227 = vector.broadcast %cst_86 : f32 to vector<1x8x8xf32>
    %228 = arith.select %226, %224, %227 : vector<1x8x8xi1>, vector<1x8x8xf32>
    %cst_87 = arith.constant dense<0xFF800000> : vector<1x8xf32>
    %229 = vector.multi_reduction <maximumf>, %228, %cst_87 [2] : vector<1x8x8xf32> to vector<1x8xf32>
    %230 = vector.shape_cast %229 : vector<1x8xf32> to vector<1x8x1xf32>
    %231 = vector.broadcast %230 : vector<1x8x1xf32> to vector<1x8x8xf32>
    %232 = arith.subf %228, %231 : vector<1x8x8xf32>
    %233 = math.exp %232 : vector<1x8x8xf32>
    %cst_88 = arith.constant dense<0.000000e+00> : vector<1x8xf32>
    %234 = vector.multi_reduction <add>, %233, %cst_88 [2] : vector<1x8x8xf32> to vector<1x8xf32>
    %235 = vector.shape_cast %234 : vector<1x8xf32> to vector<1x8x1xf32>
    %236 = tpu.reciprocal %235 {approx = true} : vector<1x8x1xf32> -> vector<1x8x1xf32>
    %237 = vector.broadcast %236 : vector<1x8x1xf32> to vector<1x8x8xf32>
    %238 = arith.mulf %233, %237 : vector<1x8x8xf32>
    %239 = arith.truncf %238 : vector<1x8x8xf32> to vector<1x8x8xbf16>
    "tpu.trace_start"() <{level = 10 : i32, message = "bqk,bkd->bqd"}> : () -> ()
    %cst_89 = arith.constant dense<0.000000e+00> : vector<1x8x8xf32>
    %240 = tpu.matmul %239, %221, %cst_89 {dimension_numbers = #tpu.dot_dimension_numbers<[2], [1], [1], [2], [0, 0, 0, 1, 1, 2], [0], [0]>} : vector<1x8x8xbf16>, vector<1x8x8xbf16>, vector<1x8x8xf32> -> vector<1x8x8xf32>
    "tpu.trace_stop"() : () -> ()
    %241 = vector.shape_cast %240 : vector<1x8x8xf32> to vector<8x8xf32>
    %242 = arith.truncf %241 : vector<8x8xf32> to vector<8x8xbf16>
    %c0_90 = arith.constant 0 : index
    %c0_91 = arith.constant 0 : index
    %243 = vector.load %arg14[%c0_90, %c0_91] : memref<8x32xbf16, #tpu.memory_space<vmem>>, vector<8x8xbf16>
    tpu.vector_store %arg14[%c0_90, %c0_91], %242 {strides = array<i32>} : memref<8x32xbf16, #tpu.memory_space<vmem>>, vector<8x8xbf16>,
    %244 = vector.extract_strided_slice %212 {offsets = [0, 8], sizes = [8, 8], strides = [1, 1]} : vector<8x96xf32> to vector<8x8xf32>
    %245 = vector.shape_cast %244 : vector<8x8xf32> to vector<1x8x8xf32>
    %246 = arith.truncf %245 : vector<1x8x8xf32> to vector<1x8x8xbf16>
    %247 = vector.extract_strided_slice %212 {offsets = [0, 40], sizes = [8, 8], strides = [1, 1]} : vector<8x96xf32> to vector<8x8xf32>
    %248 = vector.shape_cast %247 : vector<8x8xf32> to vector<1x8x8xf32>
    %249 = arith.truncf %248 : vector<1x8x8xf32> to vector<1x8x8xbf16>
    %250 = vector.extract_strided_slice %212 {offsets = [0, 72], sizes = [8, 8], strides = [1, 1]} : vector<8x96xf32> to vector<8x8xf32>
    %251 = vector.shape_cast %250 : vector<8x8xf32> to vector<1x8x8xf32>
    %252 = arith.truncf %251 : vector<1x8x8xf32> to vector<1x8x8xbf16>
    "tpu.trace_start"() <{level = 10 : i32, message = "bqd,bkd->bqk"}> : () -> ()
    %cst_92 = arith.constant dense<0.000000e+00> : vector<1x8x8xf32>
    %253 = tpu.matmul %246, %249, %cst_92 {dimension_numbers = #tpu.dot_dimension_numbers<[2], [2], [1], [1], [0, 0, 0, 1, 1, 1], [0], [0]>} : vector<1x8x8xbf16>, vector<1x8x8xbf16>, vector<1x8x8xf32> -> vector<1x8x8xf32>
    "tpu.trace_stop"() : () -> ()
    %cst_93 = arith.constant 0.353553385 : f32
    %254 = vector.broadcast %cst_93 : f32 to vector<1x8x8xf32>
    %255 = arith.mulf %253, %254 : vector<1x8x8xf32>
    %cst_94 = arith.constant -1.000000e+06 : f32
    %256 = vector.shape_cast %2 : vector<1x1x8xi1> to vector<1x1x8xi1>
    %257 = vector.broadcast %256 : vector<1x1x8xi1> to vector<1x8x8xi1>
    %258 = vector.broadcast %cst_94 : f32 to vector<1x8x8xf32>
    %259 = arith.select %257, %255, %258 : vector<1x8x8xi1>, vector<1x8x8xf32>
    %cst_95 = arith.constant dense<0xFF800000> : vector<1x8xf32>
    %260 = vector.multi_reduction <maximumf>, %259, %cst_95 [2] : vector<1x8x8xf32> to vector<1x8xf32>
    %261 = vector.shape_cast %260 : vector<1x8xf32> to vector<1x8x1xf32>
    %262 = vector.broadcast %261 : vector<1x8x1xf32> to vector<1x8x8xf32>
    %263 = arith.subf %259, %262 : vector<1x8x8xf32>
    %264 = math.exp %263 : vector<1x8x8xf32>
    %cst_96 = arith.constant dense<0.000000e+00> : vector<1x8xf32>
    %265 = vector.multi_reduction <add>, %264, %cst_96 [2] : vector<1x8x8xf32> to vector<1x8xf32>
    %266 = vector.shape_cast %265 : vector<1x8xf32> to vector<1x8x1xf32>
    %267 = tpu.reciprocal %266 {approx = true} : vector<1x8x1xf32> -> vector<1x8x1xf32>
    %268 = vector.broadcast %267 : vector<1x8x1xf32> to vector<1x8x8xf32>
    %269 = arith.mulf %264, %268 : vector<1x8x8xf32>
    %270 = arith.truncf %269 : vector<1x8x8xf32> to vector<1x8x8xbf16>
    "tpu.trace_start"() <{level = 10 : i32, message = "bqk,bkd->bqd"}> : () -> ()
    %cst_97 = arith.constant dense<0.000000e+00> : vector<1x8x8xf32>
    %271 = tpu.matmul %270, %252, %cst_97 {dimension_numbers = #tpu.dot_dimension_numbers<[2], [1], [1], [2], [0, 0, 0, 1, 1, 2], [0], [0]>} : vector<1x8x8xbf16>, vector<1x8x8xbf16>, vector<1x8x8xf32> -> vector<1x8x8xf32>
    "tpu.trace_stop"() : () -> ()
    %272 = vector.shape_cast %271 : vector<1x8x8xf32> to vector<8x8xf32>
    %273 = arith.truncf %272 : vector<8x8xf32> to vector<8x8xbf16>
    %c0_98 = arith.constant 0 : index
    %c8_99 = arith.constant 8 : index
    %274 = vector.load %arg14[%c0_98, %c8_99] : memref<8x32xbf16, #tpu.memory_space<vmem>>, vector<8x8xbf16>
    tpu.vector_store %arg14[%c0_98, %c8_99], %273 {strides = array<i32>} : memref<8x32xbf16, #tpu.memory_space<vmem>>, vector<8x8xbf16>,
    %275 = vector.extract_strided_slice %212 {offsets = [0, 16], sizes = [8, 8], strides = [1, 1]} : vector<8x96xf32> to vector<8x8xf32>
    %276 = vector.shape_cast %275 : vector<8x8xf32> to vector<1x8x8xf32>
    %277 = arith.truncf %276 : vector<1x8x8xf32> to vector<1x8x8xbf16>
    %278 = vector.extract_strided_slice %212 {offsets = [0, 48], sizes = [8, 8], strides = [1, 1]} : vector<8x96xf32> to vector<8x8xf32>
    %279 = vector.shape_cast %278 : vector<8x8xf32> to vector<1x8x8xf32>
    %280 = arith.truncf %279 : vector<1x8x8xf32> to vector<1x8x8xbf16>
    %281 = vector.extract_strided_slice %212 {offsets = [0, 80], sizes = [8, 8], strides = [1, 1]} : vector<8x96xf32> to vector<8x8xf32>
    %282 = vector.shape_cast %281 : vector<8x8xf32> to vector<1x8x8xf32>
    %283 = arith.truncf %282 : vector<1x8x8xf32> to vector<1x8x8xbf16>
    "tpu.trace_start"() <{level = 10 : i32, message = "bqd,bkd->bqk"}> : () -> ()
    %cst_100 = arith.constant dense<0.000000e+00> : vector<1x8x8xf32>
    %284 = tpu.matmul %277, %280, %cst_100 {dimension_numbers = #tpu.dot_dimension_numbers<[2], [2], [1], [1], [0, 0, 0, 1, 1, 1], [0], [0]>} : vector<1x8x8xbf16>, vector<1x8x8xbf16>, vector<1x8x8xf32> -> vector<1x8x8xf32>
    "tpu.trace_stop"() : () -> ()
    %cst_101 = arith.constant 0.353553385 : f32
    %285 = vector.broadcast %cst_101 : f32 to vector<1x8x8xf32>
    %286 = arith.mulf %284, %285 : vector<1x8x8xf32>
    %cst_102 = arith.constant -1.000000e+06 : f32
    %287 = vector.shape_cast %2 : vector<1x1x8xi1> to vector<1x1x8xi1>
    %288 = vector.broadcast %287 : vector<1x1x8xi1> to vector<1x8x8xi1>
    %289 = vector.broadcast %cst_102 : f32 to vector<1x8x8xf32>
    %290 = arith.select %288, %286, %289 : vector<1x8x8xi1>, vector<1x8x8xf32>
    %cst_103 = arith.constant dense<0xFF800000> : vector<1x8xf32>
    %291 = vector.multi_reduction <maximumf>, %290, %cst_103 [2] : vector<1x8x8xf32> to vector<1x8xf32>
    %292 = vector.shape_cast %291 : vector<1x8xf32> to vector<1x8x1xf32>
    %293 = vector.broadcast %292 : vector<1x8x1xf32> to vector<1x8x8xf32>
    %294 = arith.subf %290, %293 : vector<1x8x8xf32>
    %295 = math.exp %294 : vector<1x8x8xf32>
    %cst_104 = arith.constant dense<0.000000e+00> : vector<1x8xf32>
    %296 = vector.multi_reduction <add>, %295, %cst_104 [2] : vector<1x8x8xf32> to vector<1x8xf32>
    %297 = vector.shape_cast %296 : vector<1x8xf32> to vector<1x8x1xf32>
    %298 = tpu.reciprocal %297 {approx = true} : vector<1x8x1xf32> -> vector<1x8x1xf32>
    %299 = vector.broadcast %298 : vector<1x8x1xf32> to vector<1x8x8xf32>
    %300 = arith.mulf %295, %299 : vector<1x8x8xf32>
    %301 = arith.truncf %300 : vector<1x8x8xf32> to vector<1x8x8xbf16>
    "tpu.trace_start"() <{level = 10 : i32, message = "bqk,bkd->bqd"}> : () -> ()
    %cst_105 = arith.constant dense<0.000000e+00> : vector<1x8x8xf32>
    %302 = tpu.matmul %301, %283, %cst_105 {dimension_numbers = #tpu.dot_dimension_numbers<[2], [1], [1], [2], [0, 0, 0, 1, 1, 2], [0], [0]>} : vector<1x8x8xbf16>, vector<1x8x8xbf16>, vector<1x8x8xf32> -> vector<1x8x8xf32>
    "tpu.trace_stop"() : () -> ()
    %303 = vector.shape_cast %302 : vector<1x8x8xf32> to vector<8x8xf32>
    %304 = arith.truncf %303 : vector<8x8xf32> to vector<8x8xbf16>
    %c0_106 = arith.constant 0 : index
    %c16_107 = arith.constant 16 : index
    %305 = vector.load %arg14[%c0_106, %c16_107] : memref<8x32xbf16, #tpu.memory_space<vmem>>, vector<8x8xbf16>
    tpu.vector_store %arg14[%c0_106, %c16_107], %304 {strides = array<i32>} : memref<8x32xbf16, #tpu.memory_space<vmem>>, vector<8x8xbf16>,
    %306 = vector.extract_strided_slice %212 {offsets = [0, 24], sizes = [8, 8], strides = [1, 1]} : vector<8x96xf32> to vector<8x8xf32>
    %307 = vector.shape_cast %306 : vector<8x8xf32> to vector<1x8x8xf32>
    %308 = arith.truncf %307 : vector<1x8x8xf32> to vector<1x8x8xbf16>
    %309 = vector.extract_strided_slice %212 {offsets = [0, 56], sizes = [8, 8], strides = [1, 1]} : vector<8x96xf32> to vector<8x8xf32>
    %310 = vector.shape_cast %309 : vector<8x8xf32> to vector<1x8x8xf32>
    %311 = arith.truncf %310 : vector<1x8x8xf32> to vector<1x8x8xbf16>
    %312 = vector.extract_strided_slice %212 {offsets = [0, 88], sizes = [8, 8], strides = [1, 1]} : vector<8x96xf32> to vector<8x8xf32>
    %313 = vector.shape_cast %312 : vector<8x8xf32> to vector<1x8x8xf32>
    %314 = arith.truncf %313 : vector<1x8x8xf32> to vector<1x8x8xbf16>
    "tpu.trace_start"() <{level = 10 : i32, message = "bqd,bkd->bqk"}> : () -> ()
    %cst_108 = arith.constant dense<0.000000e+00> : vector<1x8x8xf32>
    %315 = tpu.matmul %308, %311, %cst_108 {dimension_numbers = #tpu.dot_dimension_numbers<[2], [2], [1], [1], [0, 0, 0, 1, 1, 1], [0], [0]>} : vector<1x8x8xbf16>, vector<1x8x8xbf16>, vector<1x8x8xf32> -> vector<1x8x8xf32>
    "tpu.trace_stop"() : () -> ()
    %cst_109 = arith.constant 0.353553385 : f32
    %316 = vector.broadcast %cst_109 : f32 to vector<1x8x8xf32>
    %317 = arith.mulf %315, %316 : vector<1x8x8xf32>
    %cst_110 = arith.constant -1.000000e+06 : f32
    %318 = vector.shape_cast %2 : vector<1x1x8xi1> to vector<1x1x8xi1>
    %319 = vector.broadcast %318 : vector<1x1x8xi1> to vector<1x8x8xi1>
    %320 = vector.broadcast %cst_110 : f32 to vector<1x8x8xf32>
    %321 = arith.select %319, %317, %320 : vector<1x8x8xi1>, vector<1x8x8xf32>
    %cst_111 = arith.constant dense<0xFF800000> : vector<1x8xf32>
    %322 = vector.multi_reduction <maximumf>, %321, %cst_111 [2] : vector<1x8x8xf32> to vector<1x8xf32>
    %323 = vector.shape_cast %322 : vector<1x8xf32> to vector<1x8x1xf32>
    %324 = vector.broadcast %323 : vector<1x8x1xf32> to vector<1x8x8xf32>
    %325 = arith.subf %321, %324 : vector<1x8x8xf32>
    %326 = math.exp %325 : vector<1x8x8xf32>
    %cst_112 = arith.constant dense<0.000000e+00> : vector<1x8xf32>
    %327 = vector.multi_reduction <add>, %326, %cst_112 [2] : vector<1x8x8xf32> to vector<1x8xf32>
    %328 = vector.shape_cast %327 : vector<1x8xf32> to vector<1x8x1xf32>
    %329 = tpu.reciprocal %328 {approx = true} : vector<1x8x1xf32> -> vector<1x8x1xf32>
    %330 = vector.broadcast %329 : vector<1x8x1xf32> to vector<1x8x8xf32>
    %331 = arith.mulf %326, %330 : vector<1x8x8xf32>
    %332 = arith.truncf %331 : vector<1x8x8xf32> to vector<1x8x8xbf16>
    "tpu.trace_start"() <{level = 10 : i32, message = "bqk,bkd->bqd"}> : () -> ()
    %cst_113 = arith.constant dense<0.000000e+00> : vector<1x8x8xf32>
    %333 = tpu.matmul %332, %314, %cst_113 {dimension_numbers = #tpu.dot_dimension_numbers<[2], [1], [1], [2], [0, 0, 0, 1, 1, 2], [0], [0]>} : vector<1x8x8xbf16>, vector<1x8x8xbf16>, vector<1x8x8xf32> -> vector<1x8x8xf32>
    "tpu.trace_stop"() : () -> ()
    %334 = vector.shape_cast %333 : vector<1x8x8xf32> to vector<8x8xf32>
    %335 = arith.truncf %334 : vector<8x8xf32> to vector<8x8xbf16>
    %c0_114 = arith.constant 0 : index
    %c24_115 = arith.constant 24 : index
    %336 = vector.load %arg14[%c0_114, %c24_115] : memref<8x32xbf16, #tpu.memory_space<vmem>>, vector<8x8xbf16>
    tpu.vector_store %arg14[%c0_114, %c24_115], %335 {strides = array<i32>} : memref<8x32xbf16, #tpu.memory_space<vmem>>, vector<8x8xbf16>,
    %c0_116 = arith.constant 0 : index
    %c0_117 = arith.constant 0 : index
    %337 = vector.load %arg14[%c0_116, %c0_117] : memref<8x32xbf16, #tpu.memory_space<vmem>>, vector<8x32xbf16>
    %c1_118 = arith.constant 1 : index
    %c0_119 = arith.constant 0 : index
    %c0_120 = arith.constant 0 : index
    %338 = vector.load %arg4[%c1_118, %c0_119, %c0_120] : memref<2x32x32xbf16, #tpu.memory_space<vmem>>, vector<1x32x32xbf16>
    %339 = vector.shape_cast %338 : vector<1x32x32xbf16> to vector<32x32xbf16>
    %cst_121 = arith.constant dense<0.000000e+00> : vector<8x32xf32>
    %340 = tpu.matmul %337, %339, %cst_121 {dimension_numbers = #tpu.dot_dimension_numbers<[1], [0], [0], [1], [0, 0, 1, 1], [], []>} : vector<8x32xbf16>, vector<32x32xbf16>, vector<8x32xf32> -> vector<8x32xf32>
    %341 = arith.addf %208, %340 : vector<8x32xf32>
    %c1_122 = arith.constant 1 : index
    %c0_123 = arith.constant 0 : index
    %c0_124 = arith.constant 0 : index
    %342 = vector.load %arg5[%c1_122, %c0_123, %c0_124] : memref<2x1x32xf32, #tpu.memory_space<vmem>>, vector<1x1x32xf32>
    %343 = vector.shape_cast %342 : vector<1x1x32xf32> to vector<1x32xf32>
    %c1_125 = arith.constant 1 : index
    %c0_126 = arith.constant 0 : index
    %c0_127 = arith.constant 0 : index
    %344 = vector.load %arg6[%c1_125, %c0_126, %c0_127] : memref<2x1x32xf32, #tpu.memory_space<vmem>>, vector<1x1x32xf32>
    %345 = vector.shape_cast %344 : vector<1x1x32xf32> to vector<1x32xf32>
    %cst_128 = arith.constant dense<0.000000e+00> : vector<8xf32>
    %346 = vector.multi_reduction <add>, %341, %cst_128 [1] : vector<8x32xf32> to vector<8xf32>
    %347 = vector.shape_cast %346 : vector<8xf32> to vector<8x1xf32>
    %cst_129 = arith.constant 3.200000e+01 : f32
    %348 = vector.broadcast %cst_129 : f32 to vector<8x1xf32>
    %349 = arith.divf %347, %348 : vector<8x1xf32>
    %350 = arith.mulf %341, %341 : vector<8x32xf32>
    %cst_130 = arith.constant dense<0.000000e+00> : vector<8xf32>
    %351 = vector.multi_reduction <add>, %350, %cst_130 [1] : vector<8x32xf32> to vector<8xf32>
    %352 = vector.shape_cast %351 : vector<8xf32> to vector<8x1xf32>
    %cst_131 = arith.constant 3.200000e+01 : f32
    %353 = vector.broadcast %cst_131 : f32 to vector<8x1xf32>
    %354 = arith.divf %352, %353 : vector<8x1xf32>
    %355 = arith.mulf %349, %349 : vector<8x1xf32>
    %356 = arith.subf %354, %355 : vector<8x1xf32>
    %357 = vector.broadcast %349 : vector<8x1xf32> to vector<8x32xf32>
    %358 = arith.subf %341, %357 : vector<8x32xf32>
    %cst_132 = arith.constant 9.99999974E-6 : f32
    %359 = vector.broadcast %cst_132 : f32 to vector<8x1xf32>
    %360 = arith.addf %356, %359 : vector<8x1xf32>
    %361 = math.rsqrt %360 : vector<8x1xf32>
    %362 = vector.broadcast %361 : vector<8x1xf32> to vector<8x32xf32>
    %363 = arith.mulf %358, %362 : vector<8x32xf32>
    %364 = vector.broadcast %343 : vector<1x32xf32> to vector<8x32xf32>
    %365 = arith.mulf %363, %364 : vector<8x32xf32>
    %366 = vector.broadcast %345 : vector<1x32xf32> to vector<8x32xf32>
    %367 = arith.addf %365, %366 : vector<8x32xf32>
    %368 = arith.truncf %367 : vector<8x32xf32> to vector<8x32xbf16>
    %c1_133 = arith.constant 1 : index
    %c0_134 = arith.constant 0 : index
    %c0_135 = arith.constant 0 : index
    %369 = vector.load %arg7[%c1_133, %c0_134, %c0_135] : memref<2x32x64xbf16, #tpu.memory_space<vmem>>, vector<1x32x64xbf16>
    %370 = vector.shape_cast %369 : vector<1x32x64xbf16> to vector<32x64xbf16>
    %cst_136 = arith.constant dense<0.000000e+00> : vector<8x64xf32>
    %371 = tpu.matmul %368, %370, %cst_136 {dimension_numbers = #tpu.dot_dimension_numbers<[1], [0], [0], [1], [0, 0, 1, 1], [], []>} : vector<8x32xbf16>, vector<32x64xbf16>, vector<8x64xf32> -> vector<8x64xf32>
    %c1_137 = arith.constant 1 : index
    %c0_138 = arith.constant 0 : index
    %c0_139 = arith.constant 0 : index
    %372 = vector.load %arg8[%c1_137, %c0_138, %c0_139] : memref<2x1x64xf32, #tpu.memory_space<vmem>>, vector<1x1x64xf32>
    %373 = vector.shape_cast %372 : vector<1x1x64xf32> to vector<1x64xf32>
    %374 = vector.broadcast %373 : vector<1x64xf32> to vector<8x64xf32>
    %375 = arith.addf %371, %374 : vector<8x64xf32>
    %cst_140 = arith.constant 0.000000e+00 : f32
    %376 = vector.broadcast %cst_140 : f32 to vector<8x64xf32>
    %377 = arith.maximumf %375, %376 : vector<8x64xf32>
    %378 = arith.truncf %377 : vector<8x64xf32> to vector<8x64xbf16>
    %c1_141 = arith.constant 1 : index
    %c0_142 = arith.constant 0 : index
    %c0_143 = arith.constant 0 : index
    %379 = vector.load %arg9[%c1_141, %c0_142, %c0_143] : memref<2x64x32xbf16, #tpu.memory_space<vmem>>, vector<1x64x32xbf16>
    %380 = vector.shape_cast %379 : vector<1x64x32xbf16> to vector<64x32xbf16>
    %cst_144 = arith.constant dense<0.000000e+00> : vector<8x32xf32>
    %381 = tpu.matmul %378, %380, %cst_144 {dimension_numbers = #tpu.dot_dimension_numbers<[1], [0], [0], [1], [0, 0, 1, 1], [], []>} : vector<8x64xbf16>, vector<64x32xbf16>, vector<8x32xf32> -> vector<8x32xf32>
    %c1_145 = arith.constant 1 : index
    %c0_146 = arith.constant 0 : index
    %c0_147 = arith.constant 0 : index
    %382 = vector.load %arg10[%c1_145, %c0_146, %c0_147] : memref<2x1x32xf32, #tpu.memory_space<vmem>>, vector<1x1x32xf32>
    %383 = vector.shape_cast %382 : vector<1x1x32xf32> to vector<1x32xf32>
    %384 = vector.broadcast %383 : vector<1x32xf32> to vector<8x32xf32>
    %385 = arith.addf %381, %384 : vector<8x32xf32>
    %386 = arith.addf %367, %385 : vector<8x32xf32>
    %c1_148 = arith.constant 1 : index
    %c0_149 = arith.constant 0 : index
    %c0_150 = arith.constant 0 : index
    %387 = vector.load %arg11[%c1_148, %c0_149, %c0_150] : memref<2x1x32xf32, #tpu.memory_space<vmem>>, vector<1x1x32xf32>
    %388 = vector.shape_cast %387 : vector<1x1x32xf32> to vector<1x32xf32>
    %c1_151 = arith.constant 1 : index
    %c0_152 = arith.constant 0 : index
    %c0_153 = arith.constant 0 : index
    %389 = vector.load %arg12[%c1_151, %c0_152, %c0_153] : memref<2x1x32xf32, #tpu.memory_space<vmem>>, vector<1x1x32xf32>
    %390 = vector.shape_cast %389 : vector<1x1x32xf32> to vector<1x32xf32>
    %cst_154 = arith.constant dense<0.000000e+00> : vector<8xf32>
    %391 = vector.multi_reduction <add>, %386, %cst_154 [1] : vector<8x32xf32> to vector<8xf32>
    %392 = vector.shape_cast %391 : vector<8xf32> to vector<8x1xf32>
    %cst_155 = arith.constant 3.200000e+01 : f32
    %393 = vector.broadcast %cst_155 : f32 to vector<8x1xf32>
    %394 = arith.divf %392, %393 : vector<8x1xf32>
    %395 = arith.mulf %386, %386 : vector<8x32xf32>
    %cst_156 = arith.constant dense<0.000000e+00> : vector<8xf32>
    %396 = vector.multi_reduction <add>, %395, %cst_156 [1] : vector<8x32xf32> to vector<8xf32>
    %397 = vector.shape_cast %396 : vector<8xf32> to vector<8x1xf32>
    %cst_157 = arith.constant 3.200000e+01 : f32
    %398 = vector.broadcast %cst_157 : f32 to vector<8x1xf32>
    %399 = arith.divf %397, %398 : vector<8x1xf32>
    %400 = arith.mulf %394, %394 : vector<8x1xf32>
    %401 = arith.subf %399, %400 : vector<8x1xf32>
    %402 = vector.broadcast %394 : vector<8x1xf32> to vector<8x32xf32>
    %403 = arith.subf %386, %402 : vector<8x32xf32>
    %cst_158 = arith.constant 9.99999974E-6 : f32
    %404 = vector.broadcast %cst_158 : f32 to vector<8x1xf32>
    %405 = arith.addf %401, %404 : vector<8x1xf32>
    %406 = math.rsqrt %405 : vector<8x1xf32>
    %407 = vector.broadcast %406 : vector<8x1xf32> to vector<8x32xf32>
    %408 = arith.mulf %403, %407 : vector<8x32xf32>
    %409 = vector.broadcast %388 : vector<1x32xf32> to vector<8x32xf32>
    %410 = arith.mulf %408, %409 : vector<8x32xf32>
    %411 = vector.broadcast %390 : vector<1x32xf32> to vector<8x32xf32>
    %412 = arith.addf %410, %411 : vector<8x32xf32>
    %413 = vector.shape_cast %412 : vector<8x32xf32> to vector<1x8x32xf32>
    %c0_159 = arith.constant 0 : index
    %c0_160 = arith.constant 0 : index
    %c0_161 = arith.constant 0 : index
    %414 = vector.load %arg13[%c0_159, %c0_160, %c0_161] : memref<1x8x32xf32, #tpu.memory_space<vmem>>, vector<1x8x32xf32>
    tpu.vector_store %arg13[%c0_159, %c0_160, %c0_161], %413 {strides = array<i32>} : memref<1x8x32xf32, #tpu.memory_space<vmem>>, vector<1x8x32xf32>,
    return
  }
  func.func @transform_0(%arg0: i32) -> (i32, i32, i32) {
    %c0_i32 = arith.constant 0 : i32
    %c0_i32_0 = arith.constant 0 : i32
    %c0_i32_1 = arith.constant 0 : i32
    return %arg0, %c0_i32, %c0_i32_0 : i32, i32, i32
  }
  func.func @transform_1(%arg0: i32) -> (i32, i32, i32) {
    %c0_i32 = arith.constant 0 : i32
    %c0_i32_0 = arith.constant 0 : i32
    %c0_i32_1 = arith.constant 0 : i32
    return %arg0, %c0_i32, %c0_i32_0 : i32, i32, i32
  }
  func.func @transform_2(%arg0: i32) -> (i32, i32, i32) {
    %c0_i32 = arith.constant 0 : i32
    %c0_i32_0 = arith.constant 0 : i32
    %c0_i32_1 = arith.constant 0 : i32
    %c0_i32_2 = arith.constant 0 : i32
    return %c0_i32, %c0_i32_0, %c0_i32_1 : i32, i32, i32
  }
  func.func @transform_3(%arg0: i32) -> (i32, i32, i32) {
    %c0_i32 = arith.constant 0 : i32
    %c0_i32_0 = arith.constant 0 : i32
    %c0_i32_1 = arith.constant 0 : i32
    %c0_i32_2 = arith.constant 0 : i32
    return %c0_i32, %c0_i32_0, %c0_i32_1 : i32, i32, i32
  }
  func.func @transform_4(%arg0: i32) -> (i32, i32, i32) {
    %c0_i32 = arith.constant 0 : i32
    %c0_i32_0 = arith.constant 0 : i32
    %c0_i32_1 = arith.constant 0 : i32
    %c0_i32_2 = arith.constant 0 : i32
    return %c0_i32, %c0_i32_0, %c0_i32_1 : i32, i32, i32
  }
  func.func @transform_5(%arg0: i32) -> (i32, i32, i32) {
    %c0_i32 = arith.constant 0 : i32
    %c0_i32_0 = arith.constant 0 : i32
    %c0_i32_1 = arith.constant 0 : i32
    %c0_i32_2 = arith.constant 0 : i32
    return %c0_i32, %c0_i32_0, %c0_i32_1 : i32, i32, i32
  }
  func.func @transform_6(%arg0: i32) -> (i32, i32, i32) {
    %c0_i32 = arith.constant 0 : i32
    %c0_i32_0 = arith.constant 0 : i32
    %c0_i32_1 = arith.constant 0 : i32
    %c0_i32_2 = arith.constant 0 : i32
    return %c0_i32, %c0_i32_0, %c0_i32_1 : i32, i32, i32
  }
  func.func @transform_7(%arg0: i32) -> (i32, i32, i32) {
    %c0_i32 = arith.constant 0 : i32
    %c0_i32_0 = arith.constant 0 : i32
    %c0_i32_1 = arith.constant 0 : i32
    %c0_i32_2 = arith.constant 0 : i32
    return %c0_i32, %c0_i32_0, %c0_i32_1 : i32, i32, i32
  }
  func.func @transform_8(%arg0: i32) -> (i32, i32, i32) {
    %c0_i32 = arith.constant 0 : i32
    %c0_i32_0 = arith.constant 0 : i32
    %c0_i32_1 = arith.constant 0 : i32
    %c0_i32_2 = arith.constant 0 : i32
    return %c0_i32, %c0_i32_0, %c0_i32_1 : i32, i32, i32
  }
  func.func @transform_9(%arg0: i32) -> (i32, i32, i32) {
    %c0_i32 = arith.constant 0 : i32
    %c0_i32_0 = arith.constant 0 : i32
    %c0_i32_1 = arith.constant 0 : i32
    %c0_i32_2 = arith.constant 0 : i32
    return %c0_i32, %c0_i32_0, %c0_i32_1 : i32, i32, i32
  }
  func.func @transform_10(%arg0: i32) -> (i32, i32, i32) {
    %c0_i32 = arith.constant 0 : i32
    %c0_i32_0 = arith.constant 0 : i32
    %c0_i32_1 = arith.constant 0 : i32
    %c0_i32_2 = arith.constant 0 : i32
    return %c0_i32, %c0_i32_0, %c0_i32_1 : i32, i32, i32
  }
  func.func @transform_11(%arg0: i32) -> (i32, i32, i32) {
    %c0_i32 = arith.constant 0 : i32
    %c0_i32_0 = arith.constant 0 : i32
    %c0_i32_1 = arith.constant 0 : i32
    %c0_i32_2 = arith.constant 0 : i32
    return %c0_i32, %c0_i32_0, %c0_i32_1 : i32, i32, i32
  }
  func.func @transform_12(%arg0: i32) -> (i32, i32, i32) {
    %c0_i32 = arith.constant 0 : i32
    %c0_i32_0 = arith.constant 0 : i32
    %c0_i32_1 = arith.constant 0 : i32
    return %arg0, %c0_i32, %c0_i32_0 : i32, i32, i32
  }
}

module attributes {stable_mosaic.version = 11 : i64} {
  func.func @encoder_stack_kernel(%arg0: i32, %arg1: memref<1x8x32xf32, #tpu.memory_space<vmem>>, %arg2: memref<1x1x8xf32, #tpu.memory_space<vmem>>, %arg3: memref<2x32x96xbf16, #tpu.memory_space<vmem>>, %arg4: memref<2x32x32xbf16, #tpu.memory_space<vmem>>, %arg5: memref<2x1x32xf32, #tpu.memory_space<vmem>>, %arg6: memref<2x1x32xf32, #tpu.memory_space<vmem>>, %arg7: memref<2x32x64xbf16, #tpu.memory_space<vmem>>, %arg8: memref<2x1x64xf32, #tpu.memory_space<vmem>>, %arg9: memref<2x64x32xbf16, #tpu.memory_space<vmem>>, %arg10: memref<2x1x32xf32, #tpu.memory_space<vmem>>, %arg11: memref<2x1x32xf32, #tpu.memory_space<vmem>>, %arg12: memref<2x1x32xf32, #tpu.memory_space<vmem>>, %arg13: memref<1x8x32xf32, #tpu.memory_space<vmem>>, %arg14: memref<8x32xbf16, #tpu.memory_space<vmem>>) attributes {dimension_semantics = [#tpu.dimension_semantics<parallel>], iteration_bounds = array<i64: 2>, scalar_prefetch = 0 : i64, scratch_operands = 1 : i64, tpu.core_type = #tpu.core_type<tc>, window_params = [{transform_indices = @transform_0, window_bounds = array<i64: 1, 8, 32>}, {transform_indices = @transform_1, window_bounds = array<i64: 1, 1, 8>}, {pipeline_mode = #tpu.pipeline_mode<synchronous>, transform_indices = @transform_2, window_bounds = array<i64: 2, 32, 96>}, {pipeline_mode = #tpu.pipeline_mode<synchronous>, transform_indices = @transform_3, window_bounds = array<i64: 2, 32, 32>}, {pipeline_mode = #tpu.pipeline_mode<synchronous>, transform_indices = @transform_4, window_bounds = array<i64: 2, 1, 32>}, {pipeline_mode = #tpu.pipeline_mode<synchronous>, transform_indices = @transform_5, window_bounds = array<i64: 2, 1, 32>}, {pipeline_mode = #tpu.pipeline_mode<synchronous>, transform_indices = @transform_6, window_bounds = array<i64: 2, 32, 64>}, {pipeline_mode = #tpu.pipeline_mode<synchronous>, transform_indices = @transform_7, window_bounds = array<i64: 2, 1, 64>}, {pipeline_mode = #tpu.pipeline_mode<synchronous>, transform_indices = @transform_8, window_bounds = array<i64: 2, 64, 32>}, {pipeline_mode = #tpu.pipeline_mode<synchronous>, transform_indices = @transform_9, window_bounds = array<i64: 2, 1, 32>}, {pipeline_mode = #tpu.pipeline_mode<synchronous>, transform_indices = @transform_10, window_bounds = array<i64: 2, 1, 32>}, {pipeline_mode = #tpu.pipeline_mode<synchronous>, transform_indices = @transform_11, window_bounds = array<i64: 2, 1, 32>}, {transform_indices = @transform_12, window_bounds = array<i64: 1, 8, 32>}]} {
    %c0 = arith.constant 0 : index
    %c0_0 = arith.constant 0 : index
    %c0_1 = arith.constant 0 : index
    %0 = vector.load %arg2[%c0, %c0_0, %c0_1] : memref<1x1x8xf32, #tpu.memory_space<vmem>>, vector<1x1x8xf32>
    %cst = arith.constant 0.000000e+00 : f32
    %1 = vector.broadcast %cst : f32 to vector<1x1x8xf32>
    %2 = arith.cmpf one, %0, %1 : vector<1x1x8xf32>
    %c0_2 = arith.constant 0 : index
    %c0_3 = arith.constant 0 : index
    %c0_4 = arith.constant 0 : index
    %3 = vector.load %arg1[%c0_2, %c0_3, %c0_4] : memref<1x8x32xf32, #tpu.memory_space<vmem>>, vector<1x8x32xf32>
    %4 = vector.shape_cast %3 : vector<1x8x32xf32> to vector<8x32xf32>
    %5 = arith.truncf %4 : vector<8x32xf32> to vector<8x32xbf16>
    %c0_5 = arith.constant 0 : index
    %c0_6 = arith.constant 0 : index
    %c0_7 = arith.constant 0 : index
    %6 = vector.load %arg3[%c0_5, %c0_6, %c0_7] : memref<2x32x96xbf16, #tpu.memory_space<vmem>>, vector<1x32x96xbf16>
    %7 = vector.shape_cast %6 : vector<1x32x96xbf16> to vector<32x96xbf16>
    %cst_8 = arith.constant dense<0.000000e+00> : vector<8x96xf32>
    %8 = tpu.matmul %5, %7, %cst_8 {dimension_numbers = #tpu.dot_dimension_numbers<[1], [0], [0], [1], [0, 0, 1, 1], [], []>} : vector<8x32xbf16>, vector<32x96xbf16>, vector<8x96xf32> -> vector<8x96xf32>
    %9 = vector.extract_strided_slice %8 {offsets = [0, 0], sizes = [8, 8], strides = [1, 1]} : vector<8x96xf32> to vector<8x8xf32>
    %10 = vector.shape_cast %9 : vector<8x8xf32> to vector<1x8x8xf32>
    %11 = arith.truncf %10 : vector<1x8x8xf32> to vector<1x8x8xbf16>
    %12 = vector.extract_strided_slice %8 {offsets = [0, 32], sizes = [8, 8], strides = [1, 1]} : vector<8x96xf32> to vector<8x8xf32>
    %13 = vector.shape_cast %12 : vector<8x8xf32> to vector<1x8x8xf32>
    %14 = arith.truncf %13 : vector<1x8x8xf32> to vector<1x8x8xbf16>
    %15 = vector.extract_strided_slice %8 {offsets = [0, 64], sizes = [8, 8], strides = [1, 1]} : vector<8x96xf32> to vector<8x8xf32>
    %16 = vector.shape_cast %15 : vector<8x8xf32> to vector<1x8x8xf32>
    %17 = arith.truncf %16 : vector<1x8x8xf32> to vector<1x8x8xbf16>
    "tpu.trace_start"() <{level = 10 : i32, message = "bqd,bkd->bqk"}> : () -> ()
    %cst_9 = arith.constant dense<0.000000e+00> : vector<1x8x8xf32>
    %18 = tpu.matmul %11, %14, %cst_9 {dimension_numbers = #tpu.dot_dimension_numbers<[2], [2], [1], [1], [0, 0, 0, 1, 1, 1], [0], [0]>} : vector<1x8x8xbf16>, vector<1x8x8xbf16>, vector<1x8x8xf32> -> vector<1x8x8xf32>
    "tpu.trace_stop"() : () -> ()
    %cst_10 = arith.constant 0.353553385 : f32
    %19 = vector.broadcast %cst_10 : f32 to vector<1x8x8xf32>
    %20 = arith.mulf %18, %19 : vector<1x8x8xf32>
    %cst_11 = arith.constant -1.000000e+06 : f32
    %21 = vector.shape_cast %2 : vector<1x1x8xi1> to vector<1x1x8xi1>
    %22 = vector.broadcast %21 : vector<1x1x8xi1> to vector<1x8x8xi1>
    %23 = vector.broadcast %cst_11 : f32 to vector<1x8x8xf32>
    %24 = arith.select %22, %20, %23 : vector<1x8x8xi1>, vector<1x8x8xf32>
    %cst_12 = arith.constant dense<0xFF800000> : vector<1x8xf32>
    %25 = vector.multi_reduction <maximumf>, %24, %cst_12 [2] : vector<1x8x8xf32> to vector<1x8xf32>
    %26 = vector.shape_cast %25 : vector<1x8xf32> to vector<1x8x1xf32>
    %27 = vector.broadcast %26 : vector<1x8x1xf32> to vector<1x8x8xf32>
    %28 = arith.subf %24, %27 : vector<1x8x8xf32>
    %29 = math.exp %28 : vector<1x8x8xf32>
    %cst_13 = arith.constant dense<0.000000e+00> : vector<1x8xf32>
    %30 = vector.multi_reduction <add>, %29, %cst_13 [2] : vector<1x8x8xf32> to vector<1x8xf32>
    %31 = vector.shape_cast %30 : vector<1x8xf32> to vector<1x8x1xf32>
    %32 = tpu.reciprocal %31 {approx = true} : vector<1x8x1xf32> -> vector<1x8x1xf32>
    %33 = vector.broadcast %32 : vector<1x8x1xf32> to vector<1x8x8xf32>
    %34 = arith.mulf %29, %33 : vector<1x8x8xf32>
    %35 = arith.truncf %34 : vector<1x8x8xf32> to vector<1x8x8xbf16>
    "tpu.trace_start"() <{level = 10 : i32, message = "bqk,bkd->bqd"}> : () -> ()
    %cst_14 = arith.constant dense<0.000000e+00> : vector<1x8x8xf32>
    %36 = tpu.matmul %35, %17, %cst_14 {dimension_numbers = #tpu.dot_dimension_numbers<[2], [1], [1], [2], [0, 0, 0, 1, 1, 2], [0], [0]>} : vector<1x8x8xbf16>, vector<1x8x8xbf16>, vector<1x8x8xf32> -> vector<1x8x8xf32>
    "tpu.trace_stop"() : () -> ()
    %37 = vector.shape_cast %36 : vector<1x8x8xf32> to vector<8x8xf32>
    %38 = arith.truncf %37 : vector<8x8xf32> to vector<8x8xbf16>
    %c0_15 = arith.constant 0 : index
    %c0_16 = arith.constant 0 : index
    %39 = vector.load %arg14[%c0_15, %c0_16] : memref<8x32xbf16, #tpu.memory_space<vmem>>, vector<8x8xbf16>
    tpu.vector_store %arg14[%c0_15, %c0_16], %38 {strides = array<i32>} : memref<8x32xbf16, #tpu.memory_space<vmem>>, vector<8x8xbf16>,
    %40 = vector.extract_strided_slice %8 {offsets = [0, 8], sizes = [8, 8], strides = [1, 1]} : vector<8x96xf32> to vector<8x8xf32>
    %41 = vector.shape_cast %40 : vector<8x8xf32> to vector<1x8x8xf32>
    %42 = arith.truncf %41 : vector<1x8x8xf32> to vector<1x8x8xbf16>
    %43 = vector.extract_strided_slice %8 {offsets = [0, 40], sizes = [8, 8], strides = [1, 1]} : vector<8x96xf32> to vector<8x8xf32>
    %44 = vector.shape_cast %43 : vector<8x8xf32> to vector<1x8x8xf32>
    %45 = arith.truncf %44 : vector<1x8x8xf32> to vector<1x8x8xbf16>
    %46 = vector.extract_strided_slice %8 {offsets = [0, 72], sizes = [8, 8], strides = [1, 1]} : vector<8x96xf32> to vector<8x8xf32>
    %47 = vector.shape_cast %46 : vector<8x8xf32> to vector<1x8x8xf32>
    %48 = arith.truncf %47 : vector<1x8x8xf32> to vector<1x8x8xbf16>
    "tpu.trace_start"() <{level = 10 : i32, message = "bqd,bkd->bqk"}> : () -> ()
    %cst_17 = arith.constant dense<0.000000e+00> : vector<1x8x8xf32>
    %49 = tpu.matmul %42, %45, %cst_17 {dimension_numbers = #tpu.dot_dimension_numbers<[2], [2], [1], [1], [0, 0, 0, 1, 1, 1], [0], [0]>} : vector<1x8x8xbf16>, vector<1x8x8xbf16>, vector<1x8x8xf32> -> vector<1x8x8xf32>
    "tpu.trace_stop"() : () -> ()
    %cst_18 = arith.constant 0.353553385 : f32
    %50 = vector.broadcast %cst_18 : f32 to vector<1x8x8xf32>
    %51 = arith.mulf %49, %50 : vector<1x8x8xf32>
    %cst_19 = arith.constant -1.000000e+06 : f32
    %52 = vector.shape_cast %2 : vector<1x1x8xi1> to vector<1x1x8xi1>
    %53 = vector.broadcast %52 : vector<1x1x8xi1> to vector<1x8x8xi1>
    %54 = vector.broadcast %cst_19 : f32 to vector<1x8x8xf32>
    %55 = arith.select %53, %51, %54 : vector<1x8x8xi1>, vector<1x8x8xf32>
    %cst_20 = arith.constant dense<0xFF800000> : vector<1x8xf32>
    %56 = vector.multi_reduction <maximumf>, %55, %cst_20 [2] : vector<1x8x8xf32> to vector<1x8xf32>
    %57 = vector.shape_cast %56 : vector<1x8xf32> to vector<1x8x1xf32>
    %58 = vector.broadcast %57 : vector<1x8x1xf32> to vector<1x8x8xf32>
    %59 = arith.subf %55, %58 : vector<1x8x8xf32>
    %60 = math.exp %59 : vector<1x8x8xf32>
    %cst_21 = arith.constant dense<0.000000e+00> : vector<1x8xf32>
    %61 = vector.multi_reduction <add>, %60, %cst_21 [2] : vector<1x8x8xf32> to vector<1x8xf32>
    %62 = vector.shape_cast %61 : vector<1x8xf32> to vector<1x8x1xf32>
    %63 = tpu.reciprocal %62 {approx = true} : vector<1x8x1xf32> -> vector<1x8x1xf32>
    %64 = vector.broadcast %63 : vector<1x8x1xf32> to vector<1x8x8xf32>
    %65 = arith.mulf %60, %64 : vector<1x8x8xf32>
    %66 = arith.truncf %65 : vector<1x8x8xf32> to vector<1x8x8xbf16>
    "tpu.trace_start"() <{level = 10 : i32, message = "bqk,bkd->bqd"}> : () -> ()
    %cst_22 = arith.constant dense<0.000000e+00> : vector<1x8x8xf32>
    %67 = tpu.matmul %66, %48, %cst_22 {dimension_numbers = #tpu.dot_dimension_numbers<[2], [1], [1], [2], [0, 0, 0, 1, 1, 2], [0], [0]>} : vector<1x8x8xbf16>, vector<1x8x8xbf16>, vector<1x8x8xf32> -> vector<1x8x8xf32>
    "tpu.trace_stop"() : () -> ()
    %68 = vector.shape_cast %67 : vector<1x8x8xf32> to vector<8x8xf32>
    %69 = arith.truncf %68 : vector<8x8xf32> to vector<8x8xbf16>
    %c0_23 = arith.constant 0 : index
    %c8 = arith.constant 8 : index
    %70 = vector.load %arg14[%c0_23, %c8] : memref<8x32xbf16, #tpu.memory_space<vmem>>, vector<8x8xbf16>
    tpu.vector_store %arg14[%c0_23, %c8], %69 {strides = array<i32>} : memref<8x32xbf16, #tpu.memory_space<vmem>>, vector<8x8xbf16>,
    %71 = vector.extract_strided_slice %8 {offsets = [0, 16], sizes = [8, 8], strides = [1, 1]} : vector<8x96xf32> to vector<8x8xf32>
    %72 = vector.shape_cast %71 : vector<8x8xf32> to vector<1x8x8xf32>
    %73 = arith.truncf %72 : vector<1x8x8xf32> to vector<1x8x8xbf16>
    %74 = vector.extract_strided_slice %8 {offsets = [0, 48], sizes = [8, 8], strides = [1, 1]} : vector<8x96xf32> to vector<8x8xf32>
    %75 = vector.shape_cast %74 : vector<8x8xf32> to vector<1x8x8xf32>
    %76 = arith.truncf %75 : vector<1x8x8xf32> to vector<1x8x8xbf16>
    %77 = vector.extract_strided_slice %8 {offsets = [0, 80], sizes = [8, 8], strides = [1, 1]} : vector<8x96xf32> to vector<8x8xf32>
    %78 = vector.shape_cast %77 : vector<8x8xf32> to vector<1x8x8xf32>
    %79 = arith.truncf %78 : vector<1x8x8xf32> to vector<1x8x8xbf16>
    "tpu.trace_start"() <{level = 10 : i32, message = "bqd,bkd->bqk"}> : () -> ()
    %cst_24 = arith.constant dense<0.000000e+00> : vector<1x8x8xf32>
    %80 = tpu.matmul %73, %76, %cst_24 {dimension_numbers = #tpu.dot_dimension_numbers<[2], [2], [1], [1], [0, 0, 0, 1, 1, 1], [0], [0]>} : vector<1x8x8xbf16>, vector<1x8x8xbf16>, vector<1x8x8xf32> -> vector<1x8x8xf32>
    "tpu.trace_stop"() : () -> ()
    %cst_25 = arith.constant 0.353553385 : f32
    %81 = vector.broadcast %cst_25 : f32 to vector<1x8x8xf32>
    %82 = arith.mulf %80, %81 : vector<1x8x8xf32>
    %cst_26 = arith.constant -1.000000e+06 : f32
    %83 = vector.shape_cast %2 : vector<1x1x8xi1> to vector<1x1x8xi1>
    %84 = vector.broadcast %83 : vector<1x1x8xi1> to vector<1x8x8xi1>
    %85 = vector.broadcast %cst_26 : f32 to vector<1x8x8xf32>
    %86 = arith.select %84, %82, %85 : vector<1x8x8xi1>, vector<1x8x8xf32>
    %cst_27 = arith.constant dense<0xFF800000> : vector<1x8xf32>
    %87 = vector.multi_reduction <maximumf>, %86, %cst_27 [2] : vector<1x8x8xf32> to vector<1x8xf32>
    %88 = vector.shape_cast %87 : vector<1x8xf32> to vector<1x8x1xf32>
    %89 = vector.broadcast %88 : vector<1x8x1xf32> to vector<1x8x8xf32>
    %90 = arith.subf %86, %89 : vector<1x8x8xf32>
    %91 = math.exp %90 : vector<1x8x8xf32>
    %cst_28 = arith.constant dense<0.000000e+00> : vector<1x8xf32>
    %92 = vector.multi_reduction <add>, %91, %cst_28 [2] : vector<1x8x8xf32> to vector<1x8xf32>
    %93 = vector.shape_cast %92 : vector<1x8xf32> to vector<1x8x1xf32>
    %94 = tpu.reciprocal %93 {approx = true} : vector<1x8x1xf32> -> vector<1x8x1xf32>
    %95 = vector.broadcast %94 : vector<1x8x1xf32> to vector<1x8x8xf32>
    %96 = arith.mulf %91, %95 : vector<1x8x8xf32>
    %97 = arith.truncf %96 : vector<1x8x8xf32> to vector<1x8x8xbf16>
    "tpu.trace_start"() <{level = 10 : i32, message = "bqk,bkd->bqd"}> : () -> ()
    %cst_29 = arith.constant dense<0.000000e+00> : vector<1x8x8xf32>
    %98 = tpu.matmul %97, %79, %cst_29 {dimension_numbers = #tpu.dot_dimension_numbers<[2], [1], [1], [2], [0, 0, 0, 1, 1, 2], [0], [0]>} : vector<1x8x8xbf16>, vector<1x8x8xbf16>, vector<1x8x8xf32> -> vector<1x8x8xf32>
    "tpu.trace_stop"() : () -> ()
    %99 = vector.shape_cast %98 : vector<1x8x8xf32> to vector<8x8xf32>
    %100 = arith.truncf %99 : vector<8x8xf32> to vector<8x8xbf16>
    %c0_30 = arith.constant 0 : index
    %c16 = arith.constant 16 : index
    %101 = vector.load %arg14[%c0_30, %c16] : memref<8x32xbf16, #tpu.memory_space<vmem>>, vector<8x8xbf16>
    tpu.vector_store %arg14[%c0_30, %c16], %100 {strides = array<i32>} : memref<8x32xbf16, #tpu.memory_space<vmem>>, vector<8x8xbf16>,
    %102 = vector.extract_strided_slice %8 {offsets = [0, 24], sizes = [8, 8], strides = [1, 1]} : vector<8x96xf32> to vector<8x8xf32>
    %103 = vector.shape_cast %102 : vector<8x8xf32> to vector<1x8x8xf32>
    %104 = arith.truncf %103 : vector<1x8x8xf32> to vector<1x8x8xbf16>
    %105 = vector.extract_strided_slice %8 {offsets = [0, 56], sizes = [8, 8], strides = [1, 1]} : vector<8x96xf32> to vector<8x8xf32>
    %106 = vector.shape_cast %105 : vector<8x8xf32> to vector<1x8x8xf32>
    %107 = arith.truncf %106 : vector<1x8x8xf32> to vector<1x8x8xbf16>
    %108 = vector.extract_strided_slice %8 {offsets = [0, 88], sizes = [8, 8], strides = [1, 1]} : vector<8x96xf32> to vector<8x8xf32>
    %109 = vector.shape_cast %108 : vector<8x8xf32> to vector<1x8x8xf32>
    %110 = arith.truncf %109 : vector<1x8x8xf32> to vector<1x8x8xbf16>
    "tpu.trace_start"() <{level = 10 : i32, message = "bqd,bkd->bqk"}> : () -> ()
    %cst_31 = arith.constant dense<0.000000e+00> : vector<1x8x8xf32>
    %111 = tpu.matmul %104, %107, %cst_31 {dimension_numbers = #tpu.dot_dimension_numbers<[2], [2], [1], [1], [0, 0, 0, 1, 1, 1], [0], [0]>} : vector<1x8x8xbf16>, vector<1x8x8xbf16>, vector<1x8x8xf32> -> vector<1x8x8xf32>
    "tpu.trace_stop"() : () -> ()
    %cst_32 = arith.constant 0.353553385 : f32
    %112 = vector.broadcast %cst_32 : f32 to vector<1x8x8xf32>
    %113 = arith.mulf %111, %112 : vector<1x8x8xf32>
    %cst_33 = arith.constant -1.000000e+06 : f32
    %114 = vector.shape_cast %2 : vector<1x1x8xi1> to vector<1x1x8xi1>
    %115 = vector.broadcast %114 : vector<1x1x8xi1> to vector<1x8x8xi1>
    %116 = vector.broadcast %cst_33 : f32 to vector<1x8x8xf32>
    %117 = arith.select %115, %113, %116 : vector<1x8x8xi1>, vector<1x8x8xf32>
    %cst_34 = arith.constant dense<0xFF800000> : vector<1x8xf32>
    %118 = vector.multi_reduction <maximumf>, %117, %cst_34 [2] : vector<1x8x8xf32> to vector<1x8xf32>
    %119 = vector.shape_cast %118 : vector<1x8xf32> to vector<1x8x1xf32>
    %120 = vector.broadcast %119 : vector<1x8x1xf32> to vector<1x8x8xf32>
    %121 = arith.subf %117, %120 : vector<1x8x8xf32>
    %122 = math.exp %121 : vector<1x8x8xf32>
    %cst_35 = arith.constant dense<0.000000e+00> : vector<1x8xf32>
    %123 = vector.multi_reduction <add>, %122, %cst_35 [2] : vector<1x8x8xf32> to vector<1x8xf32>
    %124 = vector.shape_cast %123 : vector<1x8xf32> to vector<1x8x1xf32>
    %125 = tpu.reciprocal %124 {approx = true} : vector<1x8x1xf32> -> vector<1x8x1xf32>
    %126 = vector.broadcast %125 : vector<1x8x1xf32> to vector<1x8x8xf32>
    %127 = arith.mulf %122, %126 : vector<1x8x8xf32>
    %128 = arith.truncf %127 : vector<1x8x8xf32> to vector<1x8x8xbf16>
    "tpu.trace_start"() <{level = 10 : i32, message = "bqk,bkd->bqd"}> : () -> ()
    %cst_36 = arith.constant dense<0.000000e+00> : vector<1x8x8xf32>
    %129 = tpu.matmul %128, %110, %cst_36 {dimension_numbers = #tpu.dot_dimension_numbers<[2], [1], [1], [2], [0, 0, 0, 1, 1, 2], [0], [0]>} : vector<1x8x8xbf16>, vector<1x8x8xbf16>, vector<1x8x8xf32> -> vector<1x8x8xf32>
    "tpu.trace_stop"() : () -> ()
    %130 = vector.shape_cast %129 : vector<1x8x8xf32> to vector<8x8xf32>
    %131 = arith.truncf %130 : vector<8x8xf32> to vector<8x8xbf16>
    %c0_37 = arith.constant 0 : index
    %c24 = arith.constant 24 : index
    %132 = vector.load %arg14[%c0_37, %c24] : memref<8x32xbf16, #tpu.memory_space<vmem>>, vector<8x8xbf16>
    tpu.vector_store %arg14[%c0_37, %c24], %131 {strides = array<i32>} : memref<8x32xbf16, #tpu.memory_space<vmem>>, vector<8x8xbf16>,
    %c0_38 = arith.constant 0 : index
    %c0_39 = arith.constant 0 : index
    %133 = vector.load %arg14[%c0_38, %c0_39] : memref<8x32xbf16, #tpu.memory_space<vmem>>, vector<8x32xbf16>
    %c0_40 = arith.constant 0 : index
    %c0_41 = arith.constant 0 : index
    %c0_42 = arith.constant 0 : index
    %134 = vector.load %arg4[%c0_40, %c0_41, %c0_42] : memref<2x32x32xbf16, #tpu.memory_space<vmem>>, vector<1x32x32xbf16>
    %135 = vector.shape_cast %134 : vector<1x32x32xbf16> to vector<32x32xbf16>
    %cst_43 = arith.constant dense<0.000000e+00> : vector<8x32xf32>
    %136 = tpu.matmul %133, %135, %cst_43 {dimension_numbers = #tpu.dot_dimension_numbers<[1], [0], [0], [1], [0, 0, 1, 1], [], []>} : vector<8x32xbf16>, vector<32x32xbf16>, vector<8x32xf32> -> vector<8x32xf32>
    %137 = arith.addf %4, %136 : vector<8x32xf32>
    %c0_44 = arith.constant 0 : index
    %c0_45 = arith.constant 0 : index
    %c0_46 = arith.constant 0 : index
    %138 = vector.load %arg5[%c0_44, %c0_45, %c0_46] : memref<2x1x32xf32, #tpu.memory_space<vmem>>, vector<1x1x32xf32>
    %139 = vector.shape_cast %138 : vector<1x1x32xf32> to vector<1x32xf32>
    %c0_47 = arith.constant 0 : index
    %c0_48 = arith.constant 0 : index
    %c0_49 = arith.constant 0 : index
    %140 = vector.load %arg6[%c0_47, %c0_48, %c0_49] : memref<2x1x32xf32, #tpu.memory_space<vmem>>, vector<1x1x32xf32>
    %141 = vector.shape_cast %140 : vector<1x1x32xf32> to vector<1x32xf32>
    %cst_50 = arith.constant dense<0.000000e+00> : vector<8xf32>
    %142 = vector.multi_reduction <add>, %137, %cst_50 [1] : vector<8x32xf32> to vector<8xf32>
    %143 = vector.shape_cast %142 : vector<8xf32> to vector<8x1xf32>
    %cst_51 = arith.constant 3.200000e+01 : f32
    %144 = vector.broadcast %cst_51 : f32 to vector<8x1xf32>
    %145 = arith.divf %143, %144 : vector<8x1xf32>
    %146 = arith.mulf %137, %137 : vector<8x32xf32>
    %cst_52 = arith.constant dense<0.000000e+00> : vector<8xf32>
    %147 = vector.multi_reduction <add>, %146, %cst_52 [1] : vector<8x32xf32> to vector<8xf32>
    %148 = vector.shape_cast %147 : vector<8xf32> to vector<8x1xf32>
    %cst_53 = arith.constant 3.200000e+01 : f32
    %149 = vector.broadcast %cst_53 : f32 to vector<8x1xf32>
    %150 = arith.divf %148, %149 : vector<8x1xf32>
    %151 = arith.mulf %145, %145 : vector<8x1xf32>
    %152 = arith.subf %150, %151 : vector<8x1xf32>
    %153 = vector.broadcast %145 : vector<8x1xf32> to vector<8x32xf32>
    %154 = arith.subf %137, %153 : vector<8x32xf32>
    %cst_54 = arith.constant 9.99999974E-6 : f32
    %155 = vector.broadcast %cst_54 : f32 to vector<8x1xf32>
    %156 = arith.addf %152, %155 : vector<8x1xf32>
    %157 = math.rsqrt %156 : vector<8x1xf32>
    %158 = vector.broadcast %157 : vector<8x1xf32> to vector<8x32xf32>
    %159 = arith.mulf %154, %158 : vector<8x32xf32>
    %160 = vector.broadcast %139 : vector<1x32xf32> to vector<8x32xf32>
    %161 = arith.mulf %159, %160 : vector<8x32xf32>
    %162 = vector.broadcast %141 : vector<1x32xf32> to vector<8x32xf32>
    %163 = arith.addf %161, %162 : vector<8x32xf32>
    %164 = arith.truncf %163 : vector<8x32xf32> to vector<8x32xbf16>
    %c0_55 = arith.constant 0 : index
    %c0_56 = arith.constant 0 : index
    %c0_57 = arith.constant 0 : index
    %165 = vector.load %arg7[%c0_55, %c0_56, %c0_57] : memref<2x32x64xbf16, #tpu.memory_space<vmem>>, vector<1x32x64xbf16>
    %166 = vector.shape_cast %165 : vector<1x32x64xbf16> to vector<32x64xbf16>
    %cst_58 = arith.constant dense<0.000000e+00> : vector<8x64xf32>
    %167 = tpu.matmul %164, %166, %cst_58 {dimension_numbers = #tpu.dot_dimension_numbers<[1], [0], [0], [1], [0, 0, 1, 1], [], []>} : vector<8x32xbf16>, vector<32x64xbf16>, vector<8x64xf32> -> vector<8x64xf32>
    %c0_59 = arith.constant 0 : index
    %c0_60 = arith.constant 0 : index
    %c0_61 = arith.constant 0 : index
    %168 = vector.load %arg8[%c0_59, %c0_60, %c0_61] : memref<2x1x64xf32, #tpu.memory_space<vmem>>, vector<1x1x64xf32>
    %169 = vector.shape_cast %168 : vector<1x1x64xf32> to vector<1x64xf32>
    %170 = vector.broadcast %169 : vector<1x64xf32> to vector<8x64xf32>
    %171 = arith.addf %167, %170 : vector<8x64xf32>
    %cst_62 = arith.constant 0.000000e+00 : f32
    %172 = vector.broadcast %cst_62 : f32 to vector<8x64xf32>
    %173 = arith.maximumf %171, %172 : vector<8x64xf32>
    %174 = arith.truncf %173 : vector<8x64xf32> to vector<8x64xbf16>
    %c0_63 = arith.constant 0 : index
    %c0_64 = arith.constant 0 : index
    %c0_65 = arith.constant 0 : index
    %175 = vector.load %arg9[%c0_63, %c0_64, %c0_65] : memref<2x64x32xbf16, #tpu.memory_space<vmem>>, vector<1x64x32xbf16>
    %176 = vector.shape_cast %175 : vector<1x64x32xbf16> to vector<64x32xbf16>
    %cst_66 = arith.constant dense<0.000000e+00> : vector<8x32xf32>
    %177 = tpu.matmul %174, %176, %cst_66 {dimension_numbers = #tpu.dot_dimension_numbers<[1], [0], [0], [1], [0, 0, 1, 1], [], []>} : vector<8x64xbf16>, vector<64x32xbf16>, vector<8x32xf32> -> vector<8x32xf32>
    %c0_67 = arith.constant 0 : index
    %c0_68 = arith.constant 0 : index
    %c0_69 = arith.constant 0 : index
    %178 = vector.load %arg10[%c0_67, %c0_68, %c0_69] : memref<2x1x32xf32, #tpu.memory_space<vmem>>, vector<1x1x32xf32>
    %179 = vector.shape_cast %178 : vector<1x1x32xf32> to vector<1x32xf32>
    %180 = vector.broadcast %179 : vector<1x32xf32> to vector<8x32xf32>
    %181 = arith.addf %177, %180 : vector<8x32xf32>
    %182 = arith.addf %163, %181 : vector<8x32xf32>
    %c0_70 = arith.constant 0 : index
    %c0_71 = arith.constant 0 : index
    %c0_72 = arith.constant 0 : index
    %183 = vector.load %arg11[%c0_70, %c0_71, %c0_72] : memref<2x1x32xf32, #tpu.memory_space<vmem>>, vector<1x1x32xf32>
    %184 = vector.shape_cast %183 : vector<1x1x32xf32> to vector<1x32xf32>
    %c0_73 = arith.constant 0 : index
    %c0_74 = arith.constant 0 : index
    %c0_75 = arith.constant 0 : index
    %185 = vector.load %arg12[%c0_73, %c0_74, %c0_75] : memref<2x1x32xf32, #tpu.memory_space<vmem>>, vector<1x1x32xf32>
    %186 = vector.shape_cast %185 : vector<1x1x32xf32> to vector<1x32xf32>
    %cst_76 = arith.constant dense<0.000000e+00> : vector<8xf32>
    %187 = vector.multi_reduction <add>, %182, %cst_76 [1] : vector<8x32xf32> to vector<8xf32>
    %188 = vector.shape_cast %187 : vector<8xf32> to vector<8x1xf32>
    %cst_77 = arith.constant 3.200000e+01 : f32
    %189 = vector.broadcast %cst_77 : f32 to vector<8x1xf32>
    %190 = arith.divf %188, %189 : vector<8x1xf32>
    %191 = arith.mulf %182, %182 : vector<8x32xf32>
    %cst_78 = arith.constant dense<0.000000e+00> : vector<8xf32>
    %192 = vector.multi_reduction <add>, %191, %cst_78 [1] : vector<8x32xf32> to vector<8xf32>
    %193 = vector.shape_cast %192 : vector<8xf32> to vector<8x1xf32>
    %cst_79 = arith.constant 3.200000e+01 : f32
    %194 = vector.broadcast %cst_79 : f32 to vector<8x1xf32>
    %195 = arith.divf %193, %194 : vector<8x1xf32>
    %196 = arith.mulf %190, %190 : vector<8x1xf32>
    %197 = arith.subf %195, %196 : vector<8x1xf32>
    %198 = vector.broadcast %190 : vector<8x1xf32> to vector<8x32xf32>
    %199 = arith.subf %182, %198 : vector<8x32xf32>
    %cst_80 = arith.constant 9.99999974E-6 : f32
    %200 = vector.broadcast %cst_80 : f32 to vector<8x1xf32>
    %201 = arith.addf %197, %200 : vector<8x1xf32>
    %202 = math.rsqrt %201 : vector<8x1xf32>
    %203 = vector.broadcast %202 : vector<8x1xf32> to vector<8x32xf32>
    %204 = arith.mulf %199, %203 : vector<8x32xf32>
    %205 = vector.broadcast %184 : vector<1x32xf32> to vector<8x32xf32>
    %206 = arith.mulf %204, %205 : vector<8x32xf32>
    %207 = vector.broadcast %186 : vector<1x32xf32> to vector<8x32xf32>
    %208 = arith.addf %206, %207 : vector<8x32xf32>
    %209 = arith.truncf %208 : vector<8x32xf32> to vector<8x32xbf16>
    %c1 = arith.constant 1 : index
    %c0_81 = arith.constant 0 : index
    %c0_82 = arith.constant 0 : index
    %210 = vector.load %arg3[%c1, %c0_81, %c0_82] : memref<2x32x96xbf16, #tpu.memory_space<vmem>>, vector<1x32x96xbf16>
    %211 = vector.shape_cast %210 : vector<1x32x96xbf16> to vector<32x96xbf16>
    %cst_83 = arith.constant dense<0.000000e+00> : vector<8x96xf32>
    %212 = tpu.matmul %209, %211, %cst_83 {dimension_numbers = #tpu.dot_dimension_numbers<[1], [0], [0], [1], [0, 0, 1, 1], [], []>} : vector<8x32xbf16>, vector<32x96xbf16>, vector<8x96xf32> -> vector<8x96xf32>
    %213 = vector.extract_strided_slice %212 {offsets = [0, 0], sizes = [8, 8], strides = [1, 1]} : vector<8x96xf32> to vector<8x8xf32>
    %214 = vector.shape_cast %213 : vector<8x8xf32> to vector<1x8x8xf32>
    %215 = arith.truncf %214 : vector<1x8x8xf32> to vector<1x8x8xbf16>
    %216 = vector.extract_strided_slice %212 {offsets = [0, 32], sizes = [8, 8], strides = [1, 1]} : vector<8x96xf32> to vector<8x8xf32>
    %217 = vector.shape_cast %216 : vector<8x8xf32> to vector<1x8x8xf32>
    %218 = arith.truncf %217 : vector<1x8x8xf32> to vector<1x8x8xbf16>
    %219 = vector.extract_strided_slice %212 {offsets = [0, 64], sizes = [8, 8], strides = [1, 1]} : vector<8x96xf32> to vector<8x8xf32>
    %220 = vector.shape_cast %219 : vector<8x8xf32> to vector<1x8x8xf32>
    %221 = arith.truncf %220 : vector<1x8x8xf32> to vector<1x8x8xbf16>
    "tpu.trace_start"() <{level = 10 : i32, message = "bqd,bkd->bqk"}> : () -> ()
    %cst_84 = arith.constant dense<0.000000e+00> : vector<1x8x8xf32>
    %222 = tpu.matmul %215, %218, %cst_84 {dimension_numbers = #tpu.dot_dimension_numbers<[2], [2], [1], [1], [0, 0, 0, 1, 1, 1], [0], [0]>} : vector<1x8x8xbf16>, vector<1x8x8xbf16>, vector<1x8x8xf32> -> vector<1x8x8xf32>
    "tpu.trace_stop"() : () -> ()
    %cst_85 = arith.constant 0.353553385 : f32
    %223 = vector.broadcast %cst_85 : f32 to vector<1x8x8xf32>
    %224 = arith.mulf %222, %223 : vector<1x8x8xf32>
    %cst_86 = arith.constant -1.000000e+06 : f32
    %225 = vector.shape_cast %2 : vector<1x1x8xi1> to vector<1x1x8xi1>
    %226 = vector.broadcast %225 : vector<1x1x8xi1> to vector<1x8x8xi1>
    %227 = vector.broadcast %cst_86 : f32 to vector<1x8x8xf32>
    %228 = arith.select %226, %224, %227 : vector<1x8x8xi1>, vector<1x8x8xf32>
    %cst_87 = arith.constant dense<0xFF800000> : vector<1x8xf32>
    %229 = vector.multi_reduction <maximumf>, %228, %cst_87 [2] : vector<1x8x8xf32> to vector<1x8xf32>
    %230 = vector.shape_cast %229 : vector<1x8xf32> to vector<1x8x1xf32>
    %231 = vector.broadcast %230 : vector<1x8x1xf32> to vector<1x8x8xf32>
    %232 = arith.subf %228, %231 : vector<1x8x8xf32>
    %233 = math.exp %232 : vector<1x8x8xf32>
    %cst_88 = arith.constant dense<0.000000e+00> : vector<1x8xf32>
    %234 = vector.multi_reduction <add>, %233, %cst_88 [2] : vector<1x8x8xf32> to vector<1x8xf32>
    %235 = vector.shape_cast %234 : vector<1x8xf32> to vector<1x8x1xf32>
    %236 = tpu.reciprocal %235 {approx = true} : vector<1x8x1xf32> -> vector<1x8x1xf32>
    %237 = vector.broadcast %236 : vector<1x8x1xf32> to vector<1x8x8xf32>
    %238 = arith.mulf %233, %237 : vector<1x8x8xf32>
    %239 = arith.truncf %238 : vector<1x8x8xf32> to vector<1x8x8xbf16>
    "tpu.trace_start"() <{level = 10 : i32, message = "bqk,bkd->bqd"}> : () -> ()
    %cst_89 = arith.constant dense<0.000000e+00> : vector<1x8x8xf32>
    %240 = tpu.matmul %239, %221, %cst_89 {dimension_numbers = #tpu.dot_dimension_numbers<[2], [1], [1], [2], [0, 0, 0, 1, 1, 2], [0], [0]>} : vector<1x8x8xbf16>, vector<1x8x8xbf16>, vector<1x8x8xf32> -> vector<1x8x8xf32>
    "tpu.trace_stop"() : () -> ()
    %241 = vector.shape_cast %240 : vector<1x8x8xf32> to vector<8x8xf32>
    %242 = arith.truncf %241 : vector<8x8xf32> to vector<8x8xbf16>
    %c0_90 = arith.constant 0 : index
    %c0_91 = arith.constant 0 : index
    %243 = vector.load %arg14[%c0_90, %c0_91] : memref<8x32xbf16, #tpu.memory_space<vmem>>, vector<8x8xbf16>
    tpu.vector_store %arg14[%c0_90, %c0_91], %242 {strides = array<i32>} : memref<8x32xbf16, #tpu.memory_space<vmem>>, vector<8x8xbf16>,
    %244 = vector.extract_strided_slice %212 {offsets = [0, 8], sizes = [8, 8], strides = [1, 1]} : vector<8x96xf32> to vector<8x8xf32>
    %245 = vector.shape_cast %244 : vector<8x8xf32> to vector<1x8x8xf32>
    %246 = arith.truncf %245 : vector<1x8x8xf32> to vector<1x8x8xbf16>
    %247 = vector.extract_strided_slice %212 {offsets = [0, 40], sizes = [8, 8], strides = [1, 1]} : vector<8x96xf32> to vector<8x8xf32>
    %248 = vector.shape_cast %247 : vector<8x8xf32> to vector<1x8x8xf32>
    %249 = arith.truncf %248 : vector<1x8x8xf32> to vector<1x8x8xbf16>
    %250 = vector.extract_strided_slice %212 {offsets = [0, 72], sizes = [8, 8], strides = [1, 1]} : vector<8x96xf32> to vector<8x8xf32>
    %251 = vector.shape_cast %250 : vector<8x8xf32> to vector<1x8x8xf32>
    %252 = arith.truncf %251 : vector<1x8x8xf32> to vector<1x8x8xbf16>
    "tpu.trace_start"() <{level = 10 : i32, message = "bqd,bkd->bqk"}> : () -> ()
    %cst_92 = arith.constant dense<0.000000e+00> : vector<1x8x8xf32>
    %253 = tpu.matmul %246, %249, %cst_92 {dimension_numbers = #tpu.dot_dimension_numbers<[2], [2], [1], [1], [0, 0, 0, 1, 1, 1], [0], [0]>} : vector<1x8x8xbf16>, vector<1x8x8xbf16>, vector<1x8x8xf32> -> vector<1x8x8xf32>
    "tpu.trace_stop"() : () -> ()
    %cst_93 = arith.constant 0.353553385 : f32
    %254 = vector.broadcast %cst_93 : f32 to vector<1x8x8xf32>
    %255 = arith.mulf %253, %254 : vector<1x8x8xf32>
    %cst_94 = arith.constant -1.000000e+06 : f32
    %256 = vector.shape_cast %2 : vector<1x1x8xi1> to vector<1x1x8xi1>
    %257 = vector.broadcast %256 : vector<1x1x8xi1> to vector<1x8x8xi1>
    %258 = vector.broadcast %cst_94 : f32 to vector<1x8x8xf32>
    %259 = arith.select %257, %255, %258 : vector<1x8x8xi1>, vector<1x8x8xf32>
    %cst_95 = arith.constant dense<0xFF800000> : vector<1x8xf32>
    %260 = vector.multi_reduction <maximumf>, %259, %cst_95 [2] : vector<1x8x8xf32> to vector<1x8xf32>
    %261 = vector.shape_cast %260 : vector<1x8xf32> to vector<1x8x1xf32>
    %262 = vector.broadcast %261 : vector<1x8x1xf32> to vector<1x8x8xf32>
    %263 = arith.subf %259, %262 : vector<1x8x8xf32>
    %264 = math.exp %263 : vector<1x8x8xf32>
    %cst_96 = arith.constant dense<0.000000e+00> : vector<1x8xf32>
    %265 = vector.multi_reduction <add>, %264, %cst_96 [2] : vector<1x8x8xf32> to vector<1x8xf32>
    %266 = vector.shape_cast %265 : vector<1x8xf32> to vector<1x8x1xf32>
    %267 = tpu.reciprocal %266 {approx = true} : vector<1x8x1xf32> -> vector<1x8x1xf32>
    %268 = vector.broadcast %267 : vector<1x8x1xf32> to vector<1x8x8xf32>
    %269 = arith.mulf %264, %268 : vector<1x8x8xf32>
    %270 = arith.truncf %269 : vector<1x8x8xf32> to vector<1x8x8xbf16>
    "tpu.trace_start"() <{level = 10 : i32, message = "bqk,bkd->bqd"}> : () -> ()
    %cst_97 = arith.constant dense<0.000000e+00> : vector<1x8x8xf32>
    %271 = tpu.matmul %270, %252, %cst_97 {dimension_numbers = #tpu.dot_dimension_numbers<[2], [1], [1], [2], [0, 0, 0, 1, 1, 2], [0], [0]>} : vector<1x8x8xbf16>, vector<1x8x8xbf16>, vector<1x8x8xf32> -> vector<1x8x8xf32>
    "tpu.trace_stop"() : () -> ()
    %272 = vector.shape_cast %271 : vector<1x8x8xf32> to vector<8x8xf32>
    %273 = arith.truncf %272 : vector<8x8xf32> to vector<8x8xbf16>
    %c0_98 = arith.constant 0 : index
    %c8_99 = arith.constant 8 : index
    %274 = vector.load %arg14[%c0_98, %c8_99] : memref<8x32xbf16, #tpu.memory_space<vmem>>, vector<8x8xbf16>
    tpu.vector_store %arg14[%c0_98, %c8_99], %273 {strides = array<i32>} : memref<8x32xbf16, #tpu.memory_space<vmem>>, vector<8x8xbf16>,
    %275 = vector.extract_strided_slice %212 {offsets = [0, 16], sizes = [8, 8], strides = [1, 1]} : vector<8x96xf32> to vector<8x8xf32>
    %276 = vector.shape_cast %275 : vector<8x8xf32> to vector<1x8x8xf32>
    %277 = arith.truncf %276 : vector<1x8x8xf32> to vector<1x8x8xbf16>
    %278 = vector.extract_strided_slice %212 {offsets = [0, 48], sizes = [8, 8], strides = [1, 1]} : vector<8x96xf32> to vector<8x8xf32>
    %279 = vector.shape_cast %278 : vector<8x8xf32> to vector<1x8x8xf32>
    %280 = arith.truncf %279 : vector<1x8x8xf32> to vector<1x8x8xbf16>
    %281 = vector.extract_strided_slice %212 {offsets = [0, 80], sizes = [8, 8], strides = [1, 1]} : vector<8x96xf32> to vector<8x8xf32>
    %282 = vector.shape_cast %281 : vector<8x8xf32> to vector<1x8x8xf32>
    %283 = arith.truncf %282 : vector<1x8x8xf32> to vector<1x8x8xbf16>
    "tpu.trace_start"() <{level = 10 : i32, message = "bqd,bkd->bqk"}> : () -> ()
    %cst_100 = arith.constant dense<0.000000e+00> : vector<1x8x8xf32>
    %284 = tpu.matmul %277, %280, %cst_100 {dimension_numbers = #tpu.dot_dimension_numbers<[2], [2], [1], [1], [0, 0, 0, 1, 1, 1], [0], [0]>} : vector<1x8x8xbf16>, vector<1x8x8xbf16>, vector<1x8x8xf32> -> vector<1x8x8xf32>
    "tpu.trace_stop"() : () -> ()
    %cst_101 = arith.constant 0.353553385 : f32
    %285 = vector.broadcast %cst_101 : f32 to vector<1x8x8xf32>
    %286 = arith.mulf %284, %285 : vector<1x8x8xf32>
    %cst_102 = arith.constant -1.000000e+06 : f32
    %287 = vector.shape_cast %2 : vector<1x1x8xi1> to vector<1x1x8xi1>
    %288 = vector.broadcast %287 : vector<1x1x8xi1> to vector<1x8x8xi1>
    %289 = vector.broadcast %cst_102 : f32 to vector<1x8x8xf32>
    %290 = arith.select %288, %286, %289 : vector<1x8x8xi1>, vector<1x8x8xf32>
    %cst_103 = arith.constant dense<0xFF800000> : vector<1x8xf32>
    %291 = vector.multi_reduction <maximumf>, %290, %cst_103 [2] : vector<1x8x8xf32> to vector<1x8xf32>
    %292 = vector.shape_cast %291 : vector<1x8xf32> to vector<1x8x1xf32>
    %293 = vector.broadcast %292 : vector<1x8x1xf32> to vector<1x8x8xf32>
    %294 = arith.subf %290, %293 : vector<1x8x8xf32>
    %295 = math.exp %294 : vector<1x8x8xf32>
    %cst_104 = arith.constant dense<0.000000e+00> : vector<1x8xf32>
    %296 = vector.multi_reduction <add>, %295, %cst_104 [2] : vector<1x8x8xf32> to vector<1x8xf32>
    %297 = vector.shape_cast %296 : vector<1x8xf32> to vector<1x8x1xf32>
    %298 = tpu.reciprocal %297 {approx = true} : vector<1x8x1xf32> -> vector<1x8x1xf32>
    %299 = vector.broadcast %298 : vector<1x8x1xf32> to vector<1x8x8xf32>
    %300 = arith.mulf %295, %299 : vector<1x8x8xf32>
    %301 = arith.truncf %300 : vector<1x8x8xf32> to vector<1x8x8xbf16>
    "tpu.trace_start"() <{level = 10 : i32, message = "bqk,bkd->bqd"}> : () -> ()
    %cst_105 = arith.constant dense<0.000000e+00> : vector<1x8x8xf32>
    %302 = tpu.matmul %301, %283, %cst_105 {dimension_numbers = #tpu.dot_dimension_numbers<[2], [1], [1], [2], [0, 0, 0, 1, 1, 2], [0], [0]>} : vector<1x8x8xbf16>, vector<1x8x8xbf16>, vector<1x8x8xf32> -> vector<1x8x8xf32>
    "tpu.trace_stop"() : () -> ()
    %303 = vector.shape_cast %302 : vector<1x8x8xf32> to vector<8x8xf32>
    %304 = arith.truncf %303 : vector<8x8xf32> to vector<8x8xbf16>
    %c0_106 = arith.constant 0 : index
    %c16_107 = arith.constant 16 : index
    %305 = vector.load %arg14[%c0_106, %c16_107] : memref<8x32xbf16, #tpu.memory_space<vmem>>, vector<8x8xbf16>
    tpu.vector_store %arg14[%c0_106, %c16_107], %304 {strides = array<i32>} : memref<8x32xbf16, #tpu.memory_space<vmem>>, vector<8x8xbf16>,
    %306 = vector.extract_strided_slice %212 {offsets = [0, 24], sizes = [8, 8], strides = [1, 1]} : vector<8x96xf32> to vector<8x8xf32>
    %307 = vector.shape_cast %306 : vector<8x8xf32> to vector<1x8x8xf32>
    %308 = arith.truncf %307 : vector<1x8x8xf32> to vector<1x8x8xbf16>
    %309 = vector.extract_strided_slice %212 {offsets = [0, 56], sizes = [8, 8], strides = [1, 1]} : vector<8x96xf32> to vector<8x8xf32>
    %310 = vector.shape_cast %309 : vector<8x8xf32> to vector<1x8x8xf32>
    %311 = arith.truncf %310 : vector<1x8x8xf32> to vector<1x8x8xbf16>
    %312 = vector.extract_strided_slice %212 {offsets = [0, 88], sizes = [8, 8], strides = [1, 1]} : vector<8x96xf32> to vector<8x8xf32>
    %313 = vector.shape_cast %312 : vector<8x8xf32> to vector<1x8x8xf32>
    %314 = arith.truncf %313 : vector<1x8x8xf32> to vector<1x8x8xbf16>
    "tpu.trace_start"() <{level = 10 : i32, message = "bqd,bkd->bqk"}> : () -> ()
    %cst_108 = arith.constant dense<0.000000e+00> : vector<1x8x8xf32>
    %315 = tpu.matmul %308, %311, %cst_108 {dimension_numbers = #tpu.dot_dimension_numbers<[2], [2], [1], [1], [0, 0, 0, 1, 1, 1], [0], [0]>} : vector<1x8x8xbf16>, vector<1x8x8xbf16>, vector<1x8x8xf32> -> vector<1x8x8xf32>
    "tpu.trace_stop"() : () -> ()
    %cst_109 = arith.constant 0.353553385 : f32
    %316 = vector.broadcast %cst_109 : f32 to vector<1x8x8xf32>
    %317 = arith.mulf %315, %316 : vector<1x8x8xf32>
    %cst_110 = arith.constant -1.000000e+06 : f32
    %318 = vector.shape_cast %2 : vector<1x1x8xi1> to vector<1x1x8xi1>
    %319 = vector.broadcast %318 : vector<1x1x8xi1> to vector<1x8x8xi1>
    %320 = vector.broadcast %cst_110 : f32 to vector<1x8x8xf32>
    %321 = arith.select %319, %317, %320 : vector<1x8x8xi1>, vector<1x8x8xf32>
    %cst_111 = arith.constant dense<0xFF800000> : vector<1x8xf32>
    %322 = vector.multi_reduction <maximumf>, %321, %cst_111 [2] : vector<1x8x8xf32> to vector<1x8xf32>
    %323 = vector.shape_cast %322 : vector<1x8xf32> to vector<1x8x1xf32>
    %324 = vector.broadcast %323 : vector<1x8x1xf32> to vector<1x8x8xf32>
    %325 = arith.subf %321, %324 : vector<1x8x8xf32>
    %326 = math.exp %325 : vector<1x8x8xf32>
    %cst_112 = arith.constant dense<0.000000e+00> : vector<1x8xf32>
    %327 = vector.multi_reduction <add>, %326, %cst_112 [2] : vector<1x8x8xf32> to vector<1x8xf32>
    %328 = vector.shape_cast %327 : vector<1x8xf32> to vector<1x8x1xf32>
    %329 = tpu.reciprocal %328 {approx = true} : vector<1x8x1xf32> -> vector<1x8x1xf32>
    %330 = vector.broadcast %329 : vector<1x8x1xf32> to vector<1x8x8xf32>
    %331 = arith.mulf %326, %330 : vector<1x8x8xf32>
    %332 = arith.truncf %331 : vector<1x8x8xf32> to vector<1x8x8xbf16>
    "tpu.trace_start"() <{level = 10 : i32, message = "bqk,bkd->bqd"}> : () -> ()
    %cst_113 = arith.constant dense<0.000000e+00> : vector<1x8x8xf32>
    %333 = tpu.matmul %332, %314, %cst_113 {dimension_numbers = #tpu.dot_dimension_numbers<[2], [1], [1], [2], [0, 0, 0, 1, 1, 2], [0], [0]>} : vector<1x8x8xbf16>, vector<1x8x8xbf16>, vector<1x8x8xf32> -> vector<1x8x8xf32>
    "tpu.trace_stop"() : () -> ()
    %334 = vector.shape_cast %333 : vector<1x8x8xf32> to vector<8x8xf32>
    %335 = arith.truncf %334 : vector<8x8xf32> to vector<8x8xbf16>
    %c0_114 = arith.constant 0 : index
    %c24_115 = arith.constant 24 : index
    %336 = vector.load %arg14[%c0_114, %c24_115] : memref<8x32xbf16, #tpu.memory_space<vmem>>, vector<8x8xbf16>
    tpu.vector_store %arg14[%c0_114, %c24_115], %335 {strides = array<i32>} : memref<8x32xbf16, #tpu.memory_space<vmem>>, vector<8x8xbf16>,
    %c0_116 = arith.constant 0 : index
    %c0_117 = arith.constant 0 : index
    %337 = vector.load %arg14[%c0_116, %c0_117] : memref<8x32xbf16, #tpu.memory_space<vmem>>, vector<8x32xbf16>
    %c1_118 = arith.constant 1 : index
    %c0_119 = arith.constant 0 : index
    %c0_120 = arith.constant 0 : index
    %338 = vector.load %arg4[%c1_118, %c0_119, %c0_120] : memref<2x32x32xbf16, #tpu.memory_space<vmem>>, vector<1x32x32xbf16>
    %339 = vector.shape_cast %338 : vector<1x32x32xbf16> to vector<32x32xbf16>
    %cst_121 = arith.constant dense<0.000000e+00> : vector<8x32xf32>
    %340 = tpu.matmul %337, %339, %cst_121 {dimension_numbers = #tpu.dot_dimension_numbers<[1], [0], [0], [1], [0, 0, 1, 1], [], []>} : vector<8x32xbf16>, vector<32x32xbf16>, vector<8x32xf32> -> vector<8x32xf32>
    %341 = arith.addf %208, %340 : vector<8x32xf32>
    %c1_122 = arith.constant 1 : index
    %c0_123 = arith.constant 0 : index
    %c0_124 = arith.constant 0 : index
    %342 = vector.load %arg5[%c1_122, %c0_123, %c0_124] : memref<2x1x32xf32, #tpu.memory_space<vmem>>, vector<1x1x32xf32>
    %343 = vector.shape_cast %342 : vector<1x1x32xf32> to vector<1x32xf32>
    %c1_125 = arith.constant 1 : index
    %c0_126 = arith.constant 0 : index
    %c0_127 = arith.constant 0 : index
    %344 = vector.load %arg6[%c1_125, %c0_126, %c0_127] : memref<2x1x32xf32, #tpu.memory_space<vmem>>, vector<1x1x32xf32>
    %345 = vector.shape_cast %344 : vector<1x1x32xf32> to vector<1x32xf32>
    %cst_128 = arith.constant dense<0.000000e+00> : vector<8xf32>
    %346 = vector.multi_reduction <add>, %341, %cst_128 [1] : vector<8x32xf32> to vector<8xf32>
    %347 = vector.shape_cast %346 : vector<8xf32> to vector<8x1xf32>
    %cst_129 = arith.constant 3.200000e+01 : f32
    %348 = vector.broadcast %cst_129 : f32 to vector<8x1xf32>
    %349 = arith.divf %347, %348 : vector<8x1xf32>
    %350 = arith.mulf %341, %341 : vector<8x32xf32>
    %cst_130 = arith.constant dense<0.000000e+00> : vector<8xf32>
    %351 = vector.multi_reduction <add>, %350, %cst_130 [1] : vector<8x32xf32> to vector<8xf32>
    %352 = vector.shape_cast %351 : vector<8xf32> to vector<8x1xf32>
    %cst_131 = arith.constant 3.200000e+01 : f32
    %353 = vector.broadcast %cst_131 : f32 to vector<8x1xf32>
    %354 = arith.divf %352, %353 : vector<8x1xf32>
    %355 = arith.mulf %349, %349 : vector<8x1xf32>
    %356 = arith.subf %354, %355 : vector<8x1xf32>
    %357 = vector.broadcast %349 : vector<8x1xf32> to vector<8x32xf32>
    %358 = arith.subf %341, %357 : vector<8x32xf32>
    %cst_132 = arith.constant 9.99999974E-6 : f32
    %359 = vector.broadcast %cst_132 : f32 to vector<8x1xf32>
    %360 = arith.addf %356, %359 : vector<8x1xf32>
    %361 = math.rsqrt %360 : vector<8x1xf32>
    %362 = vector.broadcast %361 : vector<8x1xf32> to vector<8x32xf32>
    %363 = arith.mulf %358, %362 : vector<8x32xf32>
    %364 = vector.broadcast %343 : vector<1x32xf32> to vector<8x32xf32>
    %365 = arith.mulf %363, %364 : vector<8x32xf32>
    %366 = vector.broadcast %345 : vector<1x32xf32> to vector<8x32xf32>
    %367 = arith.addf %365, %366 : vector<8x32xf32>
    %368 = arith.truncf %367 : vector<8x32xf32> to vector<8x32xbf16>
    %c1_133 = arith.constant 1 : index
    %c0_134 = arith.constant 0 : index
    %c0_135 = arith.constant 0 : index
    %369 = vector.load %arg7[%c1_133, %c0_134, %c0_135] : memref<2x32x64xbf16, #tpu.memory_space<vmem>>, vector<1x32x64xbf16>
    %370 = vector.shape_cast %369 : vector<1x32x64xbf16> to vector<32x64xbf16>
    %cst_136 = arith.constant dense<0.000000e+00> : vector<8x64xf32>
    %371 = tpu.matmul %368, %370, %cst_136 {dimension_numbers = #tpu.dot_dimension_numbers<[1], [0], [0], [1], [0, 0, 1, 1], [], []>} : vector<8x32xbf16>, vector<32x64xbf16>, vector<8x64xf32> -> vector<8x64xf32>
    %c1_137 = arith.constant 1 : index
    %c0_138 = arith.constant 0 : index
    %c0_139 = arith.constant 0 : index
    %372 = vector.load %arg8[%c1_137, %c0_138, %c0_139] : memref<2x1x64xf32, #tpu.memory_space<vmem>>, vector<1x1x64xf32>
    %373 = vector.shape_cast %372 : vector<1x1x64xf32> to vector<1x64xf32>
    %374 = vector.broadcast %373 : vector<1x64xf32> to vector<8x64xf32>
    %375 = arith.addf %371, %374 : vector<8x64xf32>
    %cst_140 = arith.constant 0.000000e+00 : f32
    %376 = vector.broadcast %cst_140 : f32 to vector<8x64xf32>
    %377 = arith.maximumf %375, %376 : vector<8x64xf32>
    %378 = arith.truncf %377 : vector<8x64xf32> to vector<8x64xbf16>
    %c1_141 = arith.constant 1 : index
    %c0_142 = arith.constant 0 : index
    %c0_143 = arith.constant 0 : index
    %379 = vector.load %arg9[%c1_141, %c0_142, %c0_143] : memref<2x64x32xbf16, #tpu.memory_space<vmem>>, vector<1x64x32xbf16>
    %380 = vector.shape_cast %379 : vector<1x64x32xbf16> to vector<64x32xbf16>
    %cst_144 = arith.constant dense<0.000000e+00> : vector<8x32xf32>
    %381 = tpu.matmul %378, %380, %cst_144 {dimension_numbers = #tpu.dot_dimension_numbers<[1], [0], [0], [1], [0, 0, 1, 1], [], []>} : vector<8x64xbf16>, vector<64x32xbf16>, vector<8x32xf32> -> vector<8x32xf32>
    %c1_145 = arith.constant 1 : index
    %c0_146 = arith.constant 0 : index
    %c0_147 = arith.constant 0 : index
    %382 = vector.load %arg10[%c1_145, %c0_146, %c0_147] : memref<2x1x32xf32, #tpu.memory_space<vmem>>, vector<1x1x32xf32>
    %383 = vector.shape_cast %382 : vector<1x1x32xf32> to vector<1x32xf32>
    %384 = vector.broadcast %383 : vector<1x32xf32> to vector<8x32xf32>
    %385 = arith.addf %381, %384 : vector<8x32xf32>
    %386 = arith.addf %367, %385 : vector<8x32xf32>
    %c1_148 = arith.constant 1 : index
    %c0_149 = arith.constant 0 : index
    %c0_150 = arith.constant 0 : index
    %387 = vector.load %arg11[%c1_148, %c0_149, %c0_150] : memref<2x1x32xf32, #tpu.memory_space<vmem>>, vector<1x1x32xf32>
    %388 = vector.shape_cast %387 : vector<1x1x32xf32> to vector<1x32xf32>
    %c1_151 = arith.constant 1 : index
    %c0_152 = arith.constant 0 : index
    %c0_153 = arith.constant 0 : index
    %389 = vector.load %arg12[%c1_151, %c0_152, %c0_153] : memref<2x1x32xf32, #tpu.memory_space<vmem>>, vector<1x1x32xf32>
    %390 = vector.shape_cast %389 : vector<1x1x32xf32> to vector<1x32xf32>
    %cst_154 = arith.constant dense<0.000000e+00> : vector<8xf32>
    %391 = vector.multi_reduction <add>, %386, %cst_154 [1] : vector<8x32xf32> to vector<8xf32>
    %392 = vector.shape_cast %391 : vector<8xf32> to vector<8x1xf32>
    %cst_155 = arith.constant 3.200000e+01 : f32
    %393 = vector.broadcast %cst_155 : f32 to vector<8x1xf32>
    %394 = arith.divf %392, %393 : vector<8x1xf32>
    %395 = arith.mulf %386, %386 : vector<8x32xf32>
    %cst_156 = arith.constant dense<0.000000e+00> : vector<8xf32>
    %396 = vector.multi_reduction <add>, %395, %cst_156 [1] : vector<8x32xf32> to vector<8xf32>
    %397 = vector.shape_cast %396 : vector<8xf32> to vector<8x1xf32>
    %cst_157 = arith.constant 3.200000e+01 : f32
    %398 = vector.broadcast %cst_157 : f32 to vector<8x1xf32>
    %399 = arith.divf %397, %398 : vector<8x1xf32>
    %400 = arith.mulf %394, %394 : vector<8x1xf32>
    %401 = arith.subf %399, %400 : vector<8x1xf32>
    %402 = vector.broadcast %394 : vector<8x1xf32> to vector<8x32xf32>
    %403 = arith.subf %386, %402 : vector<8x32xf32>
    %cst_158 = arith.constant 9.99999974E-6 : f32
    %404 = vector.broadcast %cst_158 : f32 to vector<8x1xf32>
    %405 = arith.addf %401, %404 : vector<8x1xf32>
    %406 = math.rsqrt %405 : vector<8x1xf32>
    %407 = vector.broadcast %406 : vector<8x1xf32> to vector<8x32xf32>
    %408 = arith.mulf %403, %407 : vector<8x32xf32>
    %409 = vector.broadcast %388 : vector<1x32xf32> to vector<8x32xf32>
    %410 = arith.mulf %408, %409 : vector<8x32xf32>
    %411 = vector.broadcast %390 : vector<1x32xf32> to vector<8x32xf32>
    %412 = arith.addf %410, %411 : vector<8x32xf32>
    %413 = vector.shape_cast %412 : vector<8x32xf32> to vector<1x8x32xf32>
    %c0_159 = arith.constant 0 : index
    %c0_160 = arith.constant 0 : index
    %c0_161 = arith.constant 0 : index
    %414 = vector.load %arg13[%c0_159, %c0_160, %c0_161] : memref<1x8x32xf32, #tpu.memory_space<vmem>>, vector<1x8x32xf32>
    tpu.vector_store %arg13[%c0_159, %c0_160, %c0_161], %413 {strides = array<i32>} : memref<1x8x32xf32, #tpu.memory_space<vmem>>, vector<1x8x32xf32>,
    return
  }
  func.func @transform_0(%arg0: i32) -> (i32, i32, i32) {
    %c0_i32 = arith.constant 0 : i32
    %c0_i32_0 = arith.constant 0 : i32
    %c0_i32_1 = arith.constant 0 : i32
    return %arg0, %c0_i32, %c0_i32_0 : i32, i32, i32
  }
  func.func @transform_1(%arg0: i32) -> (i32, i32, i32) {
    %c0_i32 = arith.constant 0 : i32
    %c0_i32_0 = arith.constant 0 : i32
    %c0_i32_1 = arith.constant 0 : i32
    return %arg0, %c0_i32, %c0_i32_0 : i32, i32, i32
  }
  func.func @transform_2(%arg0: i32) -> (i32, i32, i32) {
    %c0_i32 = arith.constant 0 : i32
    %c0_i32_0 = arith.constant 0 : i32
    %c0_i32_1 = arith.constant 0 : i32
    %c0_i32_2 = arith.constant 0 : i32
    return %c0_i32, %c0_i32_0, %c0_i32_1 : i32, i32, i32
  }
  func.func @transform_3(%arg0: i32) -> (i32, i32, i32) {
    %c0_i32 = arith.constant 0 : i32
    %c0_i32_0 = arith.constant 0 : i32
    %c0_i32_1 = arith.constant 0 : i32
    %c0_i32_2 = arith.constant 0 : i32
    return %c0_i32, %c0_i32_0, %c0_i32_1 : i32, i32, i32
  }
  func.func @transform_4(%arg0: i32) -> (i32, i32, i32) {
    %c0_i32 = arith.constant 0 : i32
    %c0_i32_0 = arith.constant 0 : i32
    %c0_i32_1 = arith.constant 0 : i32
    %c0_i32_2 = arith.constant 0 : i32
    return %c0_i32, %c0_i32_0, %c0_i32_1 : i32, i32, i32
  }
  func.func @transform_5(%arg0: i32) -> (i32, i32, i32) {
    %c0_i32 = arith.constant 0 : i32
    %c0_i32_0 = arith.constant 0 : i32
    %c0_i32_1 = arith.constant 0 : i32
    %c0_i32_2 = arith.constant 0 : i32
    return %c0_i32, %c0_i32_0, %c0_i32_1 : i32, i32, i32
  }
  func.func @transform_6(%arg0: i32) -> (i32, i32, i32) {
    %c0_i32 = arith.constant 0 : i32
    %c0_i32_0 = arith.constant 0 : i32
    %c0_i32_1 = arith.constant 0 : i32
    %c0_i32_2 = arith.constant 0 : i32
    return %c0_i32, %c0_i32_0, %c0_i32_1 : i32, i32, i32
  }
  func.func @transform_7(%arg0: i32) -> (i32, i32, i32) {
    %c0_i32 = arith.constant 0 : i32
    %c0_i32_0 = arith.constant 0 : i32
    %c0_i32_1 = arith.constant 0 : i32
    %c0_i32_2 = arith.constant 0 : i32
    return %c0_i32, %c0_i32_0, %c0_i32_1 : i32, i32, i32
  }
  func.func @transform_8(%arg0: i32) -> (i32, i32, i32) {
    %c0_i32 = arith.constant 0 : i32
    %c0_i32_0 = arith.constant 0 : i32
    %c0_i32_1 = arith.constant 0 : i32
    %c0_i32_2 = arith.constant 0 : i32
    return %c0_i32, %c0_i32_0, %c0_i32_1 : i32, i32, i32
  }
  func.func @transform_9(%arg0: i32) -> (i32, i32, i32) {
    %c0_i32 = arith.constant 0 : i32
    %c0_i32_0 = arith.constant 0 : i32
    %c0_i32_1 = arith.constant 0 : i32
    %c0_i32_2 = arith.constant 0 : i32
    return %c0_i32, %c0_i32_0, %c0_i32_1 : i32, i32, i32
  }
  func.func @transform_10(%arg0: i32) -> (i32, i32, i32) {
    %c0_i32 = arith.constant 0 : i32
    %c0_i32_0 = arith.constant 0 : i32
    %c0_i32_1 = arith.constant 0 : i32
    %c0_i32_2 = arith.constant 0 : i32
    return %c0_i32, %c0_i32_0, %c0_i32_1 : i32, i32, i32
  }
  func.func @transform_11(%arg0: i32) -> (i32, i32, i32) {
    %c0_i32 = arith.constant 0 : i32
    %c0_i32_0 = arith.constant 0 : i32
    %c0_i32_1 = arith.constant 0 : i32
    %c0_i32_2 = arith.constant 0 : i32
    return %c0_i32, %c0_i32_0, %c0_i32_1 : i32, i32, i32
  }
  func.func @transform_12(%arg0: i32) -> (i32, i32, i32) {
    %c0_i32 = arith.constant 0 : i32
    %c0_i32_0 = arith.constant 0 : i32
    %c0_i32_1 = arith.constant 0 : i32
    return %arg0, %c0_i32, %c0_i32_0 : i32, i32, i32
  }
}

</mosaic_0001>

<bundles_post_ra>
// kernel: tpu_custom_call.1
= control target key start
LH: loop header
LB: loop body
LE: loop exit
PB: predicated region body
PF: predicated region fallthrough
CT: control target
= control target key end

     0   :  { %17 = vsyncpa [#allocation4], 0  ;;  %s3331_s0 = inlined_call_operand.hbm [shape: f32[2,8,32], index: 0, kind: input, shape index: {}]   ;;  %s3332_s1 = inlined_call_operand.vmem [shape: f32[2,1,8], index: 1, kind: input, shape index: {}]   ;;  %s3333_s2 = inlined_call_operand.vmem [shape: bf16[2,32,96], index: 2, kind: input, shape index: {}]   ;;  %s3334_s3 = inlined_call_operand.vmem [shape: bf16[2,32,32], index: 3, kind: input, shape index: {}]   ;;  %s3335_s4 = inlined_call_operand.vmem [shape: f32[2,1,32], index: 4, kind: input, shape index: {}]   ;;  %s3336_s5 = inlined_call_operand.vmem [shape: f32[2,1,32], index: 5, kind: input, shape index: {}]   ;;  %s3337_s6 = inlined_call_operand.vmem [shape: bf16[2,32,64], index: 6, kind: input, shape index: {}]   ;;  %s3338_s7 = inlined_call_operand.vmem [shape: f32[2,1,64], index: 7, kind: input, shape index: {}]   ;;  %s3339_s8 = inlined_call_operand.vmem [shape: bf16[2,64,32], index: 8, kind: input, shape index: {}]   ;;  %s3340_s9 = inlined_call_operand.vmem [shape: f32[2,1,32], index: 9, kind: input, shape index: {}]   ;;  %s3341_s10 = inlined_call_operand.vmem [shape: f32[2,1,32], index: 10, kind: input, shape index: {}]   ;;  %s3342_s11 = inlined_call_operand.vmem [shape: f32[2,1,32], index: 11, kind: input, shape index: {}]   ;;  %s3343_s12 = inlined_call_operand.hbm [shape: f32[2,8,32], index: 12, kind: output, shape index: {}]  }
   0x1   :  { %19 = vsyncpa [#allocation4 + $0x1], 0 }
   0x2   :  { %20 = vsyncpa [#allocation5], 0 }
   0x3   :  { %22 = vsyncpa [#allocation5 + $0x1], 0  ;;  %s2823_s21 = smov 0   ;;  %s2825_s22 = smov 0  }
   0x4   :  { %s2827_s23 = smov 0   ;;  %s2829_s24 = smov 0  }
   0x5 LB: > { %3360 = sst [smem:[#allocation9_spill]] %s2733_s23  ;;  %s2844_s25 = sadd.s32 4294967295, %s2737_s24   ;;  %s2737_s24 = sphi %s2829_s24, %s3385_s24   ;;  %s2733_s23 = sphi %s2827_s23, %s3387_s23   ;;  %s2729_s22 = sphi %s2825_s22, %s3389_s22   ;;  %s2725_s21 = sphi %s2823_s21, %s3388_s21  }
   0x6   : > { %s2184_s26 = sadd.s32 4294967294, %s2737_s24   ;;  %s2848_s27 = sadd.s32 1, %s2737_s24  }
   0x7   : > { %3361 = sst [smem:[#allocation10_spill]] %s2848_s27  ;;  %s35_s28 = sadd.s32 1, %s2733_s23 }
   0x8   : > { %s32_s29 = ssub.s32 %s2737_s24, %s2848_s27  ;;  %p42_p0 = scmp.ne.s32.totalorder %s2733_s23, %s2729_s22 }
   0x9   : > { %p33_p1 = scmp.eq.s32.totalorder %s32_s29, 0  ;;  %p43_p2 = scmp.eq.s32.totalorder %s2737_s24, 0 }
   0xa   : > { %p48_p3 = scmp.ne.s32.totalorder %s2729_s22, %s2725_s21  ;;  %p49_p4 = scmp.eq.s32.totalorder %s2844_s25, 0 }
   0xb   : > { %s2860_s30 = scalar_select %p33_p1, %s2733_s23, %s35_s28  }
   0xc   : > { %p2862_p5 = por %p43_p2, %p42_p0  ;;  %p2866_p6 = por %p49_p4, %p48_p3 }
   0xd   : > { %3362 = sst [smem:[#allocation11_spill]] %s2860_s30  ;;  %p308_p7 = scmp.eq.s32.totalorder %s2844_s25, 1 }
   0xe   : > { %p314_p8 = scmp.eq.s32.totalorder %s2184_s26, 1  ;;  %p2530_p10 = scmp.lt.s32.totalorder %s2737_s24, 2 }
   0xf   : > { %p2873_p11 = por %p308_p7, %p42_p0  ;;  %s364_s17 = sand.u32 1, %s2733_s23  }
  0x10   : > { %p2877_p12 = por %p314_p8, %p48_p3  ;;  %s2188_s18 = sshll.u32 %s2737_s24, 7 }
  0x11   : > { %s3365_s15 = scalar_select %p2873_p11, 1, 0 }
  0x12   : > { %s3366_s16 = scalar_select %p2877_p12, 1, 0 }
  0x13   : > { %s2187_s19 = sshll.u32 %s364_s17, 3  ;;  %s2886_s29 = scalar_lea.hbm %s3331_s0, %s2188_s18 }
  0x14   : > { %s368_s26 = scalar_lea.vmem [#allocation3], %s2187_s19  ;;  %p2890_p13 = pnand %p2530_p10, %p2862_p5 }
  0x15   : > { %s375_s30 = sshll.u32 %s368_s26, 4  ;;  %s365_s20 = scalar_lea.sflag [#allocation4], %s364_s17  ;;  %s2894_s30 = int_to_ptr.vmem [resolvable:$true] %s375_s30 }
  0x16   : > { %s2641_s18 = scalar_lea.hbm %s2886_s29, 128  ;;  %p2643_p3 = pneg %p2890_p13 }
  0x17   : > { %p2642_p2 = scmp.ne.s32.totalorder %s2886_s29, %s2641_s18  ;;  %s2646_s28 = scalar_lea.hbm %s3331_s0, 256 }
  0x18   : > { %p2647_p5 = scmp.lt.u32.totalorder %s2886_s29, %s3331_s0  ;;  %p2648_p8 = scmp.lt.u32.totalorder %s2646_s28, %s2641_s18 }
  0x19   : > { %p2644_p4 = pnand %p2643_p3, %p2642_p2  ;;  %p2650_p9 = scmp.lt.u32.totalorder %s2641_s18, %s2886_s29 }
  0x1a   : > { %p2649_p10 = por %p2648_p8, %p2647_p5 }
  0x1b   : > { %p2645_p7 = pneg %p2644_p4 }
  0x1c   : > { %p2651_p0 = por %p2650_p9, %p2649_p10 }
  0x1e   : > { %p2652_p1 = pnand %p2651_p0, %p2645_p7 }
  0x20   : > { %2655 = shalt.err (!%p2652_p1)
}
  0x21   : > { %s2656_s17 = scalar_lea.vmem %s2894_s30, 128  ;;  %s2739_s13 = smov [#allocation3]  }
  0x22   : > { %p2657_p2 = scmp.ne.s32.totalorder %s2894_s30, %s2656_s17  ;;  %s2661_s19 = sshll.u32 %s2739_s13, 4  ;;  %s2662_s19 = int_to_ptr.vmem [resolvable:$false] %s2661_s19 }
  0x23   : > { %s2663_s23 = scalar_lea.vmem %s2662_s19, 256  ;;  %p2664_p11 = scmp.lt.s32.totalorder %s2894_s30, %s2662_s19 }
  0x24   : > { %p2659_p4 = pnand %p2657_p2, %p2643_p3  ;;  %p2665_p5 = scmp.lt.s32.totalorder %s2663_s23, %s2656_s17 }
  0x26   : > { %p2660_p12 = pneg %p2659_p4  ;;  %p2666_p8 = por %p2665_p5, %p2664_p11 }
  0x28   : > { %p2667_p9 = pnand %p2666_p8, %p2660_p12 }
  0x2a   : > { %2670 = shalt.err (!%p2667_p9)
}
  0x2b   : > { %2525 = dma.hbm_to_vmem [thread:$0]  (!%p2890_p13), %s2886_s29, 128, %s2894_s30, %s365_s20  }
  0x2c   : > { %p3368_p0 = scmp.lt.s32.totalorder %s2737_s24, 3  ;;  %p3369_p1 = scmp.ge.s32.totalorder %s2737_s24, 1 }
  0x2e   : > { %p387_p3 = pnand %p3369_p1, %p3368_p0 }
  0x2f   : > { %s2928_s18 = sand.u32 (!%p387_p3), 1, %s2729_s22  }
  0x30   : > { %390 = sbr.rel (%p387_p3) target bundleno = 4592 (0x11f0), region = 68  ;;  %s3348_s28 = sshll.u32 (!%p387_p3), %s2928_s18, 3 }
  0x31   : > { %s393_s26 = scalar_lea.sflag (!%p387_p3), [#allocation4], %s2928_s18  ;;  %s396_s27 = scalar_lea.vmem (!%p387_p3), [#allocation3], %s3348_s28 }
  0x37   : > { %2716 = dma.done.wait (%p2866_p6), %s393_s26, 128  }
  0x38   : > { %2718 = vsyncadd (%p2866_p6), %s393_s26, 4294967168  ;;  %v2740_v0 = vmov 0.0   ;;  %vm2741_vm0 = vmmov 0   ;;  %v2581_v1 = vld [vmem:[%s3333_s2] sm:$0xff]   ;;  %v2582_v2 = vld [vmem:[%s3333_s2 + $0x8] sm:$0xff]   ;;  %vm464_vm1 = vcmask 261120   ;;  %v561_v21 = vlaneseq }
  0x39   : > { %2350 = vmatprep.subr.bf16.mxu1 %v2740_v0  ;;  %2354 = vmatprep.mubr.msk.bf16.mxu1 %vm2741_vm0, %v2740_v0  ;;  %v2950_v3 = vld [vmem:[%s396_s27] sm:$0xff]  ;;  %s3359_s14 = smov 120   ;;  %s2743_s13 = smov 96   ;;  %vm512_vm2 = vcmask 64512   ;;  %v2749_v25 = vmov 0   ;;  %vm584_vm5 = vcmask 1043456  }
  0x3a   : > { %2364 = vmatprep.subr.bf16.mxu0 %v2740_v0  ;;  %2366 = vmatprep.mubr.msk.bf16.mxu0 %vm2741_vm0, %v2740_v0  ;;  %v447_v4 = vpack.c.bf16 %v2950_v3, %v2950_v3  ;;  %s3354_s19 = smov 80   ;;  %s2745_s23 = smov 88   ;;  %v562_v23 = vshrl.u32 %v561_v21, 7  ;;  %vm629_vm6 = vcmask 60416   ;;  %vm750_vm7 = vcmask 126016  }
  0x3b   : > { %2351 = vmatpush3.bf16.msra.mxu1 %v2581_v1  ;;  %s3353_s26 = smov 72   ;;  %s2747_s27 = smov 112   ;;  %vm871_vm8 = vcmask 191616   ;;  %vm992_vm9 = vcmask 257216   ;;  %vm1195_vm10 = vcmask 523264  }
  0x3c   : > { %2352 = vmatprep.subr.bf16.mxu1 %v2740_v0  ;;  %s3358_s30 = smov 104   ;;  %p440_p6 = scmp.lt.s32.totalorder %s2844_s25, 1  ;;  %v563_v24 = vsub.s32 0, %v562_v23 }
  0x3d   : > { %s3350_s20 = smov 40   ;;  %s3349_s17 = smov 48  }
  0x3e   : > { %s441_s29 = scalar_select %p440_p6, %s2844_s25, 1 }
  0x3f   : > { %2353 = vmatpush3.bf16.msra.mxu1 %v2582_v2  ;;  %p3382_p12 = scmp.ne.s32.totalorder %s3365_s15, 0 }
  0x40   : > { %2358 = vmatprep.subr.bf16.mxu1 %v2740_v0  ;;  %s442_s28 = scalar_lea.vmem %s3332_s1, %s441_s29  ;;  %s3351_s29 = smov 64  }
  0x41   : > { %v444_v22 = vld [vmem:[%s442_s28] sm:$0x1]  ;;  %s3352_s28 = smov 56  }
  0x42   : > { %2355 = vmatmul.mubr.msk.bf16.vlgmr.msra.gmra.mrb[0].mxu1 %vm464_vm1, %v447_v4  ;;  %vm445_vm3 = vcmp.ne.f32.partialorder %v444_v22, 0.0 }
  0x43   : > { %2360 = vmatprep.mubr.msk.bf16.mxu1 %vm2741_vm0, %v2740_v0  ;;  %v560_v26 = vsel %vm445_vm3, 1, %v2749_v25 }
  0x44   : > { %v3001_v27 = vrot.slane %v560_v26, %v563_v24 }
  0x46   : > { %vm565_vm4 = vcmp.eq.s32.totalorder %v3001_v27, 1 }
 0x115   : > { %v502_v5 = vpop.f32.mrb[0].mxu1 }
 0x116   : > { %v2959_v6 = vpack.c.bf16 %v502_v5, %v502_v5  ;;  %v2356_v7 = vpop.f32.mrb[1].mxu1 }
 0x117   : > { %v505_v8 = vpop.f32.mrb[2].mxu1 }
 0x118   : > { %631 = vrot.lane.b32.xlu1 %v2959_v6, %s3359_s14  ;;  %510 = vrot.lane.b32.xlu0 %v2959_v6, %s2743_s13  ;;  %v2357_v9 = vpop.f32.mrb[3].mxu1 }
 0x11c   : > { %754 = vrot.lane.b32.xlu1 %v2959_v6, %s3354_s19  ;;  %633 = vrot.lane.b32.xlu0 %v2959_v6, %s2745_s23  ;;  %s3356_s19 = smov 16  }
 0x120   : > { %875 = vrot.lane.b32.xlu1 %v2959_v6, %s3353_s26  ;;  %752 = vrot.lane.b32.xlu0 %v2959_v6, %s2747_s27  ;;  %s3371_s26 = smov 104  }
 0x124   : > { %873 = vrot.lane.b32.xlu0 %v2959_v6, %s3358_s30 }
 0x18a   : > { %v511_v10 = vpop.permute.xlu0 %510  ;;  %v632_v13 = vpop.permute.xlu1 %631 }
 0x18b   : > { %v517_v11 = vsel %vm512_vm2, %v511_v10, 0 }
 0x18c   : > { %2359 = vmatpush3.bf16.xpose.msra.mxu1 %v517_v11 }
 0x18d   : > { %2370 = vmatprep.subr.bf16.mxu1 %v2740_v0 }
 0x18e   : > { %v634_v12 = vpop.permute.xlu0 %633  ;;  %v755_v15 = vpop.permute.xlu1 %754 }
 0x18f   : > { %v639_v14 = vsel %vm512_vm2, %v634_v12, 0  ;;  %v760_v16 = vsel %vm512_vm2, %v755_v15, 0 }
 0x192   : > { %v876_v17 = vpop.permute.xlu1 %875  ;;  %v753_v18 = vpop.permute.xlu0 %752 }
 0x193   : > { %2361 = vmatmul.mubr.msk.bf16.vlgmr.msra.gmra.mrb[4].mxu1 %vm512_vm2, %v2959_v6  ;;  %v881_v19 = vsel %vm512_vm2, %v876_v17, 0 }
 0x194   : > { %2371 = vmatpush3.bf16.xpose.msra.mxu1 %v639_v14  ;;  %2372 = vmatprep.mubr.msk.bf16.mxu1 %vm2741_vm0, %v2740_v0 }
 0x195   : > { %2382 = vmatprep.subr.bf16.mxu1 %v2740_v0 }
 0x196   : > { %v874_v20 = vpop.permute.xlu0 %873 }
 0x19b   : > { %2373 = vmatmul.mubr.msk.bf16.vlgmr.msra.gmra.mrb[8].mxu1 %vm512_vm2, %v632_v13 }
 0x19c   : > { %2383 = vmatpush3.bf16.xpose.msra.mxu1 %v760_v16  ;;  %2384 = vmatprep.mubr.msk.bf16.mxu1 %vm2741_vm0, %v2740_v0 }
 0x19d   : > { %2394 = vmatprep.subr.bf16.mxu1 %v2740_v0 }
 0x1a3   : > { %2385 = vmatmul.mubr.msk.bf16.vlgmr.msra.gmra.mrb[12].mxu1 %vm512_vm2, %v753_v18 }
 0x1a4   : > { %2395 = vmatpush3.bf16.xpose.msra.mxu1 %v881_v19  ;;  %2396 = vmatprep.mubr.msk.bf16.mxu1 %vm2741_vm0, %v2740_v0 }
 0x1a5   : > { %2406 = vmatprep.subr.bf16.mxu1 %v2740_v0 }
 0x1ab   : > { %2397 = vmatmul.mubr.msk.bf16.vlgmr.msra.gmra.mrb[16].mxu1 %vm512_vm2, %v874_v20 }
 0x1ac   : > { %2410 = vmatprep.mubr.msk.bf16.mxu1 %vm2741_vm0, %v2740_v0 }
 0x266   : > { %v553_v28 = vpop.f32.mrb[4].mxu1 }
 0x267   : > { %v559_v29 = vmul.f32 0.35355338, %v553_v28  ;;  %v2362_v30 = vpop.f32.mrb[5].mxu1 }
 0x268   : > { %v556_v31 = vpop.f32.mrb[6].mxu1 }
 0x269   : > { %v2363_v32 = vpop.f32.mrb[7].mxu1  ;;  %v566_v33 = vsel %vm565_vm4, %v559_v29, -1000000.0 }
 0x26a   : > { %v567_v34 = vsel %vm512_vm2, %v566_v33, -inf }
 0x26b   : > { %568 = vmax.xlane.f32.xlu1 %v567_v34 }
 0x26e   : > { %v675_v35 = vpop.f32.mrb[8].mxu1 }
 0x26f   : > { %v681_v36 = vmul.f32 0.35355338, %v675_v35  ;;  %v2374_v37 = vpop.f32.mrb[9].mxu1 }
 0x270   : > { %v678_v38 = vpop.f32.mrb[10].mxu1 }
 0x271   : > { %v2375_v39 = vpop.f32.mrb[11].mxu1  ;;  %v682_v40 = vsel %vm565_vm4, %v681_v36, -1000000.0 }
 0x272   : > { %v683_v41 = vsel %vm512_vm2, %v682_v40, -inf }
 0x273   : > { %684 = vmax.xlane.f32.xlu0 %v683_v41 }
 0x276   : > { %v796_v42 = vpop.f32.mrb[12].mxu1 }
 0x277   : > { %v802_v43 = vmul.f32 0.35355338, %v796_v42  ;;  %v2386_v44 = vpop.f32.mrb[13].mxu1 }
 0x278   : > { %v799_v45 = vpop.f32.mrb[14].mxu1 }
 0x279   : > { %v2387_v46 = vpop.f32.mrb[15].mxu1  ;;  %v803_v47 = vsel %vm565_vm4, %v802_v43, -1000000.0 }
 0x27a   : > { %v804_v48 = vsel %vm512_vm2, %v803_v47, -inf }
 0x27b   : > { %805 = vmax.xlane.f32.xlu0 %v804_v48 }
 0x27e   : > { %v917_v49 = vpop.f32.mrb[16].mxu1 }
 0x27f   : > { %v923_v50 = vmul.f32 0.35355338, %v917_v49  ;;  %v2398_v51 = vpop.f32.mrb[17].mxu1  ;;  %v2583_v49 = vld [vmem:[%s3334_s3] sm:$0xff]  }
 0x280   : > { %v920_v52 = vpop.f32.mrb[18].mxu1  ;;  %2407 = vmatpush3.bf16.msra.mxu1 %v2583_v49 }
 0x281   : > { %v2399_v53 = vpop.f32.mrb[19].mxu1  ;;  %v924_v54 = vsel %vm565_vm4, %v923_v50, -1000000.0  ;;  %v2584_v50 = vld [vmem:[%s3334_s3 + $0x8] sm:$0xff]   ;;  %2408 = vmatprep.subr.bf16.mxu1 %v2740_v0 }
 0x282   : > { %v925_v55 = vsel %vm512_vm2, %v924_v54, -inf }
 0x283   : > { %926 = vmax.xlane.f32.xlu1 %v925_v55 }
 0x284   : > { %2409 = vmatpush3.bf16.msra.mxu1 %v2584_v50  ;;  %v2591_v50 = vld [vmem:[%s3333_s2 + $0x10] sm:$0xff]  }
 0x285   : > { %2422 = vmatprep.subr.bf16.mxu1 %v2740_v0 }
 0x2f8   : > { %v569_v56 = vpop.xlane.xlu1 %568 }
 0x2f9   : > { %v570_v57 = vsub.f32 %v566_v33, %v569_v56 }
 0x2fb   : > { %v571_v58 = vmul.f32 1.442695, %v570_v57 }
 0x2fd   : > { %2601 = vpow2.f32 %v571_v58 }
 0x300   : > { %v685_v59 = vpop.xlane.xlu0 %684 }
 0x301   : > { %v686_v60 = vsub.f32 %v682_v40, %v685_v59 }
 0x303   : > { %v687_v61 = vmul.f32 1.442695, %v686_v60 }
 0x305   : > { %2603 = vpow2.f32 %v687_v61 }
 0x307   : > { %v2602_v62 = vpop.eup %2601 }
 0x308   : > { %v806_v63 = vpop.xlane.xlu0 %805  ;;  %v573_v1 = vsel %vm512_vm2, %v2602_v62, 0.0 }
 0x309   : > { %v807_v2 = vsub.f32 %v803_v47, %v806_v63  ;;  %574 = vadd.xlane.f32.xlu0 %v573_v1 }
 0x30b   : > { %v808_v4 = vmul.f32 1.442695, %v807_v2 }
 0x30d   : > { %2605 = vpow2.f32 %v808_v4 }
 0x30f   : > { %v2604_v5 = vpop.eup %2603 }
 0x310   : > { %v689_v7 = vsel %vm512_vm2, %v2604_v5, 0.0  ;;  %v927_v10 = vpop.xlane.xlu1 %926 }
 0x311   : > { %690 = vadd.xlane.f32.xlu1 %v689_v7  ;;  %v928_v11 = vsub.f32 %v924_v54, %v927_v10 }
 0x313   : > { %v929_v12 = vmul.f32 1.442695, %v928_v11 }
 0x315   : > { %2607 = vpow2.f32 %v929_v12  ;;  %v2585_v12 = vld [vmem:[%s3337_s6] sm:$0xff]  }
 0x317   : > { %v2606_v8 = vpop.eup %2605 }
 0x318   : > { %v810_v9 = vsel %vm512_vm2, %v2606_v8, 0.0 }
 0x319   : > { %811 = vadd.xlane.f32.xlu0 %v810_v9 }
 0x31f   : > { %v2608_v13 = vpop.eup %2607 }
 0x320   : > { %v931_v14 = vsel %vm512_vm2, %v2608_v13, 0.0 }
 0x322   : > { %695 = vrot.lane.b32.xlu1 %v2959_v6, %s3352_s28  ;;  %s3372_s28 = smov 80  }
 0x32f   : > { %579 = vrot.lane.b32.xlu0 %v2959_v6, %s3351_s29  ;;  %s3355_s29 = smov 24  }
 0x333   : > { %937 = vrot.lane.b32.xlu0 %v2959_v6, %s3350_s20  ;;  %s3373_s20 = smov 72  }
 0x346   : > { %932 = vadd.xlane.f32.xlu1 %v931_v14  ;;  %v2588_v14 = vld [vmem:[%s3339_s8 + $0x8] sm:$0xff]  }
 0x357   : > { %816 = vrot.lane.b32.xlu1 %v2959_v6, %s3349_s17  ;;  %s3357_s17 = smov 8  }
 0x396   : > { %v575_v15 = vpop.xlane.xlu0 %574 }
 0x397   : > { %2609 = vrcp.f32 %v575_v15 }
 0x39e   : > { %v691_v16 = vpop.xlane.xlu1 %690 }
 0x39f   : > { %2611 = vrcp.f32 %v691_v16 }
 0x3a1   : > { %v2610_v17 = vpop.eup %2609 }
 0x3a2   : > { %v577_v19 = vmul.f32 %v2610_v17, %v2602_v62  ;;  %v696_v22 = vpop.permute.xlu1 %695 }
 0x3a3   : > { %v701_v25 = vsel %vm584_vm5, %v696_v22, 0 }
 0x3a4   : > { %v578_v23 = vpack.c.bf16 %v577_v19, %v577_v19 }
 0x3a6   : > { %v812_v18 = vpop.xlane.xlu0 %811 }
 0x3a7   : > { %2613 = vrcp.f32 %v812_v18 }
 0x3a9   : > { %v2612_v24 = vpop.eup %2611 }
 0x3aa   : > { %v580_v20 = vpop.permute.xlu0 %579  ;;  %v693_v6 = vmul.f32 %v2612_v24, %v2604_v5  ;;  %v2209_v24 = vld [vmem:[%s3335_s4] ss:$0 sm:$0xff] }
 0x3ab   : > { %v586_v21 = vsel %vm584_vm5, %v580_v20, 0 }
 0x3ac   : > { %2365 = vmatpush3.bf16.msra.mxu0 %v586_v21  ;;  %v694_v26 = vpack.c.bf16 %v693_v6, %v693_v6  ;;  %v2210_v6 = vld [vmem:[%s3336_s5] ss:$0 sm:$0xff] }
 0x3ad   : > { %2376 = vmatprep.subr.bf16.mxu0 %v2740_v0 }
 0x3ae   : > { %v938_v33 = vpop.permute.xlu0 %937 }
 0x3af   : > { %2367 = vmatmul.mubr.msk.bf16.vlgmr.msra.gmra.mrb[0].mxu0 %vm512_vm2, %v578_v23  ;;  %v943_v35 = vsel %vm584_vm5, %v938_v33, 0 }
 0x3b0   : > { %2377 = vmatpush3.bf16.msra.mxu0 %v701_v25  ;;  %2378 = vmatprep.mubr.msk.bf16.mxu0 %vm2741_vm0, %v2740_v0 }
 0x3b1   : > { %2388 = vmatprep.subr.bf16.mxu0 %v2740_v0  ;;  %v2614_v28 = vpop.eup %2613 }
 0x3b2   : > { %v814_v30 = vmul.f32 %v2614_v28, %v2606_v8 }
 0x3b4   : > { %v815_v34 = vpack.c.bf16 %v814_v30, %v814_v30  ;;  %v2589_v30 = vld [vmem:[%s3339_s8 + $0x10] sm:$0xff]  }
 0x3b7   : > { %2379 = vmatmul.mubr.msk.bf16.vlgmr.msra.gmra.mrb[4].mxu0 %vm512_vm2, %v694_v26 }
 0x3b8   : > { %2390 = vmatprep.mubr.msk.bf16.mxu0 %vm2741_vm0, %v2740_v0 }
 0x3d3   : > { %v933_v29 = vpop.xlane.xlu1 %932 }
 0x3d4   : > { %2615 = vrcp.f32 %v933_v29 }
 0x3d7   : > { %v817_v31 = vpop.permute.xlu1 %816 }
 0x3d8   : > { %v822_v32 = vsel %vm584_vm5, %v817_v31, 0  ;;  %v2590_v31 = vld [vmem:[%s3339_s8 + $0x18] sm:$0xff]  }
 0x3d9   : > { %2389 = vmatpush3.bf16.msra.mxu0 %v822_v32  ;;  %v2211_v32 = vld [vmem:[%s3338_s7] ss:$0 sm:$0xff] }
 0x3da   : > { %2400 = vmatprep.subr.bf16.mxu0 %v2740_v0 }
 0x3dc   : > { %2391 = vmatmul.mubr.msk.bf16.vlgmr.msra.gmra.mrb[8].mxu0 %vm512_vm2, %v815_v34 }
 0x3dd   : > { %2401 = vmatpush3.bf16.msra.mxu0 %v943_v35  ;;  %2402 = vmatprep.mubr.msk.bf16.mxu0 %vm2741_vm0, %v2740_v0 }
 0x3de   : > { %v2616_v36 = vpop.eup %2615  ;;  %2414 = vmatprep.subr.bf16.mxu0 %v2740_v0 }
 0x3df   : > { %v935_v37 = vmul.f32 %v2616_v36, %v2608_v13  ;;  %v2586_v13 = vld [vmem:[%s3337_s6 + $0x8] sm:$0xff]  }
 0x3e1   : > { %v936_v38 = vpack.c.bf16 %v935_v37, %v935_v37 }
 0x3e4   : > { %2403 = vmatmul.mubr.msk.bf16.vlgmr.msra.gmra.mrb[12].mxu0 %vm512_vm2, %v936_v38 }
 0x3e5   : > { %2418 = vmatprep.mubr.msk.bf16.mxu0 %vm2741_vm0, %v2740_v0  ;;  %2415 = vmatpush3.bf16.msra.mxu0 %v2585_v12 }
 0x3e6   : > { %2416 = vmatprep.subr.bf16.mxu0 %v2740_v0 }
 0x3e9   : > { %2417 = vmatpush3.bf16.msra.mxu0 %v2586_v13 }
 0x3ea   : > { %2434 = vmatprep.subr.bf16.mxu0 %v2740_v0 }
 0x482   : > { %v622_v39 = vpop.f32.mrb[0].mxu0 }
 0x483   : > { %v628_v40 = vpack.c.bf16 %v622_v39, %v622_v39  ;;  %v2368_v41 = vpop.f32.mrb[1].mxu0 }
 0x484   : > { %v625_v42 = vpop.f32.mrb[2].mxu0 }
 0x485   : > { %630 = vst.msk [vmem:[#allocation2] sm:$0xf] %vm629_vm6, %v628_v40  ;;  %v2369_v43 = vpop.f32.mrb[3].mxu0  ;;  %v2215_v40 = vld [vmem:[%s3340_s9] ss:$0 sm:$0xff] }
 0x48a   : > { %v737_v44 = vpop.f32.mrb[4].mxu0 }
 0x48b   : > { %v2284_v45 = vpack.c.bf16 %v737_v44, %v737_v44  ;;  %v2380_v46 = vpop.f32.mrb[5].mxu0 }
 0x48c   : > { %v740_v47 = vpop.f32.mrb[6].mxu0 }
 0x48d   : > { %747 = vrot.lane.b32.xlu1 %v2284_v45, %s3357_s17  ;;  %v2381_v48 = vpop.f32.mrb[7].mxu0  ;;  %s3378_s17 = smov 8  }
 0x4af   : > { %v858_v51 = vpop.f32.mrb[8].mxu0 }
 0x4b0   : > { %v2285_v52 = vpack.c.bf16 %v858_v51, %v858_v51  ;;  %v2392_v53 = vpop.f32.mrb[9].mxu0  ;;  %v2592_v51 = vld [vmem:[%s3333_s2 + $0x18] sm:$0xff]  }
 0x4b1   : > { %v861_v54 = vpop.f32.mrb[10].mxu0 }
 0x4b2   : > { %868 = vrot.lane.b32.xlu0 %v2285_v52, %s3356_s19  ;;  %v2393_v55 = vpop.f32.mrb[11].mxu0  ;;  %s3377_s19 = smov 48  }
 0x4b7   : > { %v979_v56 = vpop.f32.mrb[12].mxu0 }
 0x4b8   : > { %v2286_v57 = vpack.c.bf16 %v979_v56, %v979_v56  ;;  %v2404_v58 = vpop.f32.mrb[13].mxu0 }
 0x4b9   : > { %v982_v59 = vpop.f32.mrb[14].mxu0 }
 0x4ba   : > { %989 = vrot.lane.b32.xlu1 %v2286_v57, %s3355_s29  ;;  %v2405_v60 = vpop.f32.mrb[15].mxu0  ;;  %s3370_s29 = smov 120  }
 0x4ff   : > { %v748_v61 = vpop.permute.xlu1 %747 }
 0x500   : > { %751 = vst.msk [vmem:[#allocation2] sm:$0xf] %vm750_vm7, %v748_v61  ;;  %v2221_v61 = vld [vmem:[%s3341_s10] ss:$0 sm:$0xff] }
 0x524   : > { %v869_v62 = vpop.permute.xlu0 %868 }
 0x525   : > { %872 = vst.msk [vmem:[#allocation2] sm:$0xf] %vm871_vm8, %v869_v62 }
 0x52c   : > { %v990_v63 = vpop.permute.xlu1 %989 }
 0x52d   : > { %993 = vst.msk [vmem:[#allocation2] sm:$0xf] %vm992_vm9, %v990_v63  ;;  %v2222_v63 = vld [vmem:[%s3342_s11] ss:$0 sm:$0xff] }
 0x534   : > { %v994_v1 = vld [vmem:[#allocation2] sm:$0xf] }
 0x535   : > { %2411 = vmatmul.mubr.msk.bf16.vlgmr.msra.gmra.mrb[20].mxu1 %vm464_vm1, %v994_v1 }
 0x536   : > { %2430 = vmatprep.mubr.msk.bf16.mxu1 %vm2741_vm0, %v2740_v0 }
 0x608   : > { %v1048_v2 = vpop.f32.mrb[20].mxu1 }
 0x609   : > { %v1054_v4 = vadd.f32 %v1048_v2, %v2950_v3  ;;  %v2412_v5 = vpop.f32.mrb[21].mxu1  ;;  %v2587_v3 = vld [vmem:[%s3339_s8] sm:$0xff]  }
 0x60a   : > { %v1051_v7 = vpop.f32.mrb[22].mxu1  ;;  %2423 = vmatpush3.bf16.msra.mxu1 %v2587_v3 }
 0x60b   : > { %v2413_v8 = vpop.f32.mrb[23].mxu1  ;;  %v1057_v9 = vsel %vm464_vm1, %v1054_v4, 0.0  ;;  %v1062_v10 = vmul.f32 %v1054_v4, %v1054_v4  ;;  %2424 = vmatprep.subr.bf16.mxu1 %v2740_v0 }
 0x60c   : > { %1058 = vadd.xlane.f32.xlu0 %v1057_v9 }
 0x60d   : > { %v1063_v11 = vsel %vm464_vm1, %v1062_v10, 0.0 }
 0x60e   : > { %1064 = vadd.xlane.f32.xlu1 %v1063_v11  ;;  %2425 = vmatpush3.bf16.msra.mxu1 %v2588_v14 }
 0x60f   : > { %2426 = vmatprep.subr.bf16.mxu1 %v2740_v0 }
 0x612   : > { %2427 = vmatpush3.bf16.msra.mxu1 %v2589_v30 }
 0x613   : > { %2428 = vmatprep.subr.bf16.mxu1 %v2740_v0 }
 0x616   : > { %2429 = vmatpush3.bf16.msra.mxu1 %v2590_v31 }
 0x617   : > { %2448 = vmatprep.subr.bf16.mxu1 %v2740_v0 }
 0x699   : > { %v1059_v15 = vpop.xlane.xlu0 %1058 }
 0x69a   : > { %v1061_v16 = vmul.f32 0.03125, %v1059_v15 }
 0x69b   : > { %v1065_v17 = vpop.xlane.xlu1 %1064 }
 0x69c   : > { %v1067_v18 = vmul.f32 %v1061_v16, %v1061_v16  ;;  %v1066_v19 = vmul.f32 0.03125, %v1065_v17  ;;  %v1069_v22 = vsub.f32 %v1054_v4, %v1061_v16 }
 0x69e   : > { %v1068_v20 = vsub.f32 %v1066_v19, %v1067_v18 }
 0x6a0   : > { %v1070_v21 = vadd.f32 1e-05, %v1068_v20 }
 0x6a2   : > { %2617 = vrsqrt.f32 %v1070_v21 }
 0x6ac   : > { %v2618_v23 = vpop.eup %2617 }
 0x6ad   : > { %v1072_v25 = vmul.f32 %v2618_v23, %v1069_v22 }
 0x6af   : > { %v1079_v26 = vmul.f32 %v2209_v24, %v1072_v25 }
 0x6b1   : > { %v1086_v28 = vadd.f32 %v2210_v6, %v1079_v26 }
 0x6b3   : > { %v1087_v29 = vpack.c.bf16 %v1086_v28, %v1086_v28 }
 0x6b5   : > { %2419 = vmatmul.mubr.msk.bf16.vlgmr.msra.gmra.mrb[16].mxu0 %vm464_vm1, %v1087_v29 }
 0x6b6   : > { %2438 = vmatprep.mubr.msk.bf16.mxu0 %vm2741_vm0, %v2740_v0  ;;  %2435 = vmatpush3.bf16.msra.mxu0 %v2591_v50 }
 0x6b7   : > { %2436 = vmatprep.subr.bf16.mxu0 %v2740_v0 }
 0x6ba   : > { %2437 = vmatpush3.bf16.msra.mxu0 %v2592_v51 }
 0x6bb   : > { %2442 = vmatprep.subr.bf16.mxu0 %v2740_v0 }
 0x788   : > { %v1148_v33 = vpop.f32.mrb[16].mxu0 }
 0x789   : > { %v1149_v34 = vadd.f32 %v2211_v32, %v1148_v33  ;;  %v2420_v35 = vpop.f32.mrb[17].mxu0 }
 0x78a   : > { %v1151_v36 = vpop.f32.mrb[18].mxu0 }
 0x78b   : > { %v1154_v37 = vmax.f32 %v1149_v34, 0.0  ;;  %v2421_v38 = vpop.f32.mrb[19].mxu0 }
 0x78d   : > { %v1155_v39 = vpack.c.bf16 %v1154_v37, %v1154_v37 }
 0x78f   : > { %2431 = vmatmul.mubr.msk.bf16.vlgmr.msra.gmra.mrb[24].mxu1 %vm1195_vm10, %v1155_v39 }
 0x790   : > { %2450 = vmatprep.mubr.msk.bf16.mxu1 %vm2741_vm0, %v2740_v0 }
 0x862   : > { %v1233_v41 = vpop.f32.mrb[24].mxu1 }
 0x863   : > { %v1234_v42 = vadd.f32 %v2215_v40, %v1233_v41  ;;  %v2432_v43 = vpop.f32.mrb[25].mxu1 }
 0x864   : > { %v1236_v44 = vpop.f32.mrb[26].mxu1 }
 0x865   : > { %v1239_v45 = vadd.f32 %v1234_v42, %v1086_v28  ;;  %v2433_v46 = vpop.f32.mrb[27].mxu1 }
 0x867   : > { %v1242_v47 = vsel %vm464_vm1, %v1239_v45, 0.0  ;;  %v1246_v48 = vmul.f32 %v1239_v45, %v1239_v45 }
 0x868   : > { %1243 = vadd.xlane.f32.xlu0 %v1242_v47 }
 0x869   : > { %v1247_v49 = vsel %vm464_vm1, %v1246_v48, 0.0 }
 0x86c   : > { %1248 = vadd.xlane.f32.xlu0 %v1247_v49 }
 0x8f5   : > { %v1244_v52 = vpop.xlane.xlu0 %1243 }
 0x8f6   : > { %v1245_v53 = vmul.f32 0.03125, %v1244_v52 }
 0x8f8   : > { %v1251_v55 = vmul.f32 %v1245_v53, %v1245_v53  ;;  %v1253_v59 = vsub.f32 %v1239_v45, %v1245_v53 }
 0x8f9   : > { %v1249_v54 = vpop.xlane.xlu0 %1248 }
 0x8fa   : > { %v1250_v56 = vmul.f32 0.03125, %v1249_v54 }
 0x8fc   : > { %v1252_v57 = vsub.f32 %v1250_v56, %v1251_v55 }
 0x8fe   : > { %v1254_v58 = vadd.f32 1e-05, %v1252_v57 }
 0x900   : > { %2619 = vrsqrt.f32 %v1254_v58 }
 0x90a   : > { %v2620_v60 = vpop.eup %2619 }
 0x90b   : > { %v1256_v62 = vmul.f32 %v2620_v60, %v1253_v59 }
 0x90d   : > { %v1263_v1 = vmul.f32 %v2221_v61, %v1256_v62 }
 0x90f   : > { %v3127_v2 = vadd.f32 %v2222_v63, %v1263_v1 }
 0x911   : > { %v1271_v4 = vpack.c.bf16 %v3127_v2, %v3127_v2 }
 0x913   : > { %2439 = vmatmul.mubr.msk.bf16.vlgmr.msra.gmra.mrb[20].mxu0 %vm464_vm1, %v1271_v4 }
 0x914   : > { %2444 = vmatprep.mubr.msk.bf16.mxu0 %vm2741_vm0, %v2740_v0 }
 0x9e6   : > { %v1326_v5 = vpop.f32.mrb[20].mxu0 }
 0x9e7   : > { %v3134_v7 = vpack.c.bf16 %v1326_v5, %v1326_v5  ;;  %v2440_v8 = vpop.f32.mrb[21].mxu0 }
 0x9e8   : > { %v1329_v9 = vpop.f32.mrb[22].mxu0 }
 0x9e9   : > { %1448 = vrot.lane.b32.xlu0 %v3134_v7, %s2745_s23  ;;  %1334 = vrot.lane.b32.xlu1 %v3134_v7, %s2743_s13  ;;  %v2441_v10 = vpop.f32.mrb[23].mxu0  ;;  %s3374_s13 = smov 56   ;;  %s3375_s23 = smov 64  }
 0x9ed   : > { %1566 = vrot.lane.b32.xlu0 %v3134_v7, %s2747_s27  ;;  %1446 = vrot.lane.b32.xlu1 %v3134_v7, %s3370_s29  ;;  %s3376_s27 = smov 40  }
 0x9f1   : > { %1686 = vrot.lane.b32.xlu0 %v3134_v7, %s3371_s26  ;;  %1568 = vrot.lane.b32.xlu1 %v3134_v7, %s3372_s28  ;;  %s3379_s28 = smov 16  }
 0x9f5   : > { %1688 = vrot.lane.b32.xlu1 %v3134_v7, %s3373_s20  ;;  %s3380_s20 = smov 24  }
 0xa5b   : > { %v1335_v11 = vpop.permute.xlu1 %1334  ;;  %v1449_v13 = vpop.permute.xlu0 %1448 }
 0xa5c   : > { %v1340_v12 = vsel %vm512_vm2, %v1335_v11, 0  ;;  %v1454_v14 = vsel %vm512_vm2, %v1449_v13, 0 }
 0xa5d   : > { %2443 = vmatpush3.bf16.xpose.msra.mxu0 %v1340_v12 }
 0xa5e   : > { %2454 = vmatprep.subr.bf16.mxu0 %v2740_v0 }
 0xa5f   : > { %v1447_v3 = vpop.permute.xlu1 %1446  ;;  %v1567_v18 = vpop.permute.xlu0 %1566 }
 0xa63   : > { %v1569_v15 = vpop.permute.xlu1 %1568  ;;  %v1687_v20 = vpop.permute.xlu0 %1686 }
 0xa64   : > { %2445 = vmatmul.mubr.msk.bf16.vlgmr.msra.gmra.mrb[24].mxu0 %vm512_vm2, %v3134_v7  ;;  %v1574_v16 = vsel %vm512_vm2, %v1569_v15, 0 }
 0xa65   : > { %2455 = vmatpush3.bf16.xpose.msra.mxu0 %v1454_v14  ;;  %2456 = vmatprep.mubr.msk.bf16.mxu0 %vm2741_vm0, %v2740_v0 }
 0xa66   : > { %2466 = vmatprep.subr.bf16.mxu0 %v2740_v0 }
 0xa67   : > { %v1689_v17 = vpop.permute.xlu1 %1688 }
 0xa68   : > { %v1694_v19 = vsel %vm512_vm2, %v1689_v17, 0 }
 0xa6c   : > { %2457 = vmatmul.mubr.msk.bf16.vlgmr.msra.gmra.mrb[28].mxu0 %vm512_vm2, %v1447_v3 }
 0xa6d   : > { %2467 = vmatpush3.bf16.xpose.msra.mxu0 %v1574_v16  ;;  %2468 = vmatprep.mubr.msk.bf16.mxu0 %vm2741_vm0, %v2740_v0 }
 0xa6e   : > { %2478 = vmatprep.subr.bf16.mxu0 %v2740_v0 }
 0xa74   : > { %2469 = vmatmul.mubr.msk.bf16.vlgmr.msra.gmra.mrb[32].mxu0 %vm512_vm2, %v1567_v18 }
 0xa75   : > { %2479 = vmatpush3.bf16.xpose.msra.mxu0 %v1694_v19  ;;  %2480 = vmatprep.mubr.msk.bf16.mxu0 %vm2741_vm0, %v2740_v0 }
 0xa76   : > { %2490 = vmatprep.subr.bf16.mxu0 %v2740_v0 }
 0xa7c   : > { %2481 = vmatmul.mubr.msk.bf16.vlgmr.msra.gmra.mrb[36].mxu0 %vm512_vm2, %v1687_v20 }
 0xa7d   : > { %2494 = vmatprep.mubr.msk.bf16.mxu0 %vm2741_vm0, %v2740_v0 }
 0xb37   : > { %v1376_v21 = vpop.f32.mrb[24].mxu0 }
 0xb38   : > { %v1382_v22 = vmul.f32 0.35355338, %v1376_v21  ;;  %v2446_v23 = vpop.f32.mrb[25].mxu0 }
 0xb39   : > { %v1379_v24 = vpop.f32.mrb[26].mxu0 }
 0xb3a   : > { %v2447_v25 = vpop.f32.mrb[27].mxu0  ;;  %v1383_v6 = vsel %vm565_vm4, %v1382_v22, -1000000.0 }
 0xb3b   : > { %v1384_v26 = vsel %vm512_vm2, %v1383_v6, -inf }
 0xb3c   : > { %1385 = vmax.xlane.f32.xlu1 %v1384_v26 }
 0xb3f   : > { %v1490_v28 = vpop.f32.mrb[28].mxu0 }
 0xb40   : > { %v1496_v29 = vmul.f32 0.35355338, %v1490_v28  ;;  %v2458_v30 = vpop.f32.mrb[29].mxu0 }
 0xb41   : > { %v1493_v31 = vpop.f32.mrb[30].mxu0 }
 0xb42   : > { %v2459_v32 = vpop.f32.mrb[31].mxu0  ;;  %v1497_v33 = vsel %vm565_vm4, %v1496_v29, -1000000.0 }
 0xb43   : > { %v1498_v34 = vsel %vm512_vm2, %v1497_v33, -inf }
 0xb44   : > { %1499 = vmax.xlane.f32.xlu0 %v1498_v34 }
 0xb47   : > { %v1610_v35 = vpop.f32.mrb[32].mxu0 }
 0xb48   : > { %v1616_v36 = vmul.f32 0.35355338, %v1610_v35  ;;  %v2470_v37 = vpop.f32.mrb[33].mxu0 }
 0xb49   : > { %v1613_v38 = vpop.f32.mrb[34].mxu0 }
 0xb4a   : > { %v2471_v39 = vpop.f32.mrb[35].mxu0  ;;  %v1617_v40 = vsel %vm565_vm4, %v1616_v36, -1000000.0 }
 0xb4b   : > { %v1618_v41 = vsel %vm512_vm2, %v1617_v40, -inf }
 0xb4c   : > { %1619 = vmax.xlane.f32.xlu0 %v1618_v41  ;;  %v2593_v41 = vld [vmem:[%s3334_s3 + $0x10] sm:$0xff]  }
 0xb4d   : > { %2491 = vmatpush3.bf16.msra.mxu0 %v2593_v41 }
 0xb4e   : > { %2492 = vmatprep.subr.bf16.mxu0 %v2740_v0 }
 0xb4f   : > { %v1730_v42 = vpop.f32.mrb[36].mxu0 }
 0xb50   : > { %v1736_v43 = vmul.f32 0.35355338, %v1730_v42  ;;  %v2482_v44 = vpop.f32.mrb[37].mxu0  ;;  %v2594_v42 = vld [vmem:[%s3334_s3 + $0x18] sm:$0xff]  }
 0xb51   : > { %v1733_v45 = vpop.f32.mrb[38].mxu0  ;;  %2493 = vmatpush3.bf16.msra.mxu0 %v2594_v42 }
 0xb52   : > { %v2483_v46 = vpop.f32.mrb[39].mxu0  ;;  %v1737_v47 = vsel %vm565_vm4, %v1736_v43, -1000000.0  ;;  %2506 = vmatprep.subr.bf16.mxu0 %v2740_v0 }
 0xb53   : > { %v1738_v48 = vsel %vm512_vm2, %v1737_v47, -inf }
 0xb54   : > { %1739 = vmax.xlane.f32.xlu1 %v1738_v48 }
 0xbc9   : > { %v1386_v49 = vpop.xlane.xlu1 %1385 }
 0xbca   : > { %v1387_v50 = vsub.f32 %v1383_v6, %v1386_v49 }
 0xbcc   : > { %v1388_v51 = vmul.f32 1.442695, %v1387_v50 }
 0xbce   : > { %2621 = vpow2.f32 %v1388_v51 }
 0xbd1   : > { %v1500_v52 = vpop.xlane.xlu0 %1499 }
 0xbd2   : > { %v1501_v53 = vsub.f32 %v1497_v33, %v1500_v52 }
 0xbd4   : > { %v1502_v54 = vmul.f32 1.442695, %v1501_v53 }
 0xbd6   : > { %2623 = vpow2.f32 %v1502_v54 }
 0xbd8   : > { %v2622_v55 = vpop.eup %2621 }
 0xbd9   : > { %v1620_v56 = vpop.xlane.xlu0 %1619  ;;  %v1390_v57 = vsel %vm512_vm2, %v2622_v55, 0.0 }
 0xbda   : > { %v1621_v58 = vsub.f32 %v1617_v40, %v1620_v56  ;;  %1391 = vadd.xlane.f32.xlu0 %v1390_v57 }
 0xbdc   : > { %v1622_v59 = vmul.f32 1.442695, %v1621_v58 }
 0xbde   : > { %2625 = vpow2.f32 %v1622_v59 }
 0xbe0   : > { %v2624_v27 = vpop.eup %2623 }
 0xbe1   : > { %v1504_v60 = vsel %vm512_vm2, %v2624_v27, 0.0  ;;  %v1740_v63 = vpop.xlane.xlu1 %1739 }
 0xbe2   : > { %1505 = vadd.xlane.f32.xlu1 %v1504_v60  ;;  %v1741_v1 = vsub.f32 %v1737_v47, %v1740_v63 }
 0xbe4   : > { %v1742_v4 = vmul.f32 1.442695, %v1741_v1  ;;  %v2595_v1 = vld [vmem:[%s3337_s6 + $0x10] sm:$0xff]  }
 0xbe6   : > { %2627 = vpow2.f32 %v1742_v4  ;;  %v2597_v4 = vld [vmem:[%s3339_s8 + $0x20] sm:$0xff]  }
 0xbe8   : > { %v2626_v61 = vpop.eup %2625 }
 0xbe9   : > { %v1624_v62 = vsel %vm512_vm2, %v2626_v61, 0.0 }
 0xbea   : > { %1625 = vadd.xlane.f32.xlu0 %v1624_v62 }
 0xbf0   : > { %v2628_v5 = vpop.eup %2627 }
 0xbf1   : > { %v1744_v8 = vsel %vm512_vm2, %v2628_v5, 0.0 }
 0xbf3   : > { %1510 = vrot.lane.b32.xlu1 %v3134_v7, %s3374_s13 }
 0xc00   : > { %1396 = vrot.lane.b32.xlu0 %v3134_v7, %s3375_s23 }
 0xc04   : > { %1750 = vrot.lane.b32.xlu0 %v3134_v7, %s3376_s27  ;;  %s2281_s27 = sshll.u32 %s2844_s25, 7  ;;  %s2757_s25 = smov [#allocation6]  }
 0xc05   : > { %s3286_s26 = scalar_lea.hbm %s3343_s12, %s2281_s27  ;;  %s2675_s13 = sshll.u32 %s2757_s25, 4  ;;  %s2676_s13 = int_to_ptr.vmem [resolvable:$false] %s2675_s13 }
 0xc06   : > { %s2677_s23 = scalar_lea.vmem %s2676_s13, 256 }
 0xc17   : > { %1745 = vadd.xlane.f32.xlu1 %v1744_v8 }
 0xc28   : > { %1630 = vrot.lane.b32.xlu1 %v3134_v7, %s3377_s19  ;;  %s3381_s19 = sshll.u32 %s2928_s18, 3 }
 0xc67   : > { %v1392_v9 = vpop.xlane.xlu0 %1391 }
 0xc68   : > { %2629 = vrcp.f32 %v1392_v9 }
 0xc6f   : > { %v1506_v10 = vpop.xlane.xlu1 %1505 }
 0xc70   : > { %2631 = vrcp.f32 %v1506_v10 }
 0xc72   : > { %v2630_v11 = vpop.eup %2629 }
 0xc73   : > { %v1394_v13 = vmul.f32 %v2630_v11, %v2622_v55  ;;  %v1511_v15 = vpop.permute.xlu1 %1510 }
 0xc74   : > { %v1516_v18 = vsel %vm584_vm5, %v1511_v15, 0 }
 0xc75   : > { %v1395_v16 = vpack.c.bf16 %v1394_v13, %v1394_v13 }
 0xc77   : > { %v1626_v12 = vpop.xlane.xlu0 %1625 }
 0xc78   : > { %2633 = vrcp.f32 %v1626_v12 }
 0xc7a   : > { %v2632_v17 = vpop.eup %2631 }
 0xc7b   : > { %v1397_v3 = vpop.permute.xlu0 %1396  ;;  %v1508_v7 = vmul.f32 %v2632_v17, %v2624_v27 }
 0xc7c   : > { %v1402_v14 = vsel %vm584_vm5, %v1397_v3, 0 }
 0xc7d   : > { %2449 = vmatpush3.bf16.msra.mxu1 %v1402_v14  ;;  %v1509_v19 = vpack.c.bf16 %v1508_v7, %v1508_v7 }
 0xc7e   : > { %2460 = vmatprep.subr.bf16.mxu1 %v2740_v0 }
 0xc7f   : > { %v1751_v25 = vpop.permute.xlu0 %1750 }
 0xc80   : > { %2451 = vmatmul.mubr.msk.bf16.vlgmr.msra.gmra.mrb[28].mxu1 %vm512_vm2, %v1395_v16  ;;  %v1756_v26 = vsel %vm584_vm5, %v1751_v25, 0  ;;  %v2250_v16 = vld [vmem:[%s3335_s4 + $0x1] ss:$0 sm:$0xff] }
 0xc81   : > { %2461 = vmatpush3.bf16.msra.mxu1 %v1516_v18  ;;  %2462 = vmatprep.mubr.msk.bf16.mxu1 %vm2741_vm0, %v2740_v0  ;;  %v2251_v18 = vld [vmem:[%s3336_s5 + $0x1] ss:$0 sm:$0xff] }
 0xc82   : > { %2472 = vmatprep.subr.bf16.mxu1 %v2740_v0  ;;  %v2634_v20 = vpop.eup %2633 }
 0xc83   : > { %v1628_v22 = vmul.f32 %v2634_v20, %v2626_v61 }
 0xc85   : > { %v1629_v6 = vpack.c.bf16 %v1628_v22, %v1628_v22  ;;  %v2600_v22 = vld [vmem:[%s3339_s8 + $0x38] sm:$0xff]  }
 0xc88   : > { %2463 = vmatmul.mubr.msk.bf16.vlgmr.msra.gmra.mrb[32].mxu1 %vm512_vm2, %v1509_v19 }
 0xc89   : > { %2474 = vmatprep.mubr.msk.bf16.mxu1 %vm2741_vm0, %v2740_v0 }
 0xca4   : > { %v1746_v21 = vpop.xlane.xlu1 %1745 }
 0xca5   : > { %2635 = vrcp.f32 %v1746_v21  ;;  %v2599_v21 = vld [vmem:[%s3339_s8 + $0x30] sm:$0xff]  }
 0xca8   : > { %v1631_v23 = vpop.permute.xlu1 %1630 }
 0xca9   : > { %v1636_v24 = vsel %vm584_vm5, %v1631_v23, 0  ;;  %v2257_v23 = vld [vmem:[%s3338_s7 + $0x1] ss:$0 sm:$0xff] }
 0xcaa   : > { %2473 = vmatpush3.bf16.msra.mxu1 %v1636_v24 }
 0xcab   : > { %2484 = vmatprep.subr.bf16.mxu1 %v2740_v0 }
 0xcad   : > { %2475 = vmatmul.mubr.msk.bf16.vlgmr.msra.gmra.mrb[36].mxu1 %vm512_vm2, %v1629_v6 }
 0xcae   : > { %2485 = vmatpush3.bf16.msra.mxu1 %v1756_v26  ;;  %2486 = vmatprep.mubr.msk.bf16.mxu1 %vm2741_vm0, %v2740_v0 }
 0xcaf   : > { %v2636_v28 = vpop.eup %2635  ;;  %2498 = vmatprep.subr.bf16.mxu1 %v2740_v0 }
 0xcb0   : > { %v1748_v29 = vmul.f32 %v2636_v28, %v2628_v5  ;;  %v2598_v5 = vld [vmem:[%s3339_s8 + $0x28] sm:$0xff]  }
 0xcb2   : > { %v1749_v30 = vpack.c.bf16 %v1748_v29, %v1748_v29 }
 0xcb5   : > { %2487 = vmatmul.mubr.msk.bf16.vlgmr.msra.gmra.mrb[40].mxu1 %vm512_vm2, %v1749_v30 }
 0xcb6   : > { %2502 = vmatprep.mubr.msk.bf16.mxu1 %vm2741_vm0, %v2740_v0  ;;  %2499 = vmatpush3.bf16.msra.mxu1 %v2595_v1 }
 0xcb7   : > { %2500 = vmatprep.subr.bf16.mxu1 %v2740_v0 }
 0xd53   : > { %v1438_v31 = vpop.f32.mrb[28].mxu1 }
 0xd54   : > { %v1444_v32 = vpack.c.bf16 %v1438_v31, %v1438_v31  ;;  %v2452_v33 = vpop.f32.mrb[29].mxu1 }
 0xd55   : > { %v1441_v34 = vpop.f32.mrb[30].mxu1 }
 0xd56   : > { %1445 = vst.msk [vmem:[#allocation2] sm:$0xf] %vm629_vm6, %v1444_v32  ;;  %v2453_v35 = vpop.f32.mrb[31].mxu1 }
 0xd5b   : > { %v1552_v36 = vpop.f32.mrb[32].mxu1 }
 0xd5c   : > { %v2287_v37 = vpack.c.bf16 %v1552_v36, %v1552_v36  ;;  %v2464_v38 = vpop.f32.mrb[33].mxu1 }
 0xd5d   : > { %v1555_v39 = vpop.f32.mrb[34].mxu1 }
 0xd5e   : > { %1562 = vrot.lane.b32.xlu1 %v2287_v37, %s3378_s17  ;;  %v2465_v40 = vpop.f32.mrb[35].mxu1  ;;  %s439_s17 = scalar_lea.vmem [#allocation6], %s3381_s19 }
 0xd5f   : > { %s2105_s14 = sshll.u32 %s439_s17, 4  ;;  %s3288_s14 = int_to_ptr.vmem [resolvable:$true] %s2105_s14 }
 0xd60   : > { %p2678_p10 = scmp.lt.s32.totalorder %s3288_s14, %s2676_s13 }
 0xd80   : > { %v1672_v43 = vpop.f32.mrb[36].mxu1 }
 0xd81   : > { %v2288_v44 = vpack.c.bf16 %v1672_v43, %v1672_v43  ;;  %v2476_v45 = vpop.f32.mrb[37].mxu1 }
 0xd82   : > { %v1675_v46 = vpop.f32.mrb[38].mxu1 }
 0xd83   : > { %1682 = vrot.lane.b32.xlu0 %v2288_v44, %s3379_s28  ;;  %v2477_v47 = vpop.f32.mrb[39].mxu1  ;;  %s2092_s28 = scalar_lea.sflag [#allocation5], %s2928_s18 }
 0xd88   : > { %v1792_v48 = vpop.f32.mrb[40].mxu1 }
 0xd89   : > { %v2289_v49 = vpack.c.bf16 %v1792_v48, %v1792_v48  ;;  %v2488_v50 = vpop.f32.mrb[41].mxu1 }
 0xd8a   : > { %v1795_v51 = vpop.f32.mrb[42].mxu1 }
 0xd8b   : > { %1802 = vrot.lane.b32.xlu1 %v2289_v49, %s3380_s20  ;;  %v2489_v52 = vpop.f32.mrb[43].mxu1  ;;  %v2278_v49 = vld [vmem:[%s3341_s10 + $0x1] ss:$0 sm:$0xff]  ;;  %s2671_s20 = scalar_lea.vmem %s3288_s14, 128 }
 0xd8c   : > { %v2279_v51 = vld [vmem:[%s3342_s11 + $0x1] ss:$0 sm:$0xff]  ;;  %p2672_p11 = scmp.ne.s32.totalorder %s3288_s14, %s2671_s20  ;;  %p2679_p2 = scmp.lt.s32.totalorder %s2677_s23, %s2671_s20 }
 0xd8e   : > { %p2673_p13 = pnand %p2672_p11, %p3382_p12  ;;  %p2680_p4 = por %p2679_p2, %p2678_p10 }
 0xd90   : > { %p2674_p7 = pneg %p2673_p13 }
 0xd92   : > { %p2681_p5 = pnand %p2680_p4, %p2674_p7 }
 0xdd0   : > { %v1563_v53 = vpop.permute.xlu1 %1562 }
 0xdd1   : > { %1565 = vst.msk [vmem:[#allocation2] sm:$0xf] %vm750_vm7, %v1563_v53 }
 0xdf5   : > { %v1683_v54 = vpop.permute.xlu0 %1682 }
 0xdf6   : > { %1685 = vst.msk [vmem:[#allocation2] sm:$0xf] %vm871_vm8, %v1683_v54 }
 0xdfd   : > { %v1803_v55 = vpop.permute.xlu1 %1802 }
 0xdfe   : > { %1805 = vst.msk [vmem:[#allocation2] sm:$0xf] %vm992_vm9, %v1803_v55 }
 0xe05   : > { %v1806_v56 = vld [vmem:[#allocation2] sm:$0xf] }
 0xe06   : > { %2495 = vmatmul.mubr.msk.bf16.vlgmr.msra.gmra.mrb[40].mxu0 %vm464_vm1, %v1806_v56 }
 0xe07   : > { %2514 = vmatprep.mubr.msk.bf16.mxu0 %vm2741_vm0, %v2740_v0  ;;  %2507 = vmatpush3.bf16.msra.mxu0 %v2597_v4 }
 0xe08   : > { %2508 = vmatprep.subr.bf16.mxu0 %v2740_v0 }
 0xe0b   : > { %2509 = vmatpush3.bf16.msra.mxu0 %v2598_v5 }
 0xe0c   : > { %2510 = vmatprep.subr.bf16.mxu0 %v2740_v0 }
 0xe0f   : > { %2511 = vmatpush3.bf16.msra.mxu0 %v2599_v21 }
 0xe10   : > { %2512 = vmatprep.subr.bf16.mxu0 %v2740_v0  ;;  %v2270_v0 = vld [vmem:[%s3340_s9 + $0x1] ss:$0 sm:$0xff] }
 0xe13   : > { %2513 = vmatpush3.bf16.msra.mxu0 %v2600_v22 }
 0xed9   : > { %v1861_v57 = vpop.f32.mrb[40].mxu0 }
 0xeda   : > { %v1867_v58 = vadd.f32 %v1861_v57, %v3127_v2  ;;  %v2496_v59 = vpop.f32.mrb[41].mxu0  ;;  %v2596_v2 = vld [vmem:[%s3337_s6 + $0x18] sm:$0xff]  }
 0xedb   : > { %v1864_v27 = vpop.f32.mrb[42].mxu0  ;;  %2501 = vmatpush3.bf16.msra.mxu1 %v2596_v2 }
 0xedc   : > { %v2497_v60 = vpop.f32.mrb[43].mxu0  ;;  %v1872_v61 = vsel %vm464_vm1, %v1867_v58, 0.0  ;;  %v1876_v62 = vmul.f32 %v1867_v58, %v1867_v58 }
 0xedd   : > { %1873 = vadd.xlane.f32.xlu0 %v1872_v61 }
 0xede   : > { %v1877_v63 = vsel %vm464_vm1, %v1876_v62, 0.0 }
 0xedf   : > { %1878 = vadd.xlane.f32.xlu1 %v1877_v63 }
 0xf6a   : > { %v1874_v8 = vpop.xlane.xlu0 %1873 }
 0xf6b   : > { %v1875_v9 = vmul.f32 0.03125, %v1874_v8 }
 0xf6c   : > { %v1879_v10 = vpop.xlane.xlu1 %1878 }
 0xf6d   : > { %v1881_v11 = vmul.f32 %v1875_v9, %v1875_v9  ;;  %v1880_v12 = vmul.f32 0.03125, %v1879_v10  ;;  %v1883_v14 = vsub.f32 %v1867_v58, %v1875_v9 }
 0xf6f   : > { %v1882_v13 = vsub.f32 %v1880_v12, %v1881_v11 }
 0xf71   : > { %v1884_v3 = vadd.f32 1e-05, %v1882_v13 }
 0xf73   : > { %2637 = vrsqrt.f32 %v1884_v3 }
 0xf7d   : > { %v2638_v15 = vpop.eup %2637 }
 0xf7e   : > { %v1886_v17 = vmul.f32 %v2638_v15, %v1883_v14 }
 0xf80   : > { %v1893_v7 = vmul.f32 %v2250_v16, %v1886_v17 }
 0xf82   : > { %v1900_v19 = vadd.f32 %v2251_v18, %v1893_v7 }
 0xf84   : > { %v1901_v20 = vpack.c.bf16 %v1900_v19, %v1900_v19 }
 0xf86   : > { %2503 = vmatmul.mubr.msk.bf16.vlgmr.msra.gmra.mrb[44].mxu1 %vm464_vm1, %v1901_v20 }
0x1059   : > { %v1964_v24 = vpop.f32.mrb[44].mxu1 }
0x105a   : > { %v1965_v25 = vadd.f32 %v2257_v23, %v1964_v24  ;;  %v2504_v6 = vpop.f32.mrb[45].mxu1 }
0x105b   : > { %v1967_v26 = vpop.f32.mrb[46].mxu1 }
0x105c   : > { %v1970_v28 = vmax.f32 %v1965_v25, 0.0  ;;  %v2505_v29 = vpop.f32.mrb[47].mxu1 }
0x105e   : > { %v1971_v30 = vpack.c.bf16 %v1970_v28, %v1970_v28 }
0x1060   : > { %2515 = vmatmul.mubr.msk.bf16.vlgmr.msra.gmra.mrb[44].mxu0 %vm1195_vm10, %v1971_v30 }
0x1133   : > { %v2050_v31 = vpop.f32.mrb[44].mxu0 }
0x1134   : > { %v2051_v32 = vadd.f32 %v2270_v0, %v2050_v31  ;;  %v2516_v33 = vpop.f32.mrb[45].mxu0 }
0x1135   : > { %v2053_v34 = vpop.f32.mrb[46].mxu0 }
0x1136   : > { %v2056_v35 = vadd.f32 %v2051_v32, %v1900_v19  ;;  %v2517_v36 = vpop.f32.mrb[47].mxu0 }
0x1138   : > { %v2061_v37 = vsel %vm464_vm1, %v2056_v35, 0.0  ;;  %v2065_v38 = vmul.f32 %v2056_v35, %v2056_v35 }
0x1139   : > { %2062 = vadd.xlane.f32.xlu0 %v2061_v37 }
0x113a   : > { %v2066_v39 = vsel %vm464_vm1, %v2065_v38, 0.0 }
0x113d   : > { %2067 = vadd.xlane.f32.xlu0 %v2066_v39 }
0x11c6   : > { %v2063_v40 = vpop.xlane.xlu0 %2062 }
0x11c7   : > { %v2064_v41 = vmul.f32 0.03125, %v2063_v40 }
0x11c9   : > { %v2070_v43 = vmul.f32 %v2064_v41, %v2064_v41  ;;  %v2072_v47 = vsub.f32 %v2056_v35, %v2064_v41 }
0x11ca   : > { %v2068_v42 = vpop.xlane.xlu0 %2067 }
0x11cb   : > { %v2069_v44 = vmul.f32 0.03125, %v2068_v42 }
0x11cd   : > { %v2071_v45 = vsub.f32 %v2069_v44, %v2070_v43 }
0x11cf   : > { %v2073_v46 = vadd.f32 1e-05, %v2071_v45 }
0x11d1   : > { %2639 = vrsqrt.f32 %v2073_v46 }
0x11db   : > { %v2640_v48 = vpop.eup %2639 }
0x11dc   : > { %v2075_v50 = vmul.f32 %v2640_v48, %v2072_v47 }
0x11de   : > { %v2082_v52 = vmul.f32 %v2278_v49, %v2075_v50 }
0x11e0   : > { %v2089_v53 = vadd.f32 %v2279_v51, %v2082_v52 }
0x11e2   : > { %2090 = vst.msk [vmem:[%s439_s17] sm:$0xff] %vm464_vm1, %v2089_v53 }
0x11e3   : > { %2684 = shalt.err (!%p2681_p5)
}
0x11e4   : > { %s2685_s18 = scalar_lea.hbm %s3286_s26, 128  ;;  %s2689_s17 = scalar_lea.hbm %s3343_s12, 256 }
0x11e5   : > { %p2686_p8 = scmp.ne.s32.totalorder %s3286_s26, %s2685_s18  ;;  %p2690_p1 = scmp.lt.u32.totalorder %s3286_s26, %s3343_s12 }
0x11e6   : > { %p2691_p3 = scmp.lt.u32.totalorder %s2689_s17, %s2685_s18  ;;  %p2693_p11 = scmp.lt.u32.totalorder %s2685_s18, %s3286_s26 }
0x11e7   : > { %p2687_p9 = pnand %p2686_p8, %p3382_p12 }
0x11e8   : > { %p2692_p6 = por %p2691_p3, %p2690_p1 }
0x11e9   : > { %p2688_p0 = pneg %p2687_p9 }
0x11ea   : > { %p2694_p13 = por %p2693_p11, %p2692_p6 }
0x11ec   : > { %p2695_p7 = pnand %p2694_p13, %p2688_p0 }
0x11ee   : > { %2698 = shalt.err (!%p2695_p7)
}
0x11ef   : > { %2520 = dma.vmem_to_hbm [thread:$0]  (%p3382_p12), %s3288_s14, 128, %s3286_s26, %s2092_s28  }
0x11f0 PF: > { %s2117_s20 = sand.u32 1, %s2725_s21   ;;  %p3383_p10 = scmp.ne.s32.totalorder %s3366_s16, 0 }
0x11f1   : > { %p3384_p2 = scmp.ge.s32.totalorder %s2737_s24, 2  ;;  %s2118_s25 = scalar_lea.sflag [#allocation5], %s2117_s20 }
0x11f3   : > { %p2527_p4 = pnand %p3384_p2, %p3383_p10 }
0x11f5   : > { %2720 = dma.done.wait (!%p2527_p4), %s2118_s25, 128  }
0x11f6   : > { %2722 = vsyncadd (!%p2527_p4), %s2118_s25, 4294967168  ;;  %s3385_s24 = sld [smem:[#allocation10_spill]]  ;;  %s3386_s13 = sld [smem:[#allocation9_spill]] }
0x11f7   : > { %s3387_s23 = sld [smem:[#allocation11_spill]]  ;;  %s3388_s21 = smov %s2729_s22 }
0x11fc   : > { %p25_p5 = scmp.ge.s32.totalorder %s3385_s24, 4   ;;  %s3389_s22 = smov %s3386_s13 }
0x11fe   :  { %27 = sbr.rel (!%p25_p5) target bundleno = 5 (0x5), region = 126 }
0x1205   :  { %2123 = vsyncpa [#allocation4], 1 }
0x1206   :  { %2125 = vsyncpa [#allocation4 + $0x1], 1 }
0x1207   :  { %2126 = vsyncpa [#allocation5], 1 }
0x1208   :  { %2128 = vsyncpa [#allocation5 + $0x1], 1 }

// kernel: tpu_custom_call.1
= control target key start
LH: loop header
LB: loop body
LE: loop exit
PB: predicated region body
PF: predicated region fallthrough
CT: control target
= control target key end

     0   :  { %17 = vsyncpa [#allocation4], 0  ;;  %s3331_s0 = inlined_call_operand.hbm [shape: f32[2,8,32], index: 0, kind: input, shape index: {}]   ;;  %s3332_s1 = inlined_call_operand.vmem [shape: f32[2,1,8], index: 1, kind: input, shape index: {}]   ;;  %s3333_s2 = inlined_call_operand.vmem [shape: bf16[2,32,96], index: 2, kind: input, shape index: {}]   ;;  %s3334_s3 = inlined_call_operand.vmem [shape: bf16[2,32,32], index: 3, kind: input, shape index: {}]   ;;  %s3335_s4 = inlined_call_operand.vmem [shape: f32[2,1,32], index: 4, kind: input, shape index: {}]   ;;  %s3336_s5 = inlined_call_operand.vmem [shape: f32[2,1,32], index: 5, kind: input, shape index: {}]   ;;  %s3337_s6 = inlined_call_operand.vmem [shape: bf16[2,32,64], index: 6, kind: input, shape index: {}]   ;;  %s3338_s7 = inlined_call_operand.vmem [shape: f32[2,1,64], index: 7, kind: input, shape index: {}]   ;;  %s3339_s8 = inlined_call_operand.vmem [shape: bf16[2,64,32], index: 8, kind: input, shape index: {}]   ;;  %s3340_s9 = inlined_call_operand.vmem [shape: f32[2,1,32], index: 9, kind: input, shape index: {}]   ;;  %s3341_s10 = inlined_call_operand.vmem [shape: f32[2,1,32], index: 10, kind: input, shape index: {}]   ;;  %s3342_s11 = inlined_call_operand.vmem [shape: f32[2,1,32], index: 11, kind: input, shape index: {}]   ;;  %s3343_s12 = inlined_call_operand.hbm [shape: f32[2,8,32], index: 12, kind: output, shape index: {}]  }
   0x1   :  { %19 = vsyncpa [#allocation4 + $0x1], 0 }
   0x2   :  { %20 = vsyncpa [#allocation5], 0 }
   0x3   :  { %22 = vsyncpa [#allocation5 + $0x1], 0  ;;  %s2823_s21 = smov 0   ;;  %s2825_s22 = smov 0  }
   0x4   :  { %s2827_s23 = smov 0   ;;  %s2829_s24 = smov 0  }
   0x5 LB: > { %3360 = sst [smem:[#allocation9_spill]] %s2733_s23  ;;  %s2844_s25 = sadd.s32 4294967295, %s2737_s24   ;;  %s2737_s24 = sphi %s2829_s24, %s3385_s24   ;;  %s2733_s23 = sphi %s2827_s23, %s3387_s23   ;;  %s2729_s22 = sphi %s2825_s22, %s3389_s22   ;;  %s2725_s21 = sphi %s2823_s21, %s3388_s21  }
   0x6   : > { %s2184_s26 = sadd.s32 4294967294, %s2737_s24   ;;  %s2848_s27 = sadd.s32 1, %s2737_s24  }
   0x7   : > { %3361 = sst [smem:[#allocation10_spill]] %s2848_s27  ;;  %s35_s28 = sadd.s32 1, %s2733_s23 }
   0x8   : > { %s32_s29 = ssub.s32 %s2737_s24, %s2848_s27  ;;  %p42_p0 = scmp.ne.s32.totalorder %s2733_s23, %s2729_s22 }
   0x9   : > { %p33_p1 = scmp.eq.s32.totalorder %s32_s29, 0  ;;  %p43_p2 = scmp.eq.s32.totalorder %s2737_s24, 0 }
   0xa   : > { %p48_p3 = scmp.ne.s32.totalorder %s2729_s22, %s2725_s21  ;;  %p49_p4 = scmp.eq.s32.totalorder %s2844_s25, 0 }
   0xb   : > { %s2860_s30 = scalar_select %p33_p1, %s2733_s23, %s35_s28  }
   0xc   : > { %p2862_p5 = por %p43_p2, %p42_p0  ;;  %p2866_p6 = por %p49_p4, %p48_p3 }
   0xd   : > { %3362 = sst [smem:[#allocation11_spill]] %s2860_s30  ;;  %p308_p7 = scmp.eq.s32.totalorder %s2844_s25, 1 }
   0xe   : > { %p314_p8 = scmp.eq.s32.totalorder %s2184_s26, 1  ;;  %p2530_p10 = scmp.lt.s32.totalorder %s2737_s24, 2 }
   0xf   : > { %p2873_p11 = por %p308_p7, %p42_p0  ;;  %s364_s17 = sand.u32 1, %s2733_s23  }
  0x10   : > { %p2877_p12 = por %p314_p8, %p48_p3  ;;  %s2188_s18 = sshll.u32 %s2737_s24, 7 }
  0x11   : > { %s3365_s15 = scalar_select %p2873_p11, 1, 0 }
  0x12   : > { %s3366_s16 = scalar_select %p2877_p12, 1, 0 }
  0x13   : > { %s2187_s19 = sshll.u32 %s364_s17, 3  ;;  %s2886_s29 = scalar_lea.hbm %s3331_s0, %s2188_s18 }
  0x14   : > { %s368_s26 = scalar_lea.vmem [#allocation3], %s2187_s19  ;;  %p2890_p13 = pnand %p2530_p10, %p2862_p5 }
  0x15   : > { %s375_s30 = sshll.u32 %s368_s26, 4  ;;  %s365_s20 = scalar_lea.sflag [#allocation4], %s364_s17  ;;  %s2894_s30 = int_to_ptr.vmem [resolvable:$true] %s375_s30 }
  0x16   : > { %s2641_s18 = scalar_lea.hbm %s2886_s29, 128  ;;  %p2643_p3 = pneg %p2890_p13 }
  0x17   : > { %p2642_p2 = scmp.ne.s32.totalorder %s2886_s29, %s2641_s18  ;;  %s2646_s28 = scalar_lea.hbm %s3331_s0, 256 }
  0x18   : > { %p2647_p5 = scmp.lt.u32.totalorder %s2886_s29, %s3331_s0  ;;  %p2648_p8 = scmp.lt.u32.totalorder %s2646_s28, %s2641_s18 }
  0x19   : > { %p2644_p4 = pnand %p2643_p3, %p2642_p2  ;;  %p2650_p9 = scmp.lt.u32.totalorder %s2641_s18, %s2886_s29 }
  0x1a   : > { %p2649_p10 = por %p2648_p8, %p2647_p5 }
  0x1b   : > { %p2645_p7 = pneg %p2644_p4 }
  0x1c   : > { %p2651_p0 = por %p2650_p9, %p2649_p10 }
  0x1e   : > { %p2652_p1 = pnand %p2651_p0, %p2645_p7 }
  0x20   : > { %2655 = shalt.err (!%p2652_p1)
}
  0x21   : > { %s2656_s17 = scalar_lea.vmem %s2894_s30, 128  ;;  %s2739_s13 = smov [#allocation3]  }
  0x22   : > { %p2657_p2 = scmp.ne.s32.totalorder %s2894_s30, %s2656_s17  ;;  %s2661_s19 = sshll.u32 %s2739_s13, 4  ;;  %s2662_s19 = int_to_ptr.vmem [resolvable:$false] %s2661_s19 }
  0x23   : > { %s2663_s23 = scalar_lea.vmem %s2662_s19, 256  ;;  %p2664_p11 = scmp.lt.s32.totalorder %s2894_s30, %s2662_s19 }
  0x24   : > { %p2659_p4 = pnand %p2657_p2, %p2643_p3  ;;  %p2665_p5 = scmp.lt.s32.totalorder %s2663_s23, %s2656_s17 }
  0x26   : > { %p2660_p12 = pneg %p2659_p4  ;;  %p2666_p8 = por %p2665_p5, %p2664_p11 }
  0x28   : > { %p2667_p9 = pnand %p2666_p8, %p2660_p12 }
  0x2a   : > { %2670 = shalt.err (!%p2667_p9)
}
  0x2b   : > { %2525 = dma.hbm_to_vmem [thread:$0]  (!%p2890_p13), %s2886_s29, 128, %s2894_s30, %s365_s20  }
  0x2c   : > { %p3368_p0 = scmp.lt.s32.totalorder %s2737_s24, 3  ;;  %p3369_p1 = scmp.ge.s32.totalorder %s2737_s24, 1 }
  0x2e   : > { %p387_p3 = pnand %p3369_p1, %p3368_p0 }
  0x2f   : > { %s2928_s18 = sand.u32 (!%p387_p3), 1, %s2729_s22  }
  0x30   : > { %390 = sbr.rel (%p387_p3) target bundleno = 4592 (0x11f0), region = 68  ;;  %s3348_s28 = sshll.u32 (!%p387_p3), %s2928_s18, 3 }
  0x31   : > { %s393_s26 = scalar_lea.sflag (!%p387_p3), [#allocation4], %s2928_s18  ;;  %s396_s27 = scalar_lea.vmem (!%p387_p3), [#allocation3], %s3348_s28 }
  0x37   : > { %2716 = dma.done.wait (%p2866_p6), %s393_s26, 128  }
  0x38   : > { %2718 = vsyncadd (%p2866_p6), %s393_s26, 4294967168  ;;  %v2740_v0 = vmov 0.0   ;;  %vm2741_vm0 = vmmov 0   ;;  %v2581_v1 = vld [vmem:[%s3333_s2] sm:$0xff]   ;;  %v2582_v2 = vld [vmem:[%s3333_s2 + $0x8] sm:$0xff]   ;;  %vm464_vm1 = vcmask 261120   ;;  %v561_v21 = vlaneseq }
  0x39   : > { %2350 = vmatprep.subr.bf16.mxu1 %v2740_v0  ;;  %2354 = vmatprep.mubr.msk.bf16.mxu1 %vm2741_vm0, %v2740_v0  ;;  %v2950_v3 = vld [vmem:[%s396_s27] sm:$0xff]  ;;  %s3359_s14 = smov 120   ;;  %s2743_s13 = smov 96   ;;  %vm512_vm2 = vcmask 64512   ;;  %v2749_v25 = vmov 0   ;;  %vm584_vm5 = vcmask 1043456  }
  0x3a   : > { %2364 = vmatprep.subr.bf16.mxu0 %v2740_v0  ;;  %2366 = vmatprep.mubr.msk.bf16.mxu0 %vm2741_vm0, %v2740_v0  ;;  %v447_v4 = vpack.c.bf16 %v2950_v3, %v2950_v3  ;;  %s3354_s19 = smov 80   ;;  %s2745_s23 = smov 88   ;;  %v562_v23 = vshrl.u32 %v561_v21, 7  ;;  %vm629_vm6 = vcmask 60416   ;;  %vm750_vm7 = vcmask 126016  }
  0x3b   : > { %2351 = vmatpush3.bf16.msra.mxu1 %v2581_v1  ;;  %s3353_s26 = smov 72   ;;  %s2747_s27 = smov 112   ;;  %vm871_vm8 = vcmask 191616   ;;  %vm992_vm9 = vcmask 257216   ;;  %vm1195_vm10 = vcmask 523264  }
  0x3c   : > { %2352 = vmatprep.subr.bf16.mxu1 %v2740_v0  ;;  %s3358_s30 = smov 104   ;;  %p440_p6 = scmp.lt.s32.totalorder %s2844_s25, 1  ;;  %v563_v24 = vsub.s32 0, %v562_v23 }
  0x3d   : > { %s3350_s20 = smov 40   ;;  %s3349_s17 = smov 48  }
  0x3e   : > { %s441_s29 = scalar_select %p440_p6, %s2844_s25, 1 }
  0x3f   : > { %2353 = vmatpush3.bf16.msra.mxu1 %v2582_v2  ;;  %p3382_p12 = scmp.ne.s32.totalorder %s3365_s15, 0 }
  0x40   : > { %2358 = vmatprep.subr.bf16.mxu1 %v2740_v0  ;;  %s442_s28 = scalar_lea.vmem %s3332_s1, %s441_s29  ;;  %s3351_s29 = smov 64  }
  0x41   : > { %v444_v22 = vld [vmem:[%s442_s28] sm:$0x1]  ;;  %s3352_s28 = smov 56  }
  0x42   : > { %2355 = vmatmul.mubr.msk.bf16.vlgmr.msra.gmra.mrb[0].mxu1 %vm464_vm1, %v447_v4  ;;  %vm445_vm3 = vcmp.ne.f32.partialorder %v444_v22, 0.0 }
  0x43   : > { %2360 = vmatprep.mubr.msk.bf16.mxu1 %vm2741_vm0, %v2740_v0  ;;  %v560_v26 = vsel %vm445_vm3, 1, %v2749_v25 }
  0x44   : > { %v3001_v27 = vrot.slane %v560_v26, %v563_v24 }
  0x46   : > { %vm565_vm4 = vcmp.eq.s32.totalorder %v3001_v27, 1 }
 0x115   : > { %v502_v5 = vpop.f32.mrb[0].mxu1 }
 0x116   : > { %v2959_v6 = vpack.c.bf16 %v502_v5, %v502_v5  ;;  %v2356_v7 = vpop.f32.mrb[1].mxu1 }
 0x117   : > { %v505_v8 = vpop.f32.mrb[2].mxu1 }
 0x118   : > { %631 = vrot.lane.b32.xlu1 %v2959_v6, %s3359_s14  ;;  %510 = vrot.lane.b32.xlu0 %v2959_v6, %s2743_s13  ;;  %v2357_v9 = vpop.f32.mrb[3].mxu1 }
 0x11c   : > { %754 = vrot.lane.b32.xlu1 %v2959_v6, %s3354_s19  ;;  %633 = vrot.lane.b32.xlu0 %v2959_v6, %s2745_s23  ;;  %s3356_s19 = smov 16  }
 0x120   : > { %875 = vrot.lane.b32.xlu1 %v2959_v6, %s3353_s26  ;;  %752 = vrot.lane.b32.xlu0 %v2959_v6, %s2747_s27  ;;  %s3371_s26 = smov 104  }
 0x124   : > { %873 = vrot.lane.b32.xlu0 %v2959_v6, %s3358_s30 }
 0x18a   : > { %v511_v10 = vpop.permute.xlu0 %510  ;;  %v632_v13 = vpop.permute.xlu1 %631 }
 0x18b   : > { %v517_v11 = vsel %vm512_vm2, %v511_v10, 0 }
 0x18c   : > { %2359 = vmatpush3.bf16.xpose.msra.mxu1 %v517_v11 }
 0x18d   : > { %2370 = vmatprep.subr.bf16.mxu1 %v2740_v0 }
 0x18e   : > { %v634_v12 = vpop.permute.xlu0 %633  ;;  %v755_v15 = vpop.permute.xlu1 %754 }
 0x18f   : > { %v639_v14 = vsel %vm512_vm2, %v634_v12, 0  ;;  %v760_v16 = vsel %vm512_vm2, %v755_v15, 0 }
 0x192   : > { %v876_v17 = vpop.permute.xlu1 %875  ;;  %v753_v18 = vpop.permute.xlu0 %752 }
 0x193   : > { %2361 = vmatmul.mubr.msk.bf16.vlgmr.msra.gmra.mrb[4].mxu1 %vm512_vm2, %v2959_v6  ;;  %v881_v19 = vsel %vm512_vm2, %v876_v17, 0 }
 0x194   : > { %2371 = vmatpush3.bf16.xpose.msra.mxu1 %v639_v14  ;;  %2372 = vmatprep.mubr.msk.bf16.mxu1 %vm2741_vm0, %v2740_v0 }
 0x195   : > { %2382 = vmatprep.subr.bf16.mxu1 %v2740_v0 }
 0x196   : > { %v874_v20 = vpop.permute.xlu0 %873 }
 0x19b   : > { %2373 = vmatmul.mubr.msk.bf16.vlgmr.msra.gmra.mrb[8].mxu1 %vm512_vm2, %v632_v13 }
 0x19c   : > { %2383 = vmatpush3.bf16.xpose.msra.mxu1 %v760_v16  ;;  %2384 = vmatprep.mubr.msk.bf16.mxu1 %vm2741_vm0, %v2740_v0 }
 0x19d   : > { %2394 = vmatprep.subr.bf16.mxu1 %v2740_v0 }
 0x1a3   : > { %2385 = vmatmul.mubr.msk.bf16.vlgmr.msra.gmra.mrb[12].mxu1 %vm512_vm2, %v753_v18 }
 0x1a4   : > { %2395 = vmatpush3.bf16.xpose.msra.mxu1 %v881_v19  ;;  %2396 = vmatprep.mubr.msk.bf16.mxu1 %vm2741_vm0, %v2740_v0 }
 0x1a5   : > { %2406 = vmatprep.subr.bf16.mxu1 %v2740_v0 }
 0x1ab   : > { %2397 = vmatmul.mubr.msk.bf16.vlgmr.msra.gmra.mrb[16].mxu1 %vm512_vm2, %v874_v20 }
 0x1ac   : > { %2410 = vmatprep.mubr.msk.bf16.mxu1 %vm2741_vm0, %v2740_v0 }
 0x266   : > { %v553_v28 = vpop.f32.mrb[4].mxu1 }
 0x267   : > { %v559_v29 = vmul.f32 0.35355338, %v553_v28  ;;  %v2362_v30 = vpop.f32.mrb[5].mxu1 }
 0x268   : > { %v556_v31 = vpop.f32.mrb[6].mxu1 }
 0x269   : > { %v2363_v32 = vpop.f32.mrb[7].mxu1  ;;  %v566_v33 = vsel %vm565_vm4, %v559_v29, -1000000.0 }
 0x26a   : > { %v567_v34 = vsel %vm512_vm2, %v566_v33, -inf }
 0x26b   : > { %568 = vmax.xlane.f32.xlu1 %v567_v34 }
 0x26e   : > { %v675_v35 = vpop.f32.mrb[8].mxu1 }
 0x26f   : > { %v681_v36 = vmul.f32 0.35355338, %v675_v35  ;;  %v2374_v37 = vpop.f32.mrb[9].mxu1 }
 0x270   : > { %v678_v38 = vpop.f32.mrb[10].mxu1 }
 0x271   : > { %v2375_v39 = vpop.f32.mrb[11].mxu1  ;;  %v682_v40 = vsel %vm565_vm4, %v681_v36, -1000000.0 }
 0x272   : > { %v683_v41 = vsel %vm512_vm2, %v682_v40, -inf }
 0x273   : > { %684 = vmax.xlane.f32.xlu0 %v683_v41 }
 0x276   : > { %v796_v42 = vpop.f32.mrb[12].mxu1 }
 0x277   : > { %v802_v43 = vmul.f32 0.35355338, %v796_v42  ;;  %v2386_v44 = vpop.f32.mrb[13].mxu1 }
 0x278   : > { %v799_v45 = vpop.f32.mrb[14].mxu1 }
 0x279   : > { %v2387_v46 = vpop.f32.mrb[15].mxu1  ;;  %v803_v47 = vsel %vm565_vm4, %v802_v43, -1000000.0 }
 0x27a   : > { %v804_v48 = vsel %vm512_vm2, %v803_v47, -inf }
 0x27b   : > { %805 = vmax.xlane.f32.xlu0 %v804_v48 }
 0x27e   : > { %v917_v49 = vpop.f32.mrb[16].mxu1 }
 0x27f   : > { %v923_v50 = vmul.f32 0.35355338, %v917_v49  ;;  %v2398_v51 = vpop.f32.mrb[17].mxu1  ;;  %v2583_v49 = vld [vmem:[%s3334_s3] sm:$0xff]  }
 0x280   : > { %v920_v52 = vpop.f32.mrb[18].mxu1  ;;  %2407 = vmatpush3.bf16.msra.mxu1 %v2583_v49 }
 0x281   : > { %v2399_v53 = vpop.f32.mrb[19].mxu1  ;;  %v924_v54 = vsel %vm565_vm4, %v923_v50, -1000000.0  ;;  %v2584_v50 = vld [vmem:[%s3334_s3 + $0x8] sm:$0xff]   ;;  %2408 = vmatprep.subr.bf16.mxu1 %v2740_v0 }
 0x282   : > { %v925_v55 = vsel %vm512_vm2, %v924_v54, -inf }
 0x283   : > { %926 = vmax.xlane.f32.xlu1 %v925_v55 }
 0x284   : > { %2409 = vmatpush3.bf16.msra.mxu1 %v2584_v50  ;;  %v2591_v50 = vld [vmem:[%s3333_s2 + $0x10] sm:$0xff]  }
 0x285   : > { %2422 = vmatprep.subr.bf16.mxu1 %v2740_v0 }
 0x2f8   : > { %v569_v56 = vpop.xlane.xlu1 %568 }
 0x2f9   : > { %v570_v57 = vsub.f32 %v566_v33, %v569_v56 }
 0x2fb   : > { %v571_v58 = vmul.f32 1.442695, %v570_v57 }
 0x2fd   : > { %2601 = vpow2.f32 %v571_v58 }
 0x300   : > { %v685_v59 = vpop.xlane.xlu0 %684 }
 0x301   : > { %v686_v60 = vsub.f32 %v682_v40, %v685_v59 }
 0x303   : > { %v687_v61 = vmul.f32 1.442695, %v686_v60 }
 0x305   : > { %2603 = vpow2.f32 %v687_v61 }
 0x307   : > { %v2602_v62 = vpop.eup %2601 }
 0x308   : > { %v806_v63 = vpop.xlane.xlu0 %805  ;;  %v573_v1 = vsel %vm512_vm2, %v2602_v62, 0.0 }
 0x309   : > { %v807_v2 = vsub.f32 %v803_v47, %v806_v63  ;;  %574 = vadd.xlane.f32.xlu0 %v573_v1 }
 0x30b   : > { %v808_v4 = vmul.f32 1.442695, %v807_v2 }
 0x30d   : > { %2605 = vpow2.f32 %v808_v4 }
 0x30f   : > { %v2604_v5 = vpop.eup %2603 }
 0x310   : > { %v689_v7 = vsel %vm512_vm2, %v2604_v5, 0.0  ;;  %v927_v10 = vpop.xlane.xlu1 %926 }
 0x311   : > { %690 = vadd.xlane.f32.xlu1 %v689_v7  ;;  %v928_v11 = vsub.f32 %v924_v54, %v927_v10 }
 0x313   : > { %v929_v12 = vmul.f32 1.442695, %v928_v11 }
 0x315   : > { %2607 = vpow2.f32 %v929_v12  ;;  %v2585_v12 = vld [vmem:[%s3337_s6] sm:$0xff]  }
 0x317   : > { %v2606_v8 = vpop.eup %2605 }
 0x318   : > { %v810_v9 = vsel %vm512_vm2, %v2606_v8, 0.0 }
 0x319   : > { %811 = vadd.xlane.f32.xlu0 %v810_v9 }
 0x31f   : > { %v2608_v13 = vpop.eup %2607 }
 0x320   : > { %v931_v14 = vsel %vm512_vm2, %v2608_v13, 0.0 }
 0x322   : > { %695 = vrot.lane.b32.xlu1 %v2959_v6, %s3352_s28  ;;  %s3372_s28 = smov 80  }
 0x32f   : > { %579 = vrot.lane.b32.xlu0 %v2959_v6, %s3351_s29  ;;  %s3355_s29 = smov 24  }
 0x333   : > { %937 = vrot.lane.b32.xlu0 %v2959_v6, %s3350_s20  ;;  %s3373_s20 = smov 72  }
 0x346   : > { %932 = vadd.xlane.f32.xlu1 %v931_v14  ;;  %v2588_v14 = vld [vmem:[%s3339_s8 + $0x8] sm:$0xff]  }
 0x357   : > { %816 = vrot.lane.b32.xlu1 %v2959_v6, %s3349_s17  ;;  %s3357_s17 = smov 8  }
 0x396   : > { %v575_v15 = vpop.xlane.xlu0 %574 }
 0x397   : > { %2609 = vrcp.f32 %v575_v15 }
 0x39e   : > { %v691_v16 = vpop.xlane.xlu1 %690 }
 0x39f   : > { %2611 = vrcp.f32 %v691_v16 }
 0x3a1   : > { %v2610_v17 = vpop.eup %2609 }
 0x3a2   : > { %v577_v19 = vmul.f32 %v2610_v17, %v2602_v62  ;;  %v696_v22 = vpop.permute.xlu1 %695 }
 0x3a3   : > { %v701_v25 = vsel %vm584_vm5, %v696_v22, 0 }
 0x3a4   : > { %v578_v23 = vpack.c.bf16 %v577_v19, %v577_v19 }
 0x3a6   : > { %v812_v18 = vpop.xlane.xlu0 %811 }
 0x3a7   : > { %2613 = vrcp.f32 %v812_v18 }
 0x3a9   : > { %v2612_v24 = vpop.eup %2611 }
 0x3aa   : > { %v580_v20 = vpop.permute.xlu0 %579  ;;  %v693_v6 = vmul.f32 %v2612_v24, %v2604_v5  ;;  %v2209_v24 = vld [vmem:[%s3335_s4] ss:$0 sm:$0xff] }
 0x3ab   : > { %v586_v21 = vsel %vm584_vm5, %v580_v20, 0 }
 0x3ac   : > { %2365 = vmatpush3.bf16.msra.mxu0 %v586_v21  ;;  %v694_v26 = vpack.c.bf16 %v693_v6, %v693_v6  ;;  %v2210_v6 = vld [vmem:[%s3336_s5] ss:$0 sm:$0xff] }
 0x3ad   : > { %2376 = vmatprep.subr.bf16.mxu0 %v2740_v0 }
 0x3ae   : > { %v938_v33 = vpop.permute.xlu0 %937 }
 0x3af   : > { %2367 = vmatmul.mubr.msk.bf16.vlgmr.msra.gmra.mrb[0].mxu0 %vm512_vm2, %v578_v23  ;;  %v943_v35 = vsel %vm584_vm5, %v938_v33, 0 }
 0x3b0   : > { %2377 = vmatpush3.bf16.msra.mxu0 %v701_v25  ;;  %2378 = vmatprep.mubr.msk.bf16.mxu0 %vm2741_vm0, %v2740_v0 }
 0x3b1   : > { %2388 = vmatprep.subr.bf16.mxu0 %v2740_v0  ;;  %v2614_v28 = vpop.eup %2613 }
 0x3b2   : > { %v814_v30 = vmul.f32 %v2614_v28, %v2606_v8 }
 0x3b4   : > { %v815_v34 = vpack.c.bf16 %v814_v30, %v814_v30  ;;  %v2589_v30 = vld [vmem:[%s3339_s8 + $0x10] sm:$0xff]  }
 0x3b7   : > { %2379 = vmatmul.mubr.msk.bf16.vlgmr.msra.gmra.mrb[4].mxu0 %vm512_vm2, %v694_v26 }
 0x3b8   : > { %2390 = vmatprep.mubr.msk.bf16.mxu0 %vm2741_vm0, %v2740_v0 }
 0x3d3   : > { %v933_v29 = vpop.xlane.xlu1 %932 }
 0x3d4   : > { %2615 = vrcp.f32 %v933_v29 }
 0x3d7   : > { %v817_v31 = vpop.permute.xlu1 %816 }
 0x3d8   : > { %v822_v32 = vsel %vm584_vm5, %v817_v31, 0  ;;  %v2590_v31 = vld [vmem:[%s3339_s8 + $0x18] sm:$0xff]  }
 0x3d9   : > { %2389 = vmatpush3.bf16.msra.mxu0 %v822_v32  ;;  %v2211_v32 = vld [vmem:[%s3338_s7] ss:$0 sm:$0xff] }
 0x3da   : > { %2400 = vmatprep.subr.bf16.mxu0 %v2740_v0 }
 0x3dc   : > { %2391 = vmatmul.mubr.msk.bf16.vlgmr.msra.gmra.mrb[8].mxu0 %vm512_vm2, %v815_v34 }
 0x3dd   : > { %2401 = vmatpush3.bf16.msra.mxu0 %v943_v35  ;;  %2402 = vmatprep.mubr.msk.bf16.mxu0 %vm2741_vm0, %v2740_v0 }
 0x3de   : > { %v2616_v36 = vpop.eup %2615  ;;  %2414 = vmatprep.subr.bf16.mxu0 %v2740_v0 }
 0x3df   : > { %v935_v37 = vmul.f32 %v2616_v36, %v2608_v13  ;;  %v2586_v13 = vld [vmem:[%s3337_s6 + $0x8] sm:$0xff]  }
 0x3e1   : > { %v936_v38 = vpack.c.bf16 %v935_v37, %v935_v37 }
 0x3e4   : > { %2403 = vmatmul.mubr.msk.bf16.vlgmr.msra.gmra.mrb[12].mxu0 %vm512_vm2, %v936_v38 }
 0x3e5   : > { %2418 = vmatprep.mubr.msk.bf16.mxu0 %vm2741_vm0, %v2740_v0  ;;  %2415 = vmatpush3.bf16.msra.mxu0 %v2585_v12 }
 0x3e6   : > { %2416 = vmatprep.subr.bf16.mxu0 %v2740_v0 }
 0x3e9   : > { %2417 = vmatpush3.bf16.msra.mxu0 %v2586_v13 }
 0x3ea   : > { %2434 = vmatprep.subr.bf16.mxu0 %v2740_v0 }
 0x482   : > { %v622_v39 = vpop.f32.mrb[0].mxu0 }
 0x483   : > { %v628_v40 = vpack.c.bf16 %v622_v39, %v622_v39  ;;  %v2368_v41 = vpop.f32.mrb[1].mxu0 }
 0x484   : > { %v625_v42 = vpop.f32.mrb[2].mxu0 }
 0x485   : > { %630 = vst.msk [vmem:[#allocation2] sm:$0xf] %vm629_vm6, %v628_v40  ;;  %v2369_v43 = vpop.f32.mrb[3].mxu0  ;;  %v2215_v40 = vld [vmem:[%s3340_s9] ss:$0 sm:$0xff] }
 0x48a   : > { %v737_v44 = vpop.f32.mrb[4].mxu0 }
 0x48b   : > { %v2284_v45 = vpack.c.bf16 %v737_v44, %v737_v44  ;;  %v2380_v46 = vpop.f32.mrb[5].mxu0 }
 0x48c   : > { %v740_v47 = vpop.f32.mrb[6].mxu0 }
 0x48d   : > { %747 = vrot.lane.b32.xlu1 %v2284_v45, %s3357_s17  ;;  %v2381_v48 = vpop.f32.mrb[7].mxu0  ;;  %s3378_s17 = smov 8  }
 0x4af   : > { %v858_v51 = vpop.f32.mrb[8].mxu0 }
 0x4b0   : > { %v2285_v52 = vpack.c.bf16 %v858_v51, %v858_v51  ;;  %v2392_v53 = vpop.f32.mrb[9].mxu0  ;;  %v2592_v51 = vld [vmem:[%s3333_s2 + $0x18] sm:$0xff]  }
 0x4b1   : > { %v861_v54 = vpop.f32.mrb[10].mxu0 }
 0x4b2   : > { %868 = vrot.lane.b32.xlu0 %v2285_v52, %s3356_s19  ;;  %v2393_v55 = vpop.f32.mrb[11].mxu0  ;;  %s3377_s19 = smov 48  }
 0x4b7   : > { %v979_v56 = vpop.f32.mrb[12].mxu0 }
 0x4b8   : > { %v2286_v57 = vpack.c.bf16 %v979_v56, %v979_v56  ;;  %v2404_v58 = vpop.f32.mrb[13].mxu0 }
 0x4b9   : > { %v982_v59 = vpop.f32.mrb[14].mxu0 }
 0x4ba   : > { %989 = vrot.lane.b32.xlu1 %v2286_v57, %s3355_s29  ;;  %v2405_v60 = vpop.f32.mrb[15].mxu0  ;;  %s3370_s29 = smov 120  }
 0x4ff   : > { %v748_v61 = vpop.permute.xlu1 %747 }
 0x500   : > { %751 = vst.msk [vmem:[#allocation2] sm:$0xf] %vm750_vm7, %v748_v61  ;;  %v2221_v61 = vld [vmem:[%s3341_s10] ss:$0 sm:$0xff] }
 0x524   : > { %v869_v62 = vpop.permute.xlu0 %868 }
 0x525   : > { %872 = vst.msk [vmem:[#allocation2] sm:$0xf] %vm871_vm8, %v869_v62 }
 0x52c   : > { %v990_v63 = vpop.permute.xlu1 %989 }
 0x52d   : > { %993 = vst.msk [vmem:[#allocation2] sm:$0xf] %vm992_vm9, %v990_v63  ;;  %v2222_v63 = vld [vmem:[%s3342_s11] ss:$0 sm:$0xff] }
 0x534   : > { %v994_v1 = vld [vmem:[#allocation2] sm:$0xf] }
 0x535   : > { %2411 = vmatmul.mubr.msk.bf16.vlgmr.msra.gmra.mrb[20].mxu1 %vm464_vm1, %v994_v1 }
 0x536   : > { %2430 = vmatprep.mubr.msk.bf16.mxu1 %vm2741_vm0, %v2740_v0 }
 0x608   : > { %v1048_v2 = vpop.f32.mrb[20].mxu1 }
 0x609   : > { %v1054_v4 = vadd.f32 %v1048_v2, %v2950_v3  ;;  %v2412_v5 = vpop.f32.mrb[21].mxu1  ;;  %v2587_v3 = vld [vmem:[%s3339_s8] sm:$0xff]  }
 0x60a   : > { %v1051_v7 = vpop.f32.mrb[22].mxu1  ;;  %2423 = vmatpush3.bf16.msra.mxu1 %v2587_v3 }
 0x60b   : > { %v2413_v8 = vpop.f32.mrb[23].mxu1  ;;  %v1057_v9 = vsel %vm464_vm1, %v1054_v4, 0.0  ;;  %v1062_v10 = vmul.f32 %v1054_v4, %v1054_v4  ;;  %2424 = vmatprep.subr.bf16.mxu1 %v2740_v0 }
 0x60c   : > { %1058 = vadd.xlane.f32.xlu0 %v1057_v9 }
 0x60d   : > { %v1063_v11 = vsel %vm464_vm1, %v1062_v10, 0.0 }
 0x60e   : > { %1064 = vadd.xlane.f32.xlu1 %v1063_v11  ;;  %2425 = vmatpush3.bf16.msra.mxu1 %v2588_v14 }
 0x60f   : > { %2426 = vmatprep.subr.bf16.mxu1 %v2740_v0 }
 0x612   : > { %2427 = vmatpush3.bf16.msra.mxu1 %v2589_v30 }
 0x613   : > { %2428 = vmatprep.subr.bf16.mxu1 %v2740_v0 }
 0x616   : > { %2429 = vmatpush3.bf16.msra.mxu1 %v2590_v31 }
 0x617   : > { %2448 = vmatprep.subr.bf16.mxu1 %v2740_v0 }
 0x699   : > { %v1059_v15 = vpop.xlane.xlu0 %1058 }
 0x69a   : > { %v1061_v16 = vmul.f32 0.03125, %v1059_v15 }
 0x69b   : > { %v1065_v17 = vpop.xlane.xlu1 %1064 }
 0x69c   : > { %v1067_v18 = vmul.f32 %v1061_v16, %v1061_v16  ;;  %v1066_v19 = vmul.f32 0.03125, %v1065_v17  ;;  %v1069_v22 = vsub.f32 %v1054_v4, %v1061_v16 }
 0x69e   : > { %v1068_v20 = vsub.f32 %v1066_v19, %v1067_v18 }
 0x6a0   : > { %v1070_v21 = vadd.f32 1e-05, %v1068_v20 }
 0x6a2   : > { %2617 = vrsqrt.f32 %v1070_v21 }
 0x6ac   : > { %v2618_v23 = vpop.eup %2617 }
 0x6ad   : > { %v1072_v25 = vmul.f32 %v2618_v23, %v1069_v22 }
 0x6af   : > { %v1079_v26 = vmul.f32 %v2209_v24, %v1072_v25 }
 0x6b1   : > { %v1086_v28 = vadd.f32 %v2210_v6, %v1079_v26 }
 0x6b3   : > { %v1087_v29 = vpack.c.bf16 %v1086_v28, %v1086_v28 }
 0x6b5   : > { %2419 = vmatmul.mubr.msk.bf16.vlgmr.msra.gmra.mrb[16].mxu0 %vm464_vm1, %v1087_v29 }
 0x6b6   : > { %2438 = vmatprep.mubr.msk.bf16.mxu0 %vm2741_vm0, %v2740_v0  ;;  %2435 = vmatpush3.bf16.msra.mxu0 %v2591_v50 }
 0x6b7   : > { %2436 = vmatprep.subr.bf16.mxu0 %v2740_v0 }
 0x6ba   : > { %2437 = vmatpush3.bf16.msra.mxu0 %v2592_v51 }
 0x6bb   : > { %2442 = vmatprep.subr.bf16.mxu0 %v2740_v0 }
 0x788   : > { %v1148_v33 = vpop.f32.mrb[16].mxu0 }
 0x789   : > { %v1149_v34 = vadd.f32 %v2211_v32, %v1148_v33  ;;  %v2420_v35 = vpop.f32.mrb[17].mxu0 }
 0x78a   : > { %v1151_v36 = vpop.f32.mrb[18].mxu0 }
 0x78b   : > { %v1154_v37 = vmax.f32 %v1149_v34, 0.0  ;;  %v2421_v38 = vpop.f32.mrb[19].mxu0 }
 0x78d   : > { %v1155_v39 = vpack.c.bf16 %v1154_v37, %v1154_v37 }
 0x78f   : > { %2431 = vmatmul.mubr.msk.bf16.vlgmr.msra.gmra.mrb[24].mxu1 %vm1195_vm10, %v1155_v39 }
 0x790   : > { %2450 = vmatprep.mubr.msk.bf16.mxu1 %vm2741_vm0, %v2740_v0 }
 0x862   : > { %v1233_v41 = vpop.f32.mrb[24].mxu1 }
 0x863   : > { %v1234_v42 = vadd.f32 %v2215_v40, %v1233_v41  ;;  %v2432_v43 = vpop.f32.mrb[25].mxu1 }
 0x864   : > { %v1236_v44 = vpop.f32.mrb[26].mxu1 }
 0x865   : > { %v1239_v45 = vadd.f32 %v1234_v42, %v1086_v28  ;;  %v2433_v46 = vpop.f32.mrb[27].mxu1 }
 0x867   : > { %v1242_v47 = vsel %vm464_vm1, %v1239_v45, 0.0  ;;  %v1246_v48 = vmul.f32 %v1239_v45, %v1239_v45 }
 0x868   : > { %1243 = vadd.xlane.f32.xlu0 %v1242_v47 }
 0x869   : > { %v1247_v49 = vsel %vm464_vm1, %v1246_v48, 0.0 }
 0x86c   : > { %1248 = vadd.xlane.f32.xlu0 %v1247_v49 }
 0x8f5   : > { %v1244_v52 = vpop.xlane.xlu0 %1243 }
 0x8f6   : > { %v1245_v53 = vmul.f32 0.03125, %v1244_v52 }
 0x8f8   : > { %v1251_v55 = vmul.f32 %v1245_v53, %v1245_v53  ;;  %v1253_v59 = vsub.f32 %v1239_v45, %v1245_v53 }
 0x8f9   : > { %v1249_v54 = vpop.xlane.xlu0 %1248 }
 0x8fa   : > { %v1250_v56 = vmul.f32 0.03125, %v1249_v54 }
 0x8fc   : > { %v1252_v57 = vsub.f32 %v1250_v56, %v1251_v55 }
 0x8fe   : > { %v1254_v58 = vadd.f32 1e-05, %v1252_v57 }
 0x900   : > { %2619 = vrsqrt.f32 %v1254_v58 }
 0x90a   : > { %v2620_v60 = vpop.eup %2619 }
 0x90b   : > { %v1256_v62 = vmul.f32 %v2620_v60, %v1253_v59 }
 0x90d   : > { %v1263_v1 = vmul.f32 %v2221_v61, %v1256_v62 }
 0x90f   : > { %v3127_v2 = vadd.f32 %v2222_v63, %v1263_v1 }
 0x911   : > { %v1271_v4 = vpack.c.bf16 %v3127_v2, %v3127_v2 }
 0x913   : > { %2439 = vmatmul.mubr.msk.bf16.vlgmr.msra.gmra.mrb[20].mxu0 %vm464_vm1, %v1271_v4 }
 0x914   : > { %2444 = vmatprep.mubr.msk.bf16.mxu0 %vm2741_vm0, %v2740_v0 }
 0x9e6   : > { %v1326_v5 = vpop.f32.mrb[20].mxu0 }
 0x9e7   : > { %v3134_v7 = vpack.c.bf16 %v1326_v5, %v1326_v5  ;;  %v2440_v8 = vpop.f32.mrb[21].mxu0 }
 0x9e8   : > { %v1329_v9 = vpop.f32.mrb[22].mxu0 }
 0x9e9   : > { %1448 = vrot.lane.b32.xlu0 %v3134_v7, %s2745_s23  ;;  %1334 = vrot.lane.b32.xlu1 %v3134_v7, %s2743_s13  ;;  %v2441_v10 = vpop.f32.mrb[23].mxu0  ;;  %s3374_s13 = smov 56   ;;  %s3375_s23 = smov 64  }
 0x9ed   : > { %1566 = vrot.lane.b32.xlu0 %v3134_v7, %s2747_s27  ;;  %1446 = vrot.lane.b32.xlu1 %v3134_v7, %s3370_s29  ;;  %s3376_s27 = smov 40  }
 0x9f1   : > { %1686 = vrot.lane.b32.xlu0 %v3134_v7, %s3371_s26  ;;  %1568 = vrot.lane.b32.xlu1 %v3134_v7, %s3372_s28  ;;  %s3379_s28 = smov 16  }
 0x9f5   : > { %1688 = vrot.lane.b32.xlu1 %v3134_v7, %s3373_s20  ;;  %s3380_s20 = smov 24  }
 0xa5b   : > { %v1335_v11 = vpop.permute.xlu1 %1334  ;;  %v1449_v13 = vpop.permute.xlu0 %1448 }
 0xa5c   : > { %v1340_v12 = vsel %vm512_vm2, %v1335_v11, 0  ;;  %v1454_v14 = vsel %vm512_vm2, %v1449_v13, 0 }
 0xa5d   : > { %2443 = vmatpush3.bf16.xpose.msra.mxu0 %v1340_v12 }
 0xa5e   : > { %2454 = vmatprep.subr.bf16.mxu0 %v2740_v0 }
 0xa5f   : > { %v1447_v3 = vpop.permute.xlu1 %1446  ;;  %v1567_v18 = vpop.permute.xlu0 %1566 }
 0xa63   : > { %v1569_v15 = vpop.permute.xlu1 %1568  ;;  %v1687_v20 = vpop.permute.xlu0 %1686 }
 0xa64   : > { %2445 = vmatmul.mubr.msk.bf16.vlgmr.msra.gmra.mrb[24].mxu0 %vm512_vm2, %v3134_v7  ;;  %v1574_v16 = vsel %vm512_vm2, %v1569_v15, 0 }
 0xa65   : > { %2455 = vmatpush3.bf16.xpose.msra.mxu0 %v1454_v14  ;;  %2456 = vmatprep.mubr.msk.bf16.mxu0 %vm2741_vm0, %v2740_v0 }
 0xa66   : > { %2466 = vmatprep.subr.bf16.mxu0 %v2740_v0 }
 0xa67   : > { %v1689_v17 = vpop.permute.xlu1 %1688 }
 0xa68   : > { %v1694_v19 = vsel %vm512_vm2, %v1689_v17, 0 }
 0xa6c   : > { %2457 = vmatmul.mubr.msk.bf16.vlgmr.msra.gmra.mrb[28].mxu0 %vm512_vm2, %v1447_v3 }
 0xa6d   : > { %2467 = vmatpush3.bf16.xpose.msra.mxu0 %v1574_v16  ;;  %2468 = vmatprep.mubr.msk.bf16.mxu0 %vm2741_vm0, %v2740_v0 }
 0xa6e   : > { %2478 = vmatprep.subr.bf16.mxu0 %v2740_v0 }
 0xa74   : > { %2469 = vmatmul.mubr.msk.bf16.vlgmr.msra.gmra.mrb[32].mxu0 %vm512_vm2, %v1567_v18 }
 0xa75   : > { %2479 = vmatpush3.bf16.xpose.msra.mxu0 %v1694_v19  ;;  %2480 = vmatprep.mubr.msk.bf16.mxu0 %vm2741_vm0, %v2740_v0 }
 0xa76   : > { %2490 = vmatprep.subr.bf16.mxu0 %v2740_v0 }
 0xa7c   : > { %2481 = vmatmul.mubr.msk.bf16.vlgmr.msra.gmra.mrb[36].mxu0 %vm512_vm2, %v1687_v20 }
 0xa7d   : > { %2494 = vmatprep.mubr.msk.bf16.mxu0 %vm2741_vm0, %v2740_v0 }
 0xb37   : > { %v1376_v21 = vpop.f32.mrb[24].mxu0 }
 0xb38   : > { %v1382_v22 = vmul.f32 0.35355338, %v1376_v21  ;;  %v2446_v23 = vpop.f32.mrb[25].mxu0 }
 0xb39   : > { %v1379_v24 = vpop.f32.mrb[26].mxu0 }
 0xb3a   : > { %v2447_v25 = vpop.f32.mrb[27].mxu0  ;;  %v1383_v6 = vsel %vm565_vm4, %v1382_v22, -1000000.0 }
 0xb3b   : > { %v1384_v26 = vsel %vm512_vm2, %v1383_v6, -inf }
 0xb3c   : > { %1385 = vmax.xlane.f32.xlu1 %v1384_v26 }
 0xb3f   : > { %v1490_v28 = vpop.f32.mrb[28].mxu0 }
 0xb40   : > { %v1496_v29 = vmul.f32 0.35355338, %v1490_v28  ;;  %v2458_v30 = vpop.f32.mrb[29].mxu0 }
 0xb41   : > { %v1493_v31 = vpop.f32.mrb[30].mxu0 }
 0xb42   : > { %v2459_v32 = vpop.f32.mrb[31].mxu0  ;;  %v1497_v33 = vsel %vm565_vm4, %v1496_v29, -1000000.0 }
 0xb43   : > { %v1498_v34 = vsel %vm512_vm2, %v1497_v33, -inf }
 0xb44   : > { %1499 = vmax.xlane.f32.xlu0 %v1498_v34 }
 0xb47   : > { %v1610_v35 = vpop.f32.mrb[32].mxu0 }
 0xb48   : > { %v1616_v36 = vmul.f32 0.35355338, %v1610_v35  ;;  %v2470_v37 = vpop.f32.mrb[33].mxu0 }
 0xb49   : > { %v1613_v38 = vpop.f32.mrb[34].mxu0 }
 0xb4a   : > { %v2471_v39 = vpop.f32.mrb[35].mxu0  ;;  %v1617_v40 = vsel %vm565_vm4, %v1616_v36, -1000000.0 }
 0xb4b   : > { %v1618_v41 = vsel %vm512_vm2, %v1617_v40, -inf }
 0xb4c   : > { %1619 = vmax.xlane.f32.xlu0 %v1618_v41  ;;  %v2593_v41 = vld [vmem:[%s3334_s3 + $0x10] sm:$0xff]  }
 0xb4d   : > { %2491 = vmatpush3.bf16.msra.mxu0 %v2593_v41 }
 0xb4e   : > { %2492 = vmatprep.subr.bf16.mxu0 %v2740_v0 }
 0xb4f   : > { %v1730_v42 = vpop.f32.mrb[36].mxu0 }
 0xb50   : > { %v1736_v43 = vmul.f32 0.35355338, %v1730_v42  ;;  %v2482_v44 = vpop.f32.mrb[37].mxu0  ;;  %v2594_v42 = vld [vmem:[%s3334_s3 + $0x18] sm:$0xff]  }
 0xb51   : > { %v1733_v45 = vpop.f32.mrb[38].mxu0  ;;  %2493 = vmatpush3.bf16.msra.mxu0 %v2594_v42 }
 0xb52   : > { %v2483_v46 = vpop.f32.mrb[39].mxu0  ;;  %v1737_v47 = vsel %vm565_vm4, %v1736_v43, -1000000.0  ;;  %2506 = vmatprep.subr.bf16.mxu0 %v2740_v0 }
 0xb53   : > { %v1738_v48 = vsel %vm512_vm2, %v1737_v47, -inf }
 0xb54   : > { %1739 = vmax.xlane.f32.xlu1 %v1738_v48 }
 0xbc9   : > { %v1386_v49 = vpop.xlane.xlu1 %1385 }
 0xbca   : > { %v1387_v50 = vsub.f32 %v1383_v6, %v1386_v49 }
 0xbcc   : > { %v1388_v51 = vmul.f32 1.442695, %v1387_v50 }
 0xbce   : > { %2621 = vpow2.f32 %v1388_v51 }
 0xbd1   : > { %v1500_v52 = vpop.xlane.xlu0 %1499 }
 0xbd2   : > { %v1501_v53 = vsub.f32 %v1497_v33, %v1500_v52 }
 0xbd4   : > { %v1502_v54 = vmul.f32 1.442695, %v1501_v53 }
 0xbd6   : > { %2623 = vpow2.f32 %v1502_v54 }
 0xbd8   : > { %v2622_v55 = vpop.eup %2621 }
 0xbd9   : > { %v1620_v56 = vpop.xlane.xlu0 %1619  ;;  %v1390_v57 = vsel %vm512_vm2, %v2622_v55, 0.0 }
 0xbda   : > { %v1621_v58 = vsub.f32 %v1617_v40, %v1620_v56  ;;  %1391 = vadd.xlane.f32.xlu0 %v1390_v57 }
 0xbdc   : > { %v1622_v59 = vmul.f32 1.442695, %v1621_v58 }
 0xbde   : > { %2625 = vpow2.f32 %v1622_v59 }
 0xbe0   : > { %v2624_v27 = vpop.eup %2623 }
 0xbe1   : > { %v1504_v60 = vsel %vm512_vm2, %v2624_v27, 0.0  ;;  %v1740_v63 = vpop.xlane.xlu1 %1739 }
 0xbe2   : > { %1505 = vadd.xlane.f32.xlu1 %v1504_v60  ;;  %v1741_v1 = vsub.f32 %v1737_v47, %v1740_v63 }
 0xbe4   : > { %v1742_v4 = vmul.f32 1.442695, %v1741_v1  ;;  %v2595_v1 = vld [vmem:[%s3337_s6 + $0x10] sm:$0xff]  }
 0xbe6   : > { %2627 = vpow2.f32 %v1742_v4  ;;  %v2597_v4 = vld [vmem:[%s3339_s8 + $0x20] sm:$0xff]  }
 0xbe8   : > { %v2626_v61 = vpop.eup %2625 }
 0xbe9   : > { %v1624_v62 = vsel %vm512_vm2, %v2626_v61, 0.0 }
 0xbea   : > { %1625 = vadd.xlane.f32.xlu0 %v1624_v62 }
 0xbf0   : > { %v2628_v5 = vpop.eup %2627 }
 0xbf1   : > { %v1744_v8 = vsel %vm512_vm2, %v2628_v5, 0.0 }
 0xbf3   : > { %1510 = vrot.lane.b32.xlu1 %v3134_v7, %s3374_s13 }
 0xc00   : > { %1396 = vrot.lane.b32.xlu0 %v3134_v7, %s3375_s23 }
 0xc04   : > { %1750 = vrot.lane.b32.xlu0 %v3134_v7, %s3376_s27  ;;  %s2281_s27 = sshll.u32 %s2844_s25, 7  ;;  %s2757_s25 = smov [#allocation6]  }
 0xc05   : > { %s3286_s26 = scalar_lea.hbm %s3343_s12, %s2281_s27  ;;  %s2675_s13 = sshll.u32 %s2757_s25, 4  ;;  %s2676_s13 = int_to_ptr.vmem [resolvable:$false] %s2675_s13 }
 0xc06   : > { %s2677_s23 = scalar_lea.vmem %s2676_s13, 256 }
 0xc17   : > { %1745 = vadd.xlane.f32.xlu1 %v1744_v8 }
 0xc28   : > { %1630 = vrot.lane.b32.xlu1 %v3134_v7, %s3377_s19  ;;  %s3381_s19 = sshll.u32 %s2928_s18, 3 }
 0xc67   : > { %v1392_v9 = vpop.xlane.xlu0 %1391 }
 0xc68   : > { %2629 = vrcp.f32 %v1392_v9 }
 0xc6f   : > { %v1506_v10 = vpop.xlane.xlu1 %1505 }
 0xc70   : > { %2631 = vrcp.f32 %v1506_v10 }
 0xc72   : > { %v2630_v11 = vpop.eup %2629 }
 0xc73   : > { %v1394_v13 = vmul.f32 %v2630_v11, %v2622_v55  ;;  %v1511_v15 = vpop.permute.xlu1 %1510 }
 0xc74   : > { %v1516_v18 = vsel %vm584_vm5, %v1511_v15, 0 }
 0xc75   : > { %v1395_v16 = vpack.c.bf16 %v1394_v13, %v1394_v13 }
 0xc77   : > { %v1626_v12 = vpop.xlane.xlu0 %1625 }
 0xc78   : > { %2633 = vrcp.f32 %v1626_v12 }
 0xc7a   : > { %v2632_v17 = vpop.eup %2631 }
 0xc7b   : > { %v1397_v3 = vpop.permute.xlu0 %1396  ;;  %v1508_v7 = vmul.f32 %v2632_v17, %v2624_v27 }
 0xc7c   : > { %v1402_v14 = vsel %vm584_vm5, %v1397_v3, 0 }
 0xc7d   : > { %2449 = vmatpush3.bf16.msra.mxu1 %v1402_v14  ;;  %v1509_v19 = vpack.c.bf16 %v1508_v7, %v1508_v7 }
 0xc7e   : > { %2460 = vmatprep.subr.bf16.mxu1 %v2740_v0 }
 0xc7f   : > { %v1751_v25 = vpop.permute.xlu0 %1750 }
 0xc80   : > { %2451 = vmatmul.mubr.msk.bf16.vlgmr.msra.gmra.mrb[28].mxu1 %vm512_vm2, %v1395_v16  ;;  %v1756_v26 = vsel %vm584_vm5, %v1751_v25, 0  ;;  %v2250_v16 = vld [vmem:[%s3335_s4 + $0x1] ss:$0 sm:$0xff] }
 0xc81   : > { %2461 = vmatpush3.bf16.msra.mxu1 %v1516_v18  ;;  %2462 = vmatprep.mubr.msk.bf16.mxu1 %vm2741_vm0, %v2740_v0  ;;  %v2251_v18 = vld [vmem:[%s3336_s5 + $0x1] ss:$0 sm:$0xff] }
 0xc82   : > { %2472 = vmatprep.subr.bf16.mxu1 %v2740_v0  ;;  %v2634_v20 = vpop.eup %2633 }
 0xc83   : > { %v1628_v22 = vmul.f32 %v2634_v20, %v2626_v61 }
 0xc85   : > { %v1629_v6 = vpack.c.bf16 %v1628_v22, %v1628_v22  ;;  %v2600_v22 = vld [vmem:[%s3339_s8 + $0x38] sm:$0xff]  }
 0xc88   : > { %2463 = vmatmul.mubr.msk.bf16.vlgmr.msra.gmra.mrb[32].mxu1 %vm512_vm2, %v1509_v19 }
 0xc89   : > { %2474 = vmatprep.mubr.msk.bf16.mxu1 %vm2741_vm0, %v2740_v0 }
 0xca4   : > { %v1746_v21 = vpop.xlane.xlu1 %1745 }
 0xca5   : > { %2635 = vrcp.f32 %v1746_v21  ;;  %v2599_v21 = vld [vmem:[%s3339_s8 + $0x30] sm:$0xff]  }
 0xca8   : > { %v1631_v23 = vpop.permute.xlu1 %1630 }
 0xca9   : > { %v1636_v24 = vsel %vm584_vm5, %v1631_v23, 0  ;;  %v2257_v23 = vld [vmem:[%s3338_s7 + $0x1] ss:$0 sm:$0xff] }
 0xcaa   : > { %2473 = vmatpush3.bf16.msra.mxu1 %v1636_v24 }
 0xcab   : > { %2484 = vmatprep.subr.bf16.mxu1 %v2740_v0 }
 0xcad   : > { %2475 = vmatmul.mubr.msk.bf16.vlgmr.msra.gmra.mrb[36].mxu1 %vm512_vm2, %v1629_v6 }
 0xcae   : > { %2485 = vmatpush3.bf16.msra.mxu1 %v1756_v26  ;;  %2486 = vmatprep.mubr.msk.bf16.mxu1 %vm2741_vm0, %v2740_v0 }
 0xcaf   : > { %v2636_v28 = vpop.eup %2635  ;;  %2498 = vmatprep.subr.bf16.mxu1 %v2740_v0 }
 0xcb0   : > { %v1748_v29 = vmul.f32 %v2636_v28, %v2628_v5  ;;  %v2598_v5 = vld [vmem:[%s3339_s8 + $0x28] sm:$0xff]  }
 0xcb2   : > { %v1749_v30 = vpack.c.bf16 %v1748_v29, %v1748_v29 }
 0xcb5   : > { %2487 = vmatmul.mubr.msk.bf16.vlgmr.msra.gmra.mrb[40].mxu1 %vm512_vm2, %v1749_v30 }
 0xcb6   : > { %2502 = vmatprep.mubr.msk.bf16.mxu1 %vm2741_vm0, %v2740_v0  ;;  %2499 = vmatpush3.bf16.msra.mxu1 %v2595_v1 }
 0xcb7   : > { %2500 = vmatprep.subr.bf16.mxu1 %v2740_v0 }
 0xd53   : > { %v1438_v31 = vpop.f32.mrb[28].mxu1 }
 0xd54   : > { %v1444_v32 = vpack.c.bf16 %v1438_v31, %v1438_v31  ;;  %v2452_v33 = vpop.f32.mrb[29].mxu1 }
 0xd55   : > { %v1441_v34 = vpop.f32.mrb[30].mxu1 }
 0xd56   : > { %1445 = vst.msk [vmem:[#allocation2] sm:$0xf] %vm629_vm6, %v1444_v32  ;;  %v2453_v35 = vpop.f32.mrb[31].mxu1 }
 0xd5b   : > { %v1552_v36 = vpop.f32.mrb[32].mxu1 }
 0xd5c   : > { %v2287_v37 = vpack.c.bf16 %v1552_v36, %v1552_v36  ;;  %v2464_v38 = vpop.f32.mrb[33].mxu1 }
 0xd5d   : > { %v1555_v39 = vpop.f32.mrb[34].mxu1 }
 0xd5e   : > { %1562 = vrot.lane.b32.xlu1 %v2287_v37, %s3378_s17  ;;  %v2465_v40 = vpop.f32.mrb[35].mxu1  ;;  %s439_s17 = scalar_lea.vmem [#allocation6], %s3381_s19 }
 0xd5f   : > { %s2105_s14 = sshll.u32 %s439_s17, 4  ;;  %s3288_s14 = int_to_ptr.vmem [resolvable:$true] %s2105_s14 }
 0xd60   : > { %p2678_p10 = scmp.lt.s32.totalorder %s3288_s14, %s2676_s13 }
 0xd80   : > { %v1672_v43 = vpop.f32.mrb[36].mxu1 }
 0xd81   : > { %v2288_v44 = vpack.c.bf16 %v1672_v43, %v1672_v43  ;;  %v2476_v45 = vpop.f32.mrb[37].mxu1 }
 0xd82   : > { %v1675_v46 = vpop.f32.mrb[38].mxu1 }
 0xd83   : > { %1682 = vrot.lane.b32.xlu0 %v2288_v44, %s3379_s28  ;;  %v2477_v47 = vpop.f32.mrb[39].mxu1  ;;  %s2092_s28 = scalar_lea.sflag [#allocation5], %s2928_s18 }
 0xd88   : > { %v1792_v48 = vpop.f32.mrb[40].mxu1 }
 0xd89   : > { %v2289_v49 = vpack.c.bf16 %v1792_v48, %v1792_v48  ;;  %v2488_v50 = vpop.f32.mrb[41].mxu1 }
 0xd8a   : > { %v1795_v51 = vpop.f32.mrb[42].mxu1 }
 0xd8b   : > { %1802 = vrot.lane.b32.xlu1 %v2289_v49, %s3380_s20  ;;  %v2489_v52 = vpop.f32.mrb[43].mxu1  ;;  %v2278_v49 = vld [vmem:[%s3341_s10 + $0x1] ss:$0 sm:$0xff]  ;;  %s2671_s20 = scalar_lea.vmem %s3288_s14, 128 }
 0xd8c   : > { %v2279_v51 = vld [vmem:[%s3342_s11 + $0x1] ss:$0 sm:$0xff]  ;;  %p2672_p11 = scmp.ne.s32.totalorder %s3288_s14, %s2671_s20  ;;  %p2679_p2 = scmp.lt.s32.totalorder %s2677_s23, %s2671_s20 }
 0xd8e   : > { %p2673_p13 = pnand %p2672_p11, %p3382_p12  ;;  %p2680_p4 = por %p2679_p2, %p2678_p10 }
 0xd90   : > { %p2674_p7 = pneg %p2673_p13 }
 0xd92   : > { %p2681_p5 = pnand %p2680_p4, %p2674_p7 }
 0xdd0   : > { %v1563_v53 = vpop.permute.xlu1 %1562 }
 0xdd1   : > { %1565 = vst.msk [vmem:[#allocation2] sm:$0xf] %vm750_vm7, %v1563_v53 }
 0xdf5   : > { %v1683_v54 = vpop.permute.xlu0 %1682 }
 0xdf6   : > { %1685 = vst.msk [vmem:[#allocation2] sm:$0xf] %vm871_vm8, %v1683_v54 }
 0xdfd   : > { %v1803_v55 = vpop.permute.xlu1 %1802 }
 0xdfe   : > { %1805 = vst.msk [vmem:[#allocation2] sm:$0xf] %vm992_vm9, %v1803_v55 }
 0xe05   : > { %v1806_v56 = vld [vmem:[#allocation2] sm:$0xf] }
 0xe06   : > { %2495 = vmatmul.mubr.msk.bf16.vlgmr.msra.gmra.mrb[40].mxu0 %vm464_vm1, %v1806_v56 }
 0xe07   : > { %2514 = vmatprep.mubr.msk.bf16.mxu0 %vm2741_vm0, %v2740_v0  ;;  %2507 = vmatpush3.bf16.msra.mxu0 %v2597_v4 }
 0xe08   : > { %2508 = vmatprep.subr.bf16.mxu0 %v2740_v0 }
 0xe0b   : > { %2509 = vmatpush3.bf16.msra.mxu0 %v2598_v5 }
 0xe0c   : > { %2510 = vmatprep.subr.bf16.mxu0 %v2740_v0 }
 0xe0f   : > { %2511 = vmatpush3.bf16.msra.mxu0 %v2599_v21 }
 0xe10   : > { %2512 = vmatprep.subr.bf16.mxu0 %v2740_v0  ;;  %v2270_v0 = vld [vmem:[%s3340_s9 + $0x1] ss:$0 sm:$0xff] }
 0xe13   : > { %2513 = vmatpush3.bf16.msra.mxu0 %v2600_v22 }
 0xed9   : > { %v1861_v57 = vpop.f32.mrb[40].mxu0 }
 0xeda   : > { %v1867_v58 = vadd.f32 %v1861_v57, %v3127_v2  ;;  %v2496_v59 = vpop.f32.mrb[41].mxu0  ;;  %v2596_v2 = vld [vmem:[%s3337_s6 + $0x18] sm:$0xff]  }
 0xedb   : > { %v1864_v27 = vpop.f32.mrb[42].mxu0  ;;  %2501 = vmatpush3.bf16.msra.mxu1 %v2596_v2 }
 0xedc   : > { %v2497_v60 = vpop.f32.mrb[43].mxu0  ;;  %v1872_v61 = vsel %vm464_vm1, %v1867_v58, 0.0  ;;  %v1876_v62 = vmul.f32 %v1867_v58, %v1867_v58 }
 0xedd   : > { %1873 = vadd.xlane.f32.xlu0 %v1872_v61 }
 0xede   : > { %v1877_v63 = vsel %vm464_vm1, %v1876_v62, 0.0 }
 0xedf   : > { %1878 = vadd.xlane.f32.xlu1 %v1877_v63 }
 0xf6a   : > { %v1874_v8 = vpop.xlane.xlu0 %1873 }
 0xf6b   : > { %v1875_v9 = vmul.f32 0.03125, %v1874_v8 }
 0xf6c   : > { %v1879_v10 = vpop.xlane.xlu1 %1878 }
 0xf6d   : > { %v1881_v11 = vmul.f32 %v1875_v9, %v1875_v9  ;;  %v1880_v12 = vmul.f32 0.03125, %v1879_v10  ;;  %v1883_v14 = vsub.f32 %v1867_v58, %v1875_v9 }
 0xf6f   : > { %v1882_v13 = vsub.f32 %v1880_v12, %v1881_v11 }
 0xf71   : > { %v1884_v3 = vadd.f32 1e-05, %v1882_v13 }
 0xf73   : > { %2637 = vrsqrt.f32 %v1884_v3 }
 0xf7d   : > { %v2638_v15 = vpop.eup %2637 }
 0xf7e   : > { %v1886_v17 = vmul.f32 %v2638_v15, %v1883_v14 }
 0xf80   : > { %v1893_v7 = vmul.f32 %v2250_v16, %v1886_v17 }
 0xf82   : > { %v1900_v19 = vadd.f32 %v2251_v18, %v1893_v7 }
 0xf84   : > { %v1901_v20 = vpack.c.bf16 %v1900_v19, %v1900_v19 }
 0xf86   : > { %2503 = vmatmul.mubr.msk.bf16.vlgmr.msra.gmra.mrb[44].mxu1 %vm464_vm1, %v1901_v20 }
0x1059   : > { %v1964_v24 = vpop.f32.mrb[44].mxu1 }
0x105a   : > { %v1965_v25 = vadd.f32 %v2257_v23, %v1964_v24  ;;  %v2504_v6 = vpop.f32.mrb[45].mxu1 }
0x105b   : > { %v1967_v26 = vpop.f32.mrb[46].mxu1 }
0x105c   : > { %v1970_v28 = vmax.f32 %v1965_v25, 0.0  ;;  %v2505_v29 = vpop.f32.mrb[47].mxu1 }
0x105e   : > { %v1971_v30 = vpack.c.bf16 %v1970_v28, %v1970_v28 }
0x1060   : > { %2515 = vmatmul.mubr.msk.bf16.vlgmr.msra.gmra.mrb[44].mxu0 %vm1195_vm10, %v1971_v30 }
0x1133   : > { %v2050_v31 = vpop.f32.mrb[44].mxu0 }
0x1134   : > { %v2051_v32 = vadd.f32 %v2270_v0, %v2050_v31  ;;  %v2516_v33 = vpop.f32.mrb[45].mxu0 }
0x1135   : > { %v2053_v34 = vpop.f32.mrb[46].mxu0 }
0x1136   : > { %v2056_v35 = vadd.f32 %v2051_v32, %v1900_v19  ;;  %v2517_v36 = vpop.f32.mrb[47].mxu0 }
0x1138   : > { %v2061_v37 = vsel %vm464_vm1, %v2056_v35, 0.0  ;;  %v2065_v38 = vmul.f32 %v2056_v35, %v2056_v35 }
0x1139   : > { %2062 = vadd.xlane.f32.xlu0 %v2061_v37 }
0x113a   : > { %v2066_v39 = vsel %vm464_vm1, %v2065_v38, 0.0 }
0x113d   : > { %2067 = vadd.xlane.f32.xlu0 %v2066_v39 }
0x11c6   : > { %v2063_v40 = vpop.xlane.xlu0 %2062 }
0x11c7   : > { %v2064_v41 = vmul.f32 0.03125, %v2063_v40 }
0x11c9   : > { %v2070_v43 = vmul.f32 %v2064_v41, %v2064_v41  ;;  %v2072_v47 = vsub.f32 %v2056_v35, %v2064_v41 }
0x11ca   : > { %v2068_v42 = vpop.xlane.xlu0 %2067 }
0x11cb   : > { %v2069_v44 = vmul.f32 0.03125, %v2068_v42 }
0x11cd   : > { %v2071_v45 = vsub.f32 %v2069_v44, %v2070_v43 }
0x11cf   : > { %v2073_v46 = vadd.f32 1e-05, %v2071_v45 }
0x11d1   : > { %2639 = vrsqrt.f32 %v2073_v46 }
0x11db   : > { %v2640_v48 = vpop.eup %2639 }
0x11dc   : > { %v2075_v50 = vmul.f32 %v2640_v48, %v2072_v47 }
0x11de   : > { %v2082_v52 = vmul.f32 %v2278_v49, %v2075_v50 }
0x11e0   : > { %v2089_v53 = vadd.f32 %v2279_v51, %v2082_v52 }
0x11e2   : > { %2090 = vst.msk [vmem:[%s439_s17] sm:$0xff] %vm464_vm1, %v2089_v53 }
0x11e3   : > { %2684 = shalt.err (!%p2681_p5)
}
0x11e4   : > { %s2685_s18 = scalar_lea.hbm %s3286_s26, 128  ;;  %s2689_s17 = scalar_lea.hbm %s3343_s12, 256 }
0x11e5   : > { %p2686_p8 = scmp.ne.s32.totalorder %s3286_s26, %s2685_s18  ;;  %p2690_p1 = scmp.lt.u32.totalorder %s3286_s26, %s3343_s12 }
0x11e6   : > { %p2691_p3 = scmp.lt.u32.totalorder %s2689_s17, %s2685_s18  ;;  %p2693_p11 = scmp.lt.u32.totalorder %s2685_s18, %s3286_s26 }
0x11e7   : > { %p2687_p9 = pnand %p2686_p8, %p3382_p12 }
0x11e8   : > { %p2692_p6 = por %p2691_p3, %p2690_p1 }
0x11e9   : > { %p2688_p0 = pneg %p2687_p9 }
0x11ea   : > { %p2694_p13 = por %p2693_p11, %p2692_p6 }
0x11ec   : > { %p2695_p7 = pnand %p2694_p13, %p2688_p0 }
0x11ee   : > { %2698 = shalt.err (!%p2695_p7)
}
0x11ef   : > { %2520 = dma.vmem_to_hbm [thread:$0]  (%p3382_p12), %s3288_s14, 128, %s3286_s26, %s2092_s28  }
0x11f0 PF: > { %s2117_s20 = sand.u32 1, %s2725_s21   ;;  %p3383_p10 = scmp.ne.s32.totalorder %s3366_s16, 0 }
0x11f1   : > { %p3384_p2 = scmp.ge.s32.totalorder %s2737_s24, 2  ;;  %s2118_s25 = scalar_lea.sflag [#allocation5], %s2117_s20 }
0x11f3   : > { %p2527_p4 = pnand %p3384_p2, %p3383_p10 }
0x11f5   : > { %2720 = dma.done.wait (!%p2527_p4), %s2118_s25, 128  }
0x11f6   : > { %2722 = vsyncadd (!%p2527_p4), %s2118_s25, 4294967168  ;;  %s3385_s24 = sld [smem:[#allocation10_spill]]  ;;  %s3386_s13 = sld [smem:[#allocation9_spill]] }
0x11f7   : > { %s3387_s23 = sld [smem:[#allocation11_spill]]  ;;  %s3388_s21 = smov %s2729_s22 }
0x11fc   : > { %p25_p5 = scmp.ge.s32.totalorder %s3385_s24, 4   ;;  %s3389_s22 = smov %s3386_s13 }
0x11fe   :  { %27 = sbr.rel (!%p25_p5) target bundleno = 5 (0x5), region = 126 }
0x1205   :  { %2123 = vsyncpa [#allocation4], 1 }
0x1206   :  { %2125 = vsyncpa [#allocation4 + $0x1], 1 }
0x1207   :  { %2126 = vsyncpa [#allocation5], 1 }
0x1208   :  { %2128 = vsyncpa [#allocation5 + $0x1], 1 }

</bundles_post_ra>
